<compile_context>
chip_gen: v5e
topology: v5e:2x2
jax: 0.10.0
libtpu: 0.0.40
codegen_flags: <defaults>
</compile_context>

<pallas_src>
import jax
import jax.numpy as jnp
import numpy as np
from jax.experimental import pallas as pl
from jax.experimental.pallas import tpu as pltpu

BN_EPS = 0.8           # nn.BatchNorm2d(out_filters, 0.8) -> positional eps
LEAKY_SLOPE = 0.2      # nn.LeakyReLU(0.2)
_VMEM_LIMIT = 32 * 1024 * 1024   # safe on v5e/v6e (128 MiB) and v7x (64 MiB)


# ----------------------------- Pallas kernel -------------------------------

def _disc_kernel(x_ref,
                 s1_ref, w1_ref, b1_ref,
                 s2_ref, w2_ref, b2_ref, sc2_ref, sh2_ref,
                 s3_ref, w3_ref, b3_ref, sc3_ref, sh3_ref,
                 s4_ref, w4_ref, b4_ref, sc4_ref, sh4_ref,
                 wl_ref, bl_ref,
                 o_ref):
    """Entire Discriminator forward for one image, fully resident in VMEM."""

    def conv_block(a, s_ref, w_ref, b_ref, scale_ref=None, shift_ref=None):
        # s_ref: (9, n_out, n_in) 0/1 patch selectors -> in-kernel im2col.
        # w_ref: (9, c_in, c_out) conv weight, one (c_in, c_out) slab per tap.
        n_out = s_ref.shape[1]
        c_in, c_out = w_ref.shape[1], w_ref.shape[2]
        acc = jnp.zeros((n_out, c_out), jnp.float32)
        for t in range(9):                       # static unroll over 3x3 taps
            if c_in == 1:
                # `a` is channel-major (1, n_in): pure VPU/XLU path, no MXU.
                p_t = jnp.sum(s_ref[t] * a, axis=1, keepdims=True)   # (n_out,1)
                acc = acc + p_t * w_ref[t]                           # bcast FMA
            else:
                # `a` is (n_in, c_in): two small MXU matmuls, f32 accumulate.
                p_t = jnp.dot(s_ref[t], a,
                              preferred_element_type=jnp.float32)    # (n_out,c_in)
                acc = acc + jnp.dot(p_t, w_ref[t],
                                    preferred_element_type=jnp.float32)
        y = acc + b_ref[...]
        y = jnp.maximum(y, LEAKY_SLOPE * y)       # LeakyReLU(0.2)
        # TODO(synk): Dropout2d(0.25) is identity in eval mode.
        if scale_ref is not None:                 # eval BatchNorm (pre-folded)
            y = y * scale_ref[...] + shift_ref[...]
        return y

    a = x_ref[...].astype(jnp.float32)
    a = conv_block(a, s1_ref, w1_ref, b1_ref)                        # (64, 16)
    a = conv_block(a, s2_ref, w2_ref, b2_ref, sc2_ref, sh2_ref)      # (16, 32)
    a = conv_block(a, s3_ref, w3_ref, b3_ref, sc3_ref, sh3_ref)      # ( 4, 64)
    a = conv_block(a, s4_ref, w4_ref, b4_ref, sc4_ref, sh4_ref)      # ( 1,128)

    # Linear + Sigmoid head; wl is pre-permuted to (ds*ds, 128) spatial-major,
    # so a VPU multiply + lane/sublane reductions replace a 1-wide matmul.
    r = jnp.sum(a * wl_ref[...], axis=1, keepdims=True)              # (ds*ds,1)
    logit = jnp.sum(r, axis=0, keepdims=True) + bl_ref[...]          # (1, 1)
    o_ref[...] = pl.reciprocal(1.0 + jnp.exp(-logit),
                               approx=True).astype(o_ref.dtype)


# --------------------------- host-side packing ------------------------------

def _build_tap_selectors(h_in, w_in):
    """(9, Ho*Wo, Hin*Win) 0/1 selectors for a 3x3 / stride-2 / pad-1 conv."""
    h_out, w_out = (h_in + 1) // 2, (w_in + 1) // 2
    s = np.zeros((9, h_out * w_out, h_in * w_in), np.float32)
    for kh in range(3):
        for kw in range(3):
            t = 3 * kh + kw
            for ho in range(h_out):
                hi = 2 * ho + kh - 1
                if not 0 <= hi < h_in:
                    continue
                for wo in range(w_out):
                    wi = 2 * wo + kw - 1
                    if not 0 <= wi < w_in:
                        continue
                    s[t, ho * w_out + wo, hi * w_in + wi] = 1.0
    return jnp.asarray(s)


def pack_params(conv_params, head_params, channels, img_size):
    """One-time packing (run OUTSIDE jit): fold eval-BN, reorder conv weights
    per tap, build patch selectors, permute the Linear weight out of the
    PyTorch NCHW flatten order."""
    packed = []
    h = img_size
    for w, b, bn_raw, use_bn in conv_params:
        c_out, c_in = w.shape[0], w.shape[1]
        sel = _build_tap_selectors(h, h)                       # (9, ho*wo, h*h)
        w_taps = jnp.transpose(w, (2, 3, 1, 0)).reshape(9, c_in, c_out)
        entry = [sel, w_taps.astype(jnp.float32),
                 b.reshape(1, c_out).astype(jnp.float32)]
        if use_bn:
            gamma, beta, mean, var = bn_raw
            scale = gamma * jax.lax.rsqrt(var + BN_EPS)
            shift = beta - mean * scale
            entry += [scale.reshape(1, c_out).astype(jnp.float32),
                      shift.reshape(1, c_out).astype(jnp.float32)]
        packed.append(tuple(entry))
        h = (h + 1) // 2
    w_lin, b_lin = head_params
    c_last = conv_params[-1][0].shape[0]
    wl = w_lin.reshape(c_last, h, h).transpose(1, 2, 0).reshape(h * h, c_last)
    packed.append((wl.astype(jnp.float32),
                   b_lin.reshape(1, 1).astype(jnp.float32)))
    return tuple(packed)


# ------------------------------ forward pass --------------------------------

def discriminator_forward(img_nchw, packed):
    """Fused eval-mode Discriminator forward: one pallas_call, grid over batch."""
    (s1, w1, b1), (s2, w2, b2, g2, d2), (s3, w3, b3, g3, d3), \
        (s4, w4, b4, g4, d4), (wl, bl) = packed
    n, c, hh, ww = img_nchw.shape

    if c == 1:
        # channel-major (1, H*W) row per image (pure reshape, no transpose);
        # feeds the MXU-free first-block path inside the kernel.
        x = img_nchw.reshape(n, 1, hh * ww).astype(jnp.float32)
        x_block = (None, 1, hh * ww)
    else:
        x = jnp.transpose(img_nchw, (0, 2, 3, 1)).reshape(
            n, hh * ww, c).astype(jnp.float32)
        x_block = (None, hh * ww, c)

    consts = [s1, w1, b1, s2, w2, b2, g2, d2, s3, w3, b3, g3, d3,
              s4, w4, b4, g4, d4, wl, bl]
    in_specs = [pl.BlockSpec(x_block, lambda i: (i, 0, 0))]
    # Constants: full-array blocks with a constant index_map -> DMA'd once,
    # resident in VMEM across the whole grid.
    in_specs += [pl.BlockSpec(a.shape, lambda i, _nd=a.ndim: (0,) * _nd)
                 for a in consts]

    out = pl.pallas_call(
        _disc_kernel,
        out_shape=jax.ShapeDtypeStruct((n, 1, 1), jnp.float32),
        grid=(n,),                      # >= 2 steps -> both v7x TensorCores
        in_specs=in_specs,
        out_specs=pl.BlockSpec((None, 1, 1), lambda i: (i, 0, 0)),
        compiler_params=pltpu.CompilerParams(
            dimension_semantics=("parallel",),
            vmem_limit_bytes=_VMEM_LIMIT),
    )(x, *consts)
    return out.reshape(n, 1)


# ----------------------- params + pure-XLA reference ------------------------

def init_params(key, channels, img_size):
    blocks = [(channels, 16, False), (16, 32, True), (32, 64, True),
              (64, 128, True)]
    conv_params = []
    for cin, cout, bn in blocks:
        key, k1, k2 = jax.random.split(key, 3)
        w = jax.random.normal(k1, (cout, cin, 3, 3), jnp.float32) * 0.2
        b = jax.random.normal(k2, (cout,), jnp.float32) * 0.2
        gamma = jnp.ones((1, cout), jnp.float32)    # BN weight
        beta = jnp.zeros((1, cout), jnp.float32)    # BN bias
        mean = jnp.zeros((1, cout), jnp.float32)    # running_mean
        var = jnp.ones((1, cout), jnp.float32)      # running_var
        conv_params.append((w, b, (gamma, beta, mean, var), bn))

    ds = img_size // (2 ** 4)
    feat = 128 * ds * ds
    key, k1, k2 = jax.random.split(key, 3)
    w_lin = jax.random.normal(k1, (1, feat), jnp.float32) * 0.2
    b_lin = jax.random.normal(k2, (1,), jnp.float32) * 0.2
    return conv_params, (w_lin, b_lin)


def _reference_forward(img, conv_params, head_params):
    """Plain-XLA eval-mode reference (for a loose numerical cross-check)."""
    x = img
    for w, b, bn_raw, use_bn in conv_params:
        x = jax.lax.conv_general_dilated(
            x, w, window_strides=(2, 2), padding=((1, 1), (1, 1)),
            dimension_numbers=("NCHW", "OIHW", "NCHW"))
        x = x + b.reshape(1, -1, 1, 1)
        x = jnp.maximum(x, LEAKY_SLOPE * x)
        if use_bn:
            gamma, beta, mean, var = bn_raw
            x = ((x - mean.reshape(1, -1, 1, 1))
                 * jax.lax.rsqrt(var.reshape(1, -1, 1, 1) + BN_EPS)
                 * gamma.reshape(1, -1, 1, 1) + beta.reshape(1, -1, 1, 1))
    w_lin, b_lin = head_params
    flat = x.reshape(x.shape[0], -1)                 # PyTorch NCHW flatten
    logit = flat @ w_lin.T + b_lin
    return jax.nn.sigmoid(logit)


# ---------------------------------- demo ------------------------------------

if __name__ == "__main__":
    # opt.channels = 1, opt.img_size = 16  (small, consistent with the model)
    batch, channels, img_size = 2, 1, 16

    key = jax.random.PRNGKey(0)
    k_params, k_img = jax.random.split(key)
    conv_params, head_params = init_params(k_params, channels, img_size)
    img = jax.random.normal(k_img, (batch, channels, img_size, img_size),
                            jnp.float32)

    packed = pack_params(conv_params, head_params, channels, img_size)  # once
    fwd = jax.jit(discriminator_forward)
    validity = jax.block_until_ready(fwd(img, packed))

    assert validity.shape == (batch, 1)
    assert bool(jnp.all(jnp.isfinite(validity)))
    # approx reciprocal in the sigmoid -> allow a hair of slack around [0, 1]
    assert bool(jnp.all((validity > -1e-2) & (validity < 1.0 + 1e-2)))

    ref = _reference_forward(img, conv_params, head_params)
    if not bool(jnp.all(jnp.abs(validity - ref) < 5e-2)):
        raise AssertionError("Pallas output mismatches XLA reference")
    print("KERNEL_OK")
</pallas_src>

<mosaic_0001>
module attributes {stable_mosaic.version = 11 : i64} {
  func.func @_disc_kernel(%arg0: i32, %arg1: memref<1x1x256xf32, #tpu.memory_space<vmem>>, %arg2: memref<9x64x256xf32, #tpu.memory_space<vmem>>, %arg3: memref<9x1x16xf32, #tpu.memory_space<vmem>>, %arg4: memref<1x16xf32, #tpu.memory_space<vmem>>, %arg5: memref<9x16x64xf32, #tpu.memory_space<vmem>>, %arg6: memref<9x16x32xf32, #tpu.memory_space<vmem>>, %arg7: memref<1x32xf32, #tpu.memory_space<vmem>>, %arg8: memref<1x32xf32, #tpu.memory_space<vmem>>, %arg9: memref<1x32xf32, #tpu.memory_space<vmem>>, %arg10: memref<9x4x16xf32, #tpu.memory_space<vmem>>, %arg11: memref<9x32x64xf32, #tpu.memory_space<vmem>>, %arg12: memref<1x64xf32, #tpu.memory_space<vmem>>, %arg13: memref<1x64xf32, #tpu.memory_space<vmem>>, %arg14: memref<1x64xf32, #tpu.memory_space<vmem>>, %arg15: memref<9x1x4xf32, #tpu.memory_space<vmem>>, %arg16: memref<9x64x128xf32, #tpu.memory_space<vmem>>, %arg17: memref<1x128xf32, #tpu.memory_space<vmem>>, %arg18: memref<1x128xf32, #tpu.memory_space<vmem>>, %arg19: memref<1x128xf32, #tpu.memory_space<vmem>>, %arg20: memref<1x128xf32, #tpu.memory_space<vmem>>, %arg21: memref<1x1xf32, #tpu.memory_space<vmem>>, %arg22: memref<1x1x1xf32, #tpu.memory_space<vmem>>) attributes {dimension_semantics = [#tpu.dimension_semantics<parallel>], iteration_bounds = array<i64: 2>, scalar_prefetch = 0 : i64, scratch_operands = 0 : i64, tpu.core_type = #tpu.core_type<tc>, window_params = [{transform_indices = @transform_0, window_bounds = array<i64: 1, 1, 256>}, {pipeline_mode = #tpu.pipeline_mode<synchronous>, transform_indices = @transform_1, window_bounds = array<i64: 9, 64, 256>}, {pipeline_mode = #tpu.pipeline_mode<synchronous>, transform_indices = @transform_2, window_bounds = array<i64: 9, 1, 16>}, {pipeline_mode = #tpu.pipeline_mode<synchronous>, transform_indices = @transform_3, window_bounds = array<i64: 1, 16>}, {pipeline_mode = #tpu.pipeline_mode<synchronous>, transform_indices = @transform_4, window_bounds = array<i64: 9, 16, 64>}, {pipeline_mode = #tpu.pipeline_mode<synchronous>, transform_indices = @transform_5, window_bounds = array<i64: 9, 16, 32>}, {pipeline_mode = #tpu.pipeline_mode<synchronous>, transform_indices = @transform_6, window_bounds = array<i64: 1, 32>}, {pipeline_mode = #tpu.pipeline_mode<synchronous>, transform_indices = @transform_7, window_bounds = array<i64: 1, 32>}, {pipeline_mode = #tpu.pipeline_mode<synchronous>, transform_indices = @transform_8, window_bounds = array<i64: 1, 32>}, {pipeline_mode = #tpu.pipeline_mode<synchronous>, transform_indices = @transform_9, window_bounds = array<i64: 9, 4, 16>}, {pipeline_mode = #tpu.pipeline_mode<synchronous>, transform_indices = @transform_10, window_bounds = array<i64: 9, 32, 64>}, {pipeline_mode = #tpu.pipeline_mode<synchronous>, transform_indices = @transform_11, window_bounds = array<i64: 1, 64>}, {pipeline_mode = #tpu.pipeline_mode<synchronous>, transform_indices = @transform_12, window_bounds = array<i64: 1, 64>}, {pipeline_mode = #tpu.pipeline_mode<synchronous>, transform_indices = @transform_13, window_bounds = array<i64: 1, 64>}, {pipeline_mode = #tpu.pipeline_mode<synchronous>, transform_indices = @transform_14, window_bounds = array<i64: 9, 1, 4>}, {pipeline_mode = #tpu.pipeline_mode<synchronous>, transform_indices = @transform_15, window_bounds = array<i64: 9, 64, 128>}, {pipeline_mode = #tpu.pipeline_mode<synchronous>, transform_indices = @transform_16, window_bounds = array<i64: 1, 128>}, {pipeline_mode = #tpu.pipeline_mode<synchronous>, transform_indices = @transform_17, window_bounds = array<i64: 1, 128>}, {pipeline_mode = #tpu.pipeline_mode<synchronous>, transform_indices = @transform_18, window_bounds = array<i64: 1, 128>}, {pipeline_mode = #tpu.pipeline_mode<synchronous>, transform_indices = @transform_19, window_bounds = array<i64: 1, 128>}, {pipeline_mode = #tpu.pipeline_mode<synchronous>, transform_indices = @transform_20, window_bounds = array<i64: 1, 1>}, {transform_indices = @transform_21, window_bounds = array<i64: 1, 1, 1>}]} {
    %c0 = arith.constant 0 : index
    %c0_0 = arith.constant 0 : index
    %c0_1 = arith.constant 0 : index
    %0 = vector.load %arg1[%c0, %c0_0, %c0_1] : memref<1x1x256xf32, #tpu.memory_space<vmem>>, vector<1x1x256xf32>
    %1 = vector.shape_cast %0 : vector<1x1x256xf32> to vector<1x256xf32>
    %cst = arith.constant 0.000000e+00 : f32
    %2 = vector.broadcast %cst : f32 to vector<64x16xf32>
    %c0_2 = arith.constant 0 : index
    %c0_3 = arith.constant 0 : index
    %c0_4 = arith.constant 0 : index
    %3 = vector.load %arg2[%c0_2, %c0_3, %c0_4] : memref<9x64x256xf32, #tpu.memory_space<vmem>>, vector<1x64x256xf32>
    %4 = vector.shape_cast %3 : vector<1x64x256xf32> to vector<64x256xf32>
    %5 = vector.broadcast %1 : vector<1x256xf32> to vector<64x256xf32>
    %6 = arith.mulf %4, %5 : vector<64x256xf32>
    %cst_5 = arith.constant dense<0.000000e+00> : vector<64xf32>
    %7 = vector.multi_reduction <add>, %6, %cst_5 [1] : vector<64x256xf32> to vector<64xf32>
    %8 = vector.shape_cast %7 : vector<64xf32> to vector<64x1xf32>
    %c0_6 = arith.constant 0 : index
    %c0_7 = arith.constant 0 : index
    %c0_8 = arith.constant 0 : index
    %9 = vector.load %arg3[%c0_6, %c0_7, %c0_8] : memref<9x1x16xf32, #tpu.memory_space<vmem>>, vector<1x1x16xf32>
    %10 = vector.shape_cast %9 : vector<1x1x16xf32> to vector<1x16xf32>
    %11 = vector.broadcast %8 : vector<64x1xf32> to vector<64x16xf32>
    %12 = vector.broadcast %10 : vector<1x16xf32> to vector<64x16xf32>
    %13 = arith.mulf %11, %12 : vector<64x16xf32>
    %14 = arith.addf %2, %13 : vector<64x16xf32>
    %c1 = arith.constant 1 : index
    %c0_9 = arith.constant 0 : index
    %c0_10 = arith.constant 0 : index
    %15 = vector.load %arg2[%c1, %c0_9, %c0_10] : memref<9x64x256xf32, #tpu.memory_space<vmem>>, vector<1x64x256xf32>
    %16 = vector.shape_cast %15 : vector<1x64x256xf32> to vector<64x256xf32>
    %17 = vector.broadcast %1 : vector<1x256xf32> to vector<64x256xf32>
    %18 = arith.mulf %16, %17 : vector<64x256xf32>
    %cst_11 = arith.constant dense<0.000000e+00> : vector<64xf32>
    %19 = vector.multi_reduction <add>, %18, %cst_11 [1] : vector<64x256xf32> to vector<64xf32>
    %20 = vector.shape_cast %19 : vector<64xf32> to vector<64x1xf32>
    %c1_12 = arith.constant 1 : index
    %c0_13 = arith.constant 0 : index
    %c0_14 = arith.constant 0 : index
    %21 = vector.load %arg3[%c1_12, %c0_13, %c0_14] : memref<9x1x16xf32, #tpu.memory_space<vmem>>, vector<1x1x16xf32>
    %22 = vector.shape_cast %21 : vector<1x1x16xf32> to vector<1x16xf32>
    %23 = vector.broadcast %20 : vector<64x1xf32> to vector<64x16xf32>
    %24 = vector.broadcast %22 : vector<1x16xf32> to vector<64x16xf32>
    %25 = arith.mulf %23, %24 : vector<64x16xf32>
    %26 = arith.addf %14, %25 : vector<64x16xf32>
    %c2 = arith.constant 2 : index
    %c0_15 = arith.constant 0 : index
    %c0_16 = arith.constant 0 : index
    %27 = vector.load %arg2[%c2, %c0_15, %c0_16] : memref<9x64x256xf32, #tpu.memory_space<vmem>>, vector<1x64x256xf32>
    %28 = vector.shape_cast %27 : vector<1x64x256xf32> to vector<64x256xf32>
    %29 = vector.broadcast %1 : vector<1x256xf32> to vector<64x256xf32>
    %30 = arith.mulf %28, %29 : vector<64x256xf32>
    %cst_17 = arith.constant dense<0.000000e+00> : vector<64xf32>
    %31 = vector.multi_reduction <add>, %30, %cst_17 [1] : vector<64x256xf32> to vector<64xf32>
    %32 = vector.shape_cast %31 : vector<64xf32> to vector<64x1xf32>
    %c2_18 = arith.constant 2 : index
    %c0_19 = arith.constant 0 : index
    %c0_20 = arith.constant 0 : index
    %33 = vector.load %arg3[%c2_18, %c0_19, %c0_20] : memref<9x1x16xf32, #tpu.memory_space<vmem>>, vector<1x1x16xf32>
    %34 = vector.shape_cast %33 : vector<1x1x16xf32> to vector<1x16xf32>
    %35 = vector.broadcast %32 : vector<64x1xf32> to vector<64x16xf32>
    %36 = vector.broadcast %34 : vector<1x16xf32> to vector<64x16xf32>
    %37 = arith.mulf %35, %36 : vector<64x16xf32>
    %38 = arith.addf %26, %37 : vector<64x16xf32>
    %c3 = arith.constant 3 : index
    %c0_21 = arith.constant 0 : index
    %c0_22 = arith.constant 0 : index
    %39 = vector.load %arg2[%c3, %c0_21, %c0_22] : memref<9x64x256xf32, #tpu.memory_space<vmem>>, vector<1x64x256xf32>
    %40 = vector.shape_cast %39 : vector<1x64x256xf32> to vector<64x256xf32>
    %41 = vector.broadcast %1 : vector<1x256xf32> to vector<64x256xf32>
    %42 = arith.mulf %40, %41 : vector<64x256xf32>
    %cst_23 = arith.constant dense<0.000000e+00> : vector<64xf32>
    %43 = vector.multi_reduction <add>, %42, %cst_23 [1] : vector<64x256xf32> to vector<64xf32>
    %44 = vector.shape_cast %43 : vector<64xf32> to vector<64x1xf32>
    %c3_24 = arith.constant 3 : index
    %c0_25 = arith.constant 0 : index
    %c0_26 = arith.constant 0 : index
    %45 = vector.load %arg3[%c3_24, %c0_25, %c0_26] : memref<9x1x16xf32, #tpu.memory_space<vmem>>, vector<1x1x16xf32>
    %46 = vector.shape_cast %45 : vector<1x1x16xf32> to vector<1x16xf32>
    %47 = vector.broadcast %44 : vector<64x1xf32> to vector<64x16xf32>
    %48 = vector.broadcast %46 : vector<1x16xf32> to vector<64x16xf32>
    %49 = arith.mulf %47, %48 : vector<64x16xf32>
    %50 = arith.addf %38, %49 : vector<64x16xf32>
    %c4 = arith.constant 4 : index
    %c0_27 = arith.constant 0 : index
    %c0_28 = arith.constant 0 : index
    %51 = vector.load %arg2[%c4, %c0_27, %c0_28] : memref<9x64x256xf32, #tpu.memory_space<vmem>>, vector<1x64x256xf32>
    %52 = vector.shape_cast %51 : vector<1x64x256xf32> to vector<64x256xf32>
    %53 = vector.broadcast %1 : vector<1x256xf32> to vector<64x256xf32>
    %54 = arith.mulf %52, %53 : vector<64x256xf32>
    %cst_29 = arith.constant dense<0.000000e+00> : vector<64xf32>
    %55 = vector.multi_reduction <add>, %54, %cst_29 [1] : vector<64x256xf32> to vector<64xf32>
    %56 = vector.shape_cast %55 : vector<64xf32> to vector<64x1xf32>
    %c4_30 = arith.constant 4 : index
    %c0_31 = arith.constant 0 : index
    %c0_32 = arith.constant 0 : index
    %57 = vector.load %arg3[%c4_30, %c0_31, %c0_32] : memref<9x1x16xf32, #tpu.memory_space<vmem>>, vector<1x1x16xf32>
    %58 = vector.shape_cast %57 : vector<1x1x16xf32> to vector<1x16xf32>
    %59 = vector.broadcast %56 : vector<64x1xf32> to vector<64x16xf32>
    %60 = vector.broadcast %58 : vector<1x16xf32> to vector<64x16xf32>
    %61 = arith.mulf %59, %60 : vector<64x16xf32>
    %62 = arith.addf %50, %61 : vector<64x16xf32>
    %c5 = arith.constant 5 : index
    %c0_33 = arith.constant 0 : index
    %c0_34 = arith.constant 0 : index
    %63 = vector.load %arg2[%c5, %c0_33, %c0_34] : memref<9x64x256xf32, #tpu.memory_space<vmem>>, vector<1x64x256xf32>
    %64 = vector.shape_cast %63 : vector<1x64x256xf32> to vector<64x256xf32>
    %65 = vector.broadcast %1 : vector<1x256xf32> to vector<64x256xf32>
    %66 = arith.mulf %64, %65 : vector<64x256xf32>
    %cst_35 = arith.constant dense<0.000000e+00> : vector<64xf32>
    %67 = vector.multi_reduction <add>, %66, %cst_35 [1] : vector<64x256xf32> to vector<64xf32>
    %68 = vector.shape_cast %67 : vector<64xf32> to vector<64x1xf32>
    %c5_36 = arith.constant 5 : index
    %c0_37 = arith.constant 0 : index
    %c0_38 = arith.constant 0 : index
    %69 = vector.load %arg3[%c5_36, %c0_37, %c0_38] : memref<9x1x16xf32, #tpu.memory_space<vmem>>, vector<1x1x16xf32>
    %70 = vector.shape_cast %69 : vector<1x1x16xf32> to vector<1x16xf32>
    %71 = vector.broadcast %68 : vector<64x1xf32> to vector<64x16xf32>
    %72 = vector.broadcast %70 : vector<1x16xf32> to vector<64x16xf32>
    %73 = arith.mulf %71, %72 : vector<64x16xf32>
    %74 = arith.addf %62, %73 : vector<64x16xf32>
    %c6 = arith.constant 6 : index
    %c0_39 = arith.constant 0 : index
    %c0_40 = arith.constant 0 : index
    %75 = vector.load %arg2[%c6, %c0_39, %c0_40] : memref<9x64x256xf32, #tpu.memory_space<vmem>>, vector<1x64x256xf32>
    %76 = vector.shape_cast %75 : vector<1x64x256xf32> to vector<64x256xf32>
    %77 = vector.broadcast %1 : vector<1x256xf32> to vector<64x256xf32>
    %78 = arith.mulf %76, %77 : vector<64x256xf32>
    %cst_41 = arith.constant dense<0.000000e+00> : vector<64xf32>
    %79 = vector.multi_reduction <add>, %78, %cst_41 [1] : vector<64x256xf32> to vector<64xf32>
    %80 = vector.shape_cast %79 : vector<64xf32> to vector<64x1xf32>
    %c6_42 = arith.constant 6 : index
    %c0_43 = arith.constant 0 : index
    %c0_44 = arith.constant 0 : index
    %81 = vector.load %arg3[%c6_42, %c0_43, %c0_44] : memref<9x1x16xf32, #tpu.memory_space<vmem>>, vector<1x1x16xf32>
    %82 = vector.shape_cast %81 : vector<1x1x16xf32> to vector<1x16xf32>
    %83 = vector.broadcast %80 : vector<64x1xf32> to vector<64x16xf32>
    %84 = vector.broadcast %82 : vector<1x16xf32> to vector<64x16xf32>
    %85 = arith.mulf %83, %84 : vector<64x16xf32>
    %86 = arith.addf %74, %85 : vector<64x16xf32>
    %c7 = arith.constant 7 : index
    %c0_45 = arith.constant 0 : index
    %c0_46 = arith.constant 0 : index
    %87 = vector.load %arg2[%c7, %c0_45, %c0_46] : memref<9x64x256xf32, #tpu.memory_space<vmem>>, vector<1x64x256xf32>
    %88 = vector.shape_cast %87 : vector<1x64x256xf32> to vector<64x256xf32>
    %89 = vector.broadcast %1 : vector<1x256xf32> to vector<64x256xf32>
    %90 = arith.mulf %88, %89 : vector<64x256xf32>
    %cst_47 = arith.constant dense<0.000000e+00> : vector<64xf32>
    %91 = vector.multi_reduction <add>, %90, %cst_47 [1] : vector<64x256xf32> to vector<64xf32>
    %92 = vector.shape_cast %91 : vector<64xf32> to vector<64x1xf32>
    %c7_48 = arith.constant 7 : index
    %c0_49 = arith.constant 0 : index
    %c0_50 = arith.constant 0 : index
    %93 = vector.load %arg3[%c7_48, %c0_49, %c0_50] : memref<9x1x16xf32, #tpu.memory_space<vmem>>, vector<1x1x16xf32>
    %94 = vector.shape_cast %93 : vector<1x1x16xf32> to vector<1x16xf32>
    %95 = vector.broadcast %92 : vector<64x1xf32> to vector<64x16xf32>
    %96 = vector.broadcast %94 : vector<1x16xf32> to vector<64x16xf32>
    %97 = arith.mulf %95, %96 : vector<64x16xf32>
    %98 = arith.addf %86, %97 : vector<64x16xf32>
    %c8 = arith.constant 8 : index
    %c0_51 = arith.constant 0 : index
    %c0_52 = arith.constant 0 : index
    %99 = vector.load %arg2[%c8, %c0_51, %c0_52] : memref<9x64x256xf32, #tpu.memory_space<vmem>>, vector<1x64x256xf32>
    %100 = vector.shape_cast %99 : vector<1x64x256xf32> to vector<64x256xf32>
    %101 = vector.broadcast %1 : vector<1x256xf32> to vector<64x256xf32>
    %102 = arith.mulf %100, %101 : vector<64x256xf32>
    %cst_53 = arith.constant dense<0.000000e+00> : vector<64xf32>
    %103 = vector.multi_reduction <add>, %102, %cst_53 [1] : vector<64x256xf32> to vector<64xf32>
    %104 = vector.shape_cast %103 : vector<64xf32> to vector<64x1xf32>
    %c8_54 = arith.constant 8 : index
    %c0_55 = arith.constant 0 : index
    %c0_56 = arith.constant 0 : index
    %105 = vector.load %arg3[%c8_54, %c0_55, %c0_56] : memref<9x1x16xf32, #tpu.memory_space<vmem>>, vector<1x1x16xf32>
    %106 = vector.shape_cast %105 : vector<1x1x16xf32> to vector<1x16xf32>
    %107 = vector.broadcast %104 : vector<64x1xf32> to vector<64x16xf32>
    %108 = vector.broadcast %106 : vector<1x16xf32> to vector<64x16xf32>
    %109 = arith.mulf %107, %108 : vector<64x16xf32>
    %110 = arith.addf %98, %109 : vector<64x16xf32>
    %c0_57 = arith.constant 0 : index
    %c0_58 = arith.constant 0 : index
    %111 = vector.load %arg4[%c0_57, %c0_58] : memref<1x16xf32, #tpu.memory_space<vmem>>, vector<1x16xf32>
    %112 = vector.broadcast %111 : vector<1x16xf32> to vector<64x16xf32>
    %113 = arith.addf %110, %112 : vector<64x16xf32>
    %cst_59 = arith.constant 2.000000e-01 : f32
    %114 = vector.broadcast %cst_59 : f32 to vector<64x16xf32>
    %115 = arith.mulf %114, %113 : vector<64x16xf32>
    %116 = arith.maximumf %113, %115 : vector<64x16xf32>
    %cst_60 = arith.constant 0.000000e+00 : f32
    %117 = vector.broadcast %cst_60 : f32 to vector<16x32xf32>
    %c0_61 = arith.constant 0 : index
    %c0_62 = arith.constant 0 : index
    %c0_63 = arith.constant 0 : index
    %118 = vector.load %arg5[%c0_61, %c0_62, %c0_63] : memref<9x16x64xf32, #tpu.memory_space<vmem>>, vector<1x16x64xf32>
    %119 = vector.shape_cast %118 : vector<1x16x64xf32> to vector<16x64xf32>
    %cst_64 = arith.constant dense<0.000000e+00> : vector<16x16xf32>
    %120 = tpu.matmul %119, %116, %cst_64 {dimension_numbers = #tpu.dot_dimension_numbers<[1], [0], [0], [1], [0, 0, 1, 1], [], []>} : vector<16x64xf32>, vector<64x16xf32>, vector<16x16xf32> -> vector<16x16xf32>
    %c0_65 = arith.constant 0 : index
    %c0_66 = arith.constant 0 : index
    %c0_67 = arith.constant 0 : index
    %121 = vector.load %arg6[%c0_65, %c0_66, %c0_67] : memref<9x16x32xf32, #tpu.memory_space<vmem>>, vector<1x16x32xf32>
    %122 = vector.shape_cast %121 : vector<1x16x32xf32> to vector<16x32xf32>
    %cst_68 = arith.constant dense<0.000000e+00> : vector<16x32xf32>
    %123 = tpu.matmul %120, %122, %cst_68 {dimension_numbers = #tpu.dot_dimension_numbers<[1], [0], [0], [1], [0, 0, 1, 1], [], []>} : vector<16x16xf32>, vector<16x32xf32>, vector<16x32xf32> -> vector<16x32xf32>
    %124 = arith.addf %117, %123 : vector<16x32xf32>
    %c1_69 = arith.constant 1 : index
    %c0_70 = arith.constant 0 : index
    %c0_71 = arith.constant 0 : index
    %125 = vector.load %arg5[%c1_69, %c0_70, %c0_71] : memref<9x16x64xf32, #tpu.memory_space<vmem>>, vector<1x16x64xf32>
    %126 = vector.shape_cast %125 : vector<1x16x64xf32> to vector<16x64xf32>
    %cst_72 = arith.constant dense<0.000000e+00> : vector<16x16xf32>
    %127 = tpu.matmul %126, %116, %cst_72 {dimension_numbers = #tpu.dot_dimension_numbers<[1], [0], [0], [1], [0, 0, 1, 1], [], []>} : vector<16x64xf32>, vector<64x16xf32>, vector<16x16xf32> -> vector<16x16xf32>
    %c1_73 = arith.constant 1 : index
    %c0_74 = arith.constant 0 : index
    %c0_75 = arith.constant 0 : index
    %128 = vector.load %arg6[%c1_73, %c0_74, %c0_75] : memref<9x16x32xf32, #tpu.memory_space<vmem>>, vector<1x16x32xf32>
    %129 = vector.shape_cast %128 : vector<1x16x32xf32> to vector<16x32xf32>
    %cst_76 = arith.constant dense<0.000000e+00> : vector<16x32xf32>
    %130 = tpu.matmul %127, %129, %cst_76 {dimension_numbers = #tpu.dot_dimension_numbers<[1], [0], [0], [1], [0, 0, 1, 1], [], []>} : vector<16x16xf32>, vector<16x32xf32>, vector<16x32xf32> -> vector<16x32xf32>
    %131 = arith.addf %124, %130 : vector<16x32xf32>
    %c2_77 = arith.constant 2 : index
    %c0_78 = arith.constant 0 : index
    %c0_79 = arith.constant 0 : index
    %132 = vector.load %arg5[%c2_77, %c0_78, %c0_79] : memref<9x16x64xf32, #tpu.memory_space<vmem>>, vector<1x16x64xf32>
    %133 = vector.shape_cast %132 : vector<1x16x64xf32> to vector<16x64xf32>
    %cst_80 = arith.constant dense<0.000000e+00> : vector<16x16xf32>
    %134 = tpu.matmul %133, %116, %cst_80 {dimension_numbers = #tpu.dot_dimension_numbers<[1], [0], [0], [1], [0, 0, 1, 1], [], []>} : vector<16x64xf32>, vector<64x16xf32>, vector<16x16xf32> -> vector<16x16xf32>
    %c2_81 = arith.constant 2 : index
    %c0_82 = arith.constant 0 : index
    %c0_83 = arith.constant 0 : index
    %135 = vector.load %arg6[%c2_81, %c0_82, %c0_83] : memref<9x16x32xf32, #tpu.memory_space<vmem>>, vector<1x16x32xf32>
    %136 = vector.shape_cast %135 : vector<1x16x32xf32> to vector<16x32xf32>
    %cst_84 = arith.constant dense<0.000000e+00> : vector<16x32xf32>
    %137 = tpu.matmul %134, %136, %cst_84 {dimension_numbers = #tpu.dot_dimension_numbers<[1], [0], [0], [1], [0, 0, 1, 1], [], []>} : vector<16x16xf32>, vector<16x32xf32>, vector<16x32xf32> -> vector<16x32xf32>
    %138 = arith.addf %131, %137 : vector<16x32xf32>
    %c3_85 = arith.constant 3 : index
    %c0_86 = arith.constant 0 : index
    %c0_87 = arith.constant 0 : index
    %139 = vector.load %arg5[%c3_85, %c0_86, %c0_87] : memref<9x16x64xf32, #tpu.memory_space<vmem>>, vector<1x16x64xf32>
    %140 = vector.shape_cast %139 : vector<1x16x64xf32> to vector<16x64xf32>
    %cst_88 = arith.constant dense<0.000000e+00> : vector<16x16xf32>
    %141 = tpu.matmul %140, %116, %cst_88 {dimension_numbers = #tpu.dot_dimension_numbers<[1], [0], [0], [1], [0, 0, 1, 1], [], []>} : vector<16x64xf32>, vector<64x16xf32>, vector<16x16xf32> -> vector<16x16xf32>
    %c3_89 = arith.constant 3 : index
    %c0_90 = arith.constant 0 : index
    %c0_91 = arith.constant 0 : index
    %142 = vector.load %arg6[%c3_89, %c0_90, %c0_91] : memref<9x16x32xf32, #tpu.memory_space<vmem>>, vector<1x16x32xf32>
    %143 = vector.shape_cast %142 : vector<1x16x32xf32> to vector<16x32xf32>
    %cst_92 = arith.constant dense<0.000000e+00> : vector<16x32xf32>
    %144 = tpu.matmul %141, %143, %cst_92 {dimension_numbers = #tpu.dot_dimension_numbers<[1], [0], [0], [1], [0, 0, 1, 1], [], []>} : vector<16x16xf32>, vector<16x32xf32>, vector<16x32xf32> -> vector<16x32xf32>
    %145 = arith.addf %138, %144 : vector<16x32xf32>
    %c4_93 = arith.constant 4 : index
    %c0_94 = arith.constant 0 : index
    %c0_95 = arith.constant 0 : index
    %146 = vector.load %arg5[%c4_93, %c0_94, %c0_95] : memref<9x16x64xf32, #tpu.memory_space<vmem>>, vector<1x16x64xf32>
    %147 = vector.shape_cast %146 : vector<1x16x64xf32> to vector<16x64xf32>
    %cst_96 = arith.constant dense<0.000000e+00> : vector<16x16xf32>
    %148 = tpu.matmul %147, %116, %cst_96 {dimension_numbers = #tpu.dot_dimension_numbers<[1], [0], [0], [1], [0, 0, 1, 1], [], []>} : vector<16x64xf32>, vector<64x16xf32>, vector<16x16xf32> -> vector<16x16xf32>
    %c4_97 = arith.constant 4 : index
    %c0_98 = arith.constant 0 : index
    %c0_99 = arith.constant 0 : index
    %149 = vector.load %arg6[%c4_97, %c0_98, %c0_99] : memref<9x16x32xf32, #tpu.memory_space<vmem>>, vector<1x16x32xf32>
    %150 = vector.shape_cast %149 : vector<1x16x32xf32> to vector<16x32xf32>
    %cst_100 = arith.constant dense<0.000000e+00> : vector<16x32xf32>
    %151 = tpu.matmul %148, %150, %cst_100 {dimension_numbers = #tpu.dot_dimension_numbers<[1], [0], [0], [1], [0, 0, 1, 1], [], []>} : vector<16x16xf32>, vector<16x32xf32>, vector<16x32xf32> -> vector<16x32xf32>
    %152 = arith.addf %145, %151 : vector<16x32xf32>
    %c5_101 = arith.constant 5 : index
    %c0_102 = arith.constant 0 : index
    %c0_103 = arith.constant 0 : index
    %153 = vector.load %arg5[%c5_101, %c0_102, %c0_103] : memref<9x16x64xf32, #tpu.memory_space<vmem>>, vector<1x16x64xf32>
    %154 = vector.shape_cast %153 : vector<1x16x64xf32> to vector<16x64xf32>
    %cst_104 = arith.constant dense<0.000000e+00> : vector<16x16xf32>
    %155 = tpu.matmul %154, %116, %cst_104 {dimension_numbers = #tpu.dot_dimension_numbers<[1], [0], [0], [1], [0, 0, 1, 1], [], []>} : vector<16x64xf32>, vector<64x16xf32>, vector<16x16xf32> -> vector<16x16xf32>
    %c5_105 = arith.constant 5 : index
    %c0_106 = arith.constant 0 : index
    %c0_107 = arith.constant 0 : index
    %156 = vector.load %arg6[%c5_105, %c0_106, %c0_107] : memref<9x16x32xf32, #tpu.memory_space<vmem>>, vector<1x16x32xf32>
    %157 = vector.shape_cast %156 : vector<1x16x32xf32> to vector<16x32xf32>
    %cst_108 = arith.constant dense<0.000000e+00> : vector<16x32xf32>
    %158 = tpu.matmul %155, %157, %cst_108 {dimension_numbers = #tpu.dot_dimension_numbers<[1], [0], [0], [1], [0, 0, 1, 1], [], []>} : vector<16x16xf32>, vector<16x32xf32>, vector<16x32xf32> -> vector<16x32xf32>
    %159 = arith.addf %152, %158 : vector<16x32xf32>
    %c6_109 = arith.constant 6 : index
    %c0_110 = arith.constant 0 : index
    %c0_111 = arith.constant 0 : index
    %160 = vector.load %arg5[%c6_109, %c0_110, %c0_111] : memref<9x16x64xf32, #tpu.memory_space<vmem>>, vector<1x16x64xf32>
    %161 = vector.shape_cast %160 : vector<1x16x64xf32> to vector<16x64xf32>
    %cst_112 = arith.constant dense<0.000000e+00> : vector<16x16xf32>
    %162 = tpu.matmul %161, %116, %cst_112 {dimension_numbers = #tpu.dot_dimension_numbers<[1], [0], [0], [1], [0, 0, 1, 1], [], []>} : vector<16x64xf32>, vector<64x16xf32>, vector<16x16xf32> -> vector<16x16xf32>
    %c6_113 = arith.constant 6 : index
    %c0_114 = arith.constant 0 : index
    %c0_115 = arith.constant 0 : index
    %163 = vector.load %arg6[%c6_113, %c0_114, %c0_115] : memref<9x16x32xf32, #tpu.memory_space<vmem>>, vector<1x16x32xf32>
    %164 = vector.shape_cast %163 : vector<1x16x32xf32> to vector<16x32xf32>
    %cst_116 = arith.constant dense<0.000000e+00> : vector<16x32xf32>
    %165 = tpu.matmul %162, %164, %cst_116 {dimension_numbers = #tpu.dot_dimension_numbers<[1], [0], [0], [1], [0, 0, 1, 1], [], []>} : vector<16x16xf32>, vector<16x32xf32>, vector<16x32xf32> -> vector<16x32xf32>
    %166 = arith.addf %159, %165 : vector<16x32xf32>
    %c7_117 = arith.constant 7 : index
    %c0_118 = arith.constant 0 : index
    %c0_119 = arith.constant 0 : index
    %167 = vector.load %arg5[%c7_117, %c0_118, %c0_119] : memref<9x16x64xf32, #tpu.memory_space<vmem>>, vector<1x16x64xf32>
    %168 = vector.shape_cast %167 : vector<1x16x64xf32> to vector<16x64xf32>
    %cst_120 = arith.constant dense<0.000000e+00> : vector<16x16xf32>
    %169 = tpu.matmul %168, %116, %cst_120 {dimension_numbers = #tpu.dot_dimension_numbers<[1], [0], [0], [1], [0, 0, 1, 1], [], []>} : vector<16x64xf32>, vector<64x16xf32>, vector<16x16xf32> -> vector<16x16xf32>
    %c7_121 = arith.constant 7 : index
    %c0_122 = arith.constant 0 : index
    %c0_123 = arith.constant 0 : index
    %170 = vector.load %arg6[%c7_121, %c0_122, %c0_123] : memref<9x16x32xf32, #tpu.memory_space<vmem>>, vector<1x16x32xf32>
    %171 = vector.shape_cast %170 : vector<1x16x32xf32> to vector<16x32xf32>
    %cst_124 = arith.constant dense<0.000000e+00> : vector<16x32xf32>
    %172 = tpu.matmul %169, %171, %cst_124 {dimension_numbers = #tpu.dot_dimension_numbers<[1], [0], [0], [1], [0, 0, 1, 1], [], []>} : vector<16x16xf32>, vector<16x32xf32>, vector<16x32xf32> -> vector<16x32xf32>
    %173 = arith.addf %166, %172 : vector<16x32xf32>
    %c8_125 = arith.constant 8 : index
    %c0_126 = arith.constant 0 : index
    %c0_127 = arith.constant 0 : index
    %174 = vector.load %arg5[%c8_125, %c0_126, %c0_127] : memref<9x16x64xf32, #tpu.memory_space<vmem>>, vector<1x16x64xf32>
    %175 = vector.shape_cast %174 : vector<1x16x64xf32> to vector<16x64xf32>
    %cst_128 = arith.constant dense<0.000000e+00> : vector<16x16xf32>
    %176 = tpu.matmul %175, %116, %cst_128 {dimension_numbers = #tpu.dot_dimension_numbers<[1], [0], [0], [1], [0, 0, 1, 1], [], []>} : vector<16x64xf32>, vector<64x16xf32>, vector<16x16xf32> -> vector<16x16xf32>
    %c8_129 = arith.constant 8 : index
    %c0_130 = arith.constant 0 : index
    %c0_131 = arith.constant 0 : index
    %177 = vector.load %arg6[%c8_129, %c0_130, %c0_131] : memref<9x16x32xf32, #tpu.memory_space<vmem>>, vector<1x16x32xf32>
    %178 = vector.shape_cast %177 : vector<1x16x32xf32> to vector<16x32xf32>
    %cst_132 = arith.constant dense<0.000000e+00> : vector<16x32xf32>
    %179 = tpu.matmul %176, %178, %cst_132 {dimension_numbers = #tpu.dot_dimension_numbers<[1], [0], [0], [1], [0, 0, 1, 1], [], []>} : vector<16x16xf32>, vector<16x32xf32>, vector<16x32xf32> -> vector<16x32xf32>
    %180 = arith.addf %173, %179 : vector<16x32xf32>
    %c0_133 = arith.constant 0 : index
    %c0_134 = arith.constant 0 : index
    %181 = vector.load %arg7[%c0_133, %c0_134] : memref<1x32xf32, #tpu.memory_space<vmem>>, vector<1x32xf32>
    %182 = vector.broadcast %181 : vector<1x32xf32> to vector<16x32xf32>
    %183 = arith.addf %180, %182 : vector<16x32xf32>
    %cst_135 = arith.constant 2.000000e-01 : f32
    %184 = vector.broadcast %cst_135 : f32 to vector<16x32xf32>
    %185 = arith.mulf %184, %183 : vector<16x32xf32>
    %186 = arith.maximumf %183, %185 : vector<16x32xf32>
    %c0_136 = arith.constant 0 : index
    %c0_137 = arith.constant 0 : index
    %187 = vector.load %arg8[%c0_136, %c0_137] : memref<1x32xf32, #tpu.memory_space<vmem>>, vector<1x32xf32>
    %188 = vector.broadcast %187 : vector<1x32xf32> to vector<16x32xf32>
    %189 = arith.mulf %186, %188 : vector<16x32xf32>
    %c0_138 = arith.constant 0 : index
    %c0_139 = arith.constant 0 : index
    %190 = vector.load %arg9[%c0_138, %c0_139] : memref<1x32xf32, #tpu.memory_space<vmem>>, vector<1x32xf32>
    %191 = vector.broadcast %190 : vector<1x32xf32> to vector<16x32xf32>
    %192 = arith.addf %189, %191 : vector<16x32xf32>
    %cst_140 = arith.constant 0.000000e+00 : f32
    %193 = vector.broadcast %cst_140 : f32 to vector<4x64xf32>
    %c0_141 = arith.constant 0 : index
    %c0_142 = arith.constant 0 : index
    %c0_143 = arith.constant 0 : index
    %194 = vector.load %arg10[%c0_141, %c0_142, %c0_143] : memref<9x4x16xf32, #tpu.memory_space<vmem>>, vector<1x4x16xf32>
    %195 = vector.shape_cast %194 : vector<1x4x16xf32> to vector<4x16xf32>
    %cst_144 = arith.constant dense<0.000000e+00> : vector<4x32xf32>
    %196 = tpu.matmul %195, %192, %cst_144 {dimension_numbers = #tpu.dot_dimension_numbers<[1], [0], [0], [1], [0, 0, 1, 1], [], []>} : vector<4x16xf32>, vector<16x32xf32>, vector<4x32xf32> -> vector<4x32xf32>
    %c0_145 = arith.constant 0 : index
    %c0_146 = arith.constant 0 : index
    %c0_147 = arith.constant 0 : index
    %197 = vector.load %arg11[%c0_145, %c0_146, %c0_147] : memref<9x32x64xf32, #tpu.memory_space<vmem>>, vector<1x32x64xf32>
    %198 = vector.shape_cast %197 : vector<1x32x64xf32> to vector<32x64xf32>
    %cst_148 = arith.constant dense<0.000000e+00> : vector<4x64xf32>
    %199 = tpu.matmul %196, %198, %cst_148 {dimension_numbers = #tpu.dot_dimension_numbers<[1], [0], [0], [1], [0, 0, 1, 1], [], []>} : vector<4x32xf32>, vector<32x64xf32>, vector<4x64xf32> -> vector<4x64xf32>
    %200 = arith.addf %193, %199 : vector<4x64xf32>
    %c1_149 = arith.constant 1 : index
    %c0_150 = arith.constant 0 : index
    %c0_151 = arith.constant 0 : index
    %201 = vector.load %arg10[%c1_149, %c0_150, %c0_151] : memref<9x4x16xf32, #tpu.memory_space<vmem>>, vector<1x4x16xf32>
    %202 = vector.shape_cast %201 : vector<1x4x16xf32> to vector<4x16xf32>
    %cst_152 = arith.constant dense<0.000000e+00> : vector<4x32xf32>
    %203 = tpu.matmul %202, %192, %cst_152 {dimension_numbers = #tpu.dot_dimension_numbers<[1], [0], [0], [1], [0, 0, 1, 1], [], []>} : vector<4x16xf32>, vector<16x32xf32>, vector<4x32xf32> -> vector<4x32xf32>
    %c1_153 = arith.constant 1 : index
    %c0_154 = arith.constant 0 : index
    %c0_155 = arith.constant 0 : index
    %204 = vector.load %arg11[%c1_153, %c0_154, %c0_155] : memref<9x32x64xf32, #tpu.memory_space<vmem>>, vector<1x32x64xf32>
    %205 = vector.shape_cast %204 : vector<1x32x64xf32> to vector<32x64xf32>
    %cst_156 = arith.constant dense<0.000000e+00> : vector<4x64xf32>
    %206 = tpu.matmul %203, %205, %cst_156 {dimension_numbers = #tpu.dot_dimension_numbers<[1], [0], [0], [1], [0, 0, 1, 1], [], []>} : vector<4x32xf32>, vector<32x64xf32>, vector<4x64xf32> -> vector<4x64xf32>
    %207 = arith.addf %200, %206 : vector<4x64xf32>
    %c2_157 = arith.constant 2 : index
    %c0_158 = arith.constant 0 : index
    %c0_159 = arith.constant 0 : index
    %208 = vector.load %arg10[%c2_157, %c0_158, %c0_159] : memref<9x4x16xf32, #tpu.memory_space<vmem>>, vector<1x4x16xf32>
    %209 = vector.shape_cast %208 : vector<1x4x16xf32> to vector<4x16xf32>
    %cst_160 = arith.constant dense<0.000000e+00> : vector<4x32xf32>
    %210 = tpu.matmul %209, %192, %cst_160 {dimension_numbers = #tpu.dot_dimension_numbers<[1], [0], [0], [1], [0, 0, 1, 1], [], []>} : vector<4x16xf32>, vector<16x32xf32>, vector<4x32xf32> -> vector<4x32xf32>
    %c2_161 = arith.constant 2 : index
    %c0_162 = arith.constant 0 : index
    %c0_163 = arith.constant 0 : index
    %211 = vector.load %arg11[%c2_161, %c0_162, %c0_163] : memref<9x32x64xf32, #tpu.memory_space<vmem>>, vector<1x32x64xf32>
    %212 = vector.shape_cast %211 : vector<1x32x64xf32> to vector<32x64xf32>
    %cst_164 = arith.constant dense<0.000000e+00> : vector<4x64xf32>
    %213 = tpu.matmul %210, %212, %cst_164 {dimension_numbers = #tpu.dot_dimension_numbers<[1], [0], [0], [1], [0, 0, 1, 1], [], []>} : vector<4x32xf32>, vector<32x64xf32>, vector<4x64xf32> -> vector<4x64xf32>
    %214 = arith.addf %207, %213 : vector<4x64xf32>
    %c3_165 = arith.constant 3 : index
    %c0_166 = arith.constant 0 : index
    %c0_167 = arith.constant 0 : index
    %215 = vector.load %arg10[%c3_165, %c0_166, %c0_167] : memref<9x4x16xf32, #tpu.memory_space<vmem>>, vector<1x4x16xf32>
    %216 = vector.shape_cast %215 : vector<1x4x16xf32> to vector<4x16xf32>
    %cst_168 = arith.constant dense<0.000000e+00> : vector<4x32xf32>
    %217 = tpu.matmul %216, %192, %cst_168 {dimension_numbers = #tpu.dot_dimension_numbers<[1], [0], [0], [1], [0, 0, 1, 1], [], []>} : vector<4x16xf32>, vector<16x32xf32>, vector<4x32xf32> -> vector<4x32xf32>
    %c3_169 = arith.constant 3 : index
    %c0_170 = arith.constant 0 : index
    %c0_171 = arith.constant 0 : index
    %218 = vector.load %arg11[%c3_169, %c0_170, %c0_171] : memref<9x32x64xf32, #tpu.memory_space<vmem>>, vector<1x32x64xf32>
    %219 = vector.shape_cast %218 : vector<1x32x64xf32> to vector<32x64xf32>
    %cst_172 = arith.constant dense<0.000000e+00> : vector<4x64xf32>
    %220 = tpu.matmul %217, %219, %cst_172 {dimension_numbers = #tpu.dot_dimension_numbers<[1], [0], [0], [1], [0, 0, 1, 1], [], []>} : vector<4x32xf32>, vector<32x64xf32>, vector<4x64xf32> -> vector<4x64xf32>
    %221 = arith.addf %214, %220 : vector<4x64xf32>
    %c4_173 = arith.constant 4 : index
    %c0_174 = arith.constant 0 : index
    %c0_175 = arith.constant 0 : index
    %222 = vector.load %arg10[%c4_173, %c0_174, %c0_175] : memref<9x4x16xf32, #tpu.memory_space<vmem>>, vector<1x4x16xf32>
    %223 = vector.shape_cast %222 : vector<1x4x16xf32> to vector<4x16xf32>
    %cst_176 = arith.constant dense<0.000000e+00> : vector<4x32xf32>
    %224 = tpu.matmul %223, %192, %cst_176 {dimension_numbers = #tpu.dot_dimension_numbers<[1], [0], [0], [1], [0, 0, 1, 1], [], []>} : vector<4x16xf32>, vector<16x32xf32>, vector<4x32xf32> -> vector<4x32xf32>
    %c4_177 = arith.constant 4 : index
    %c0_178 = arith.constant 0 : index
    %c0_179 = arith.constant 0 : index
    %225 = vector.load %arg11[%c4_177, %c0_178, %c0_179] : memref<9x32x64xf32, #tpu.memory_space<vmem>>, vector<1x32x64xf32>
    %226 = vector.shape_cast %225 : vector<1x32x64xf32> to vector<32x64xf32>
    %cst_180 = arith.constant dense<0.000000e+00> : vector<4x64xf32>
    %227 = tpu.matmul %224, %226, %cst_180 {dimension_numbers = #tpu.dot_dimension_numbers<[1], [0], [0], [1], [0, 0, 1, 1], [], []>} : vector<4x32xf32>, vector<32x64xf32>, vector<4x64xf32> -> vector<4x64xf32>
    %228 = arith.addf %221, %227 : vector<4x64xf32>
    %c5_181 = arith.constant 5 : index
    %c0_182 = arith.constant 0 : index
    %c0_183 = arith.constant 0 : index
    %229 = vector.load %arg10[%c5_181, %c0_182, %c0_183] : memref<9x4x16xf32, #tpu.memory_space<vmem>>, vector<1x4x16xf32>
    %230 = vector.shape_cast %229 : vector<1x4x16xf32> to vector<4x16xf32>
    %cst_184 = arith.constant dense<0.000000e+00> : vector<4x32xf32>
    %231 = tpu.matmul %230, %192, %cst_184 {dimension_numbers = #tpu.dot_dimension_numbers<[1], [0], [0], [1], [0, 0, 1, 1], [], []>} : vector<4x16xf32>, vector<16x32xf32>, vector<4x32xf32> -> vector<4x32xf32>
    %c5_185 = arith.constant 5 : index
    %c0_186 = arith.constant 0 : index
    %c0_187 = arith.constant 0 : index
    %232 = vector.load %arg11[%c5_185, %c0_186, %c0_187] : memref<9x32x64xf32, #tpu.memory_space<vmem>>, vector<1x32x64xf32>
    %233 = vector.shape_cast %232 : vector<1x32x64xf32> to vector<32x64xf32>
    %cst_188 = arith.constant dense<0.000000e+00> : vector<4x64xf32>
    %234 = tpu.matmul %231, %233, %cst_188 {dimension_numbers = #tpu.dot_dimension_numbers<[1], [0], [0], [1], [0, 0, 1, 1], [], []>} : vector<4x32xf32>, vector<32x64xf32>, vector<4x64xf32> -> vector<4x64xf32>
    %235 = arith.addf %228, %234 : vector<4x64xf32>
    %c6_189 = arith.constant 6 : index
    %c0_190 = arith.constant 0 : index
    %c0_191 = arith.constant 0 : index
    %236 = vector.load %arg10[%c6_189, %c0_190, %c0_191] : memref<9x4x16xf32, #tpu.memory_space<vmem>>, vector<1x4x16xf32>
    %237 = vector.shape_cast %236 : vector<1x4x16xf32> to vector<4x16xf32>
    %cst_192 = arith.constant dense<0.000000e+00> : vector<4x32xf32>
    %238 = tpu.matmul %237, %192, %cst_192 {dimension_numbers = #tpu.dot_dimension_numbers<[1], [0], [0], [1], [0, 0, 1, 1], [], []>} : vector<4x16xf32>, vector<16x32xf32>, vector<4x32xf32> -> vector<4x32xf32>
    %c6_193 = arith.constant 6 : index
    %c0_194 = arith.constant 0 : index
    %c0_195 = arith.constant 0 : index
    %239 = vector.load %arg11[%c6_193, %c0_194, %c0_195] : memref<9x32x64xf32, #tpu.memory_space<vmem>>, vector<1x32x64xf32>
    %240 = vector.shape_cast %239 : vector<1x32x64xf32> to vector<32x64xf32>
    %cst_196 = arith.constant dense<0.000000e+00> : vector<4x64xf32>
    %241 = tpu.matmul %238, %240, %cst_196 {dimension_numbers = #tpu.dot_dimension_numbers<[1], [0], [0], [1], [0, 0, 1, 1], [], []>} : vector<4x32xf32>, vector<32x64xf32>, vector<4x64xf32> -> vector<4x64xf32>
    %242 = arith.addf %235, %241 : vector<4x64xf32>
    %c7_197 = arith.constant 7 : index
    %c0_198 = arith.constant 0 : index
    %c0_199 = arith.constant 0 : index
    %243 = vector.load %arg10[%c7_197, %c0_198, %c0_199] : memref<9x4x16xf32, #tpu.memory_space<vmem>>, vector<1x4x16xf32>
    %244 = vector.shape_cast %243 : vector<1x4x16xf32> to vector<4x16xf32>
    %cst_200 = arith.constant dense<0.000000e+00> : vector<4x32xf32>
    %245 = tpu.matmul %244, %192, %cst_200 {dimension_numbers = #tpu.dot_dimension_numbers<[1], [0], [0], [1], [0, 0, 1, 1], [], []>} : vector<4x16xf32>, vector<16x32xf32>, vector<4x32xf32> -> vector<4x32xf32>
    %c7_201 = arith.constant 7 : index
    %c0_202 = arith.constant 0 : index
    %c0_203 = arith.constant 0 : index
    %246 = vector.load %arg11[%c7_201, %c0_202, %c0_203] : memref<9x32x64xf32, #tpu.memory_space<vmem>>, vector<1x32x64xf32>
    %247 = vector.shape_cast %246 : vector<1x32x64xf32> to vector<32x64xf32>
    %cst_204 = arith.constant dense<0.000000e+00> : vector<4x64xf32>
    %248 = tpu.matmul %245, %247, %cst_204 {dimension_numbers = #tpu.dot_dimension_numbers<[1], [0], [0], [1], [0, 0, 1, 1], [], []>} : vector<4x32xf32>, vector<32x64xf32>, vector<4x64xf32> -> vector<4x64xf32>
    %249 = arith.addf %242, %248 : vector<4x64xf32>
    %c8_205 = arith.constant 8 : index
    %c0_206 = arith.constant 0 : index
    %c0_207 = arith.constant 0 : index
    %250 = vector.load %arg10[%c8_205, %c0_206, %c0_207] : memref<9x4x16xf32, #tpu.memory_space<vmem>>, vector<1x4x16xf32>
    %251 = vector.shape_cast %250 : vector<1x4x16xf32> to vector<4x16xf32>
    %cst_208 = arith.constant dense<0.000000e+00> : vector<4x32xf32>
    %252 = tpu.matmul %251, %192, %cst_208 {dimension_numbers = #tpu.dot_dimension_numbers<[1], [0], [0], [1], [0, 0, 1, 1], [], []>} : vector<4x16xf32>, vector<16x32xf32>, vector<4x32xf32> -> vector<4x32xf32>
    %c8_209 = arith.constant 8 : index
    %c0_210 = arith.constant 0 : index
    %c0_211 = arith.constant 0 : index
    %253 = vector.load %arg11[%c8_209, %c0_210, %c0_211] : memref<9x32x64xf32, #tpu.memory_space<vmem>>, vector<1x32x64xf32>
    %254 = vector.shape_cast %253 : vector<1x32x64xf32> to vector<32x64xf32>
    %cst_212 = arith.constant dense<0.000000e+00> : vector<4x64xf32>
    %255 = tpu.matmul %252, %254, %cst_212 {dimension_numbers = #tpu.dot_dimension_numbers<[1], [0], [0], [1], [0, 0, 1, 1], [], []>} : vector<4x32xf32>, vector<32x64xf32>, vector<4x64xf32> -> vector<4x64xf32>
    %256 = arith.addf %249, %255 : vector<4x64xf32>
    %c0_213 = arith.constant 0 : index
    %c0_214 = arith.constant 0 : index
    %257 = vector.load %arg12[%c0_213, %c0_214] : memref<1x64xf32, #tpu.memory_space<vmem>>, vector<1x64xf32>
    %258 = vector.broadcast %257 : vector<1x64xf32> to vector<4x64xf32>
    %259 = arith.addf %256, %258 : vector<4x64xf32>
    %cst_215 = arith.constant 2.000000e-01 : f32
    %260 = vector.broadcast %cst_215 : f32 to vector<4x64xf32>
    %261 = arith.mulf %260, %259 : vector<4x64xf32>
    %262 = arith.maximumf %259, %261 : vector<4x64xf32>
    %c0_216 = arith.constant 0 : index
    %c0_217 = arith.constant 0 : index
    %263 = vector.load %arg13[%c0_216, %c0_217] : memref<1x64xf32, #tpu.memory_space<vmem>>, vector<1x64xf32>
    %264 = vector.broadcast %263 : vector<1x64xf32> to vector<4x64xf32>
    %265 = arith.mulf %262, %264 : vector<4x64xf32>
    %c0_218 = arith.constant 0 : index
    %c0_219 = arith.constant 0 : index
    %266 = vector.load %arg14[%c0_218, %c0_219] : memref<1x64xf32, #tpu.memory_space<vmem>>, vector<1x64xf32>
    %267 = vector.broadcast %266 : vector<1x64xf32> to vector<4x64xf32>
    %268 = arith.addf %265, %267 : vector<4x64xf32>
    %cst_220 = arith.constant 0.000000e+00 : f32
    %269 = vector.broadcast %cst_220 : f32 to vector<1x128xf32>
    %c0_221 = arith.constant 0 : index
    %c0_222 = arith.constant 0 : index
    %c0_223 = arith.constant 0 : index
    %270 = vector.load %arg15[%c0_221, %c0_222, %c0_223] : memref<9x1x4xf32, #tpu.memory_space<vmem>>, vector<1x1x4xf32>
    %271 = vector.shape_cast %270 : vector<1x1x4xf32> to vector<1x4xf32>
    %cst_224 = arith.constant dense<0.000000e+00> : vector<1x64xf32>
    %272 = tpu.matmul %271, %268, %cst_224 {dimension_numbers = #tpu.dot_dimension_numbers<[1], [0], [0], [1], [0, 0, 1, 1], [], []>} : vector<1x4xf32>, vector<4x64xf32>, vector<1x64xf32> -> vector<1x64xf32>
    %c0_225 = arith.constant 0 : index
    %c0_226 = arith.constant 0 : index
    %c0_227 = arith.constant 0 : index
    %273 = vector.load %arg16[%c0_225, %c0_226, %c0_227] : memref<9x64x128xf32, #tpu.memory_space<vmem>>, vector<1x64x128xf32>
    %274 = vector.shape_cast %273 : vector<1x64x128xf32> to vector<64x128xf32>
    %cst_228 = arith.constant dense<0.000000e+00> : vector<1x128xf32>
    %275 = tpu.matmul %272, %274, %cst_228 {dimension_numbers = #tpu.dot_dimension_numbers<[1], [0], [0], [1], [0, 0, 1, 1], [], []>} : vector<1x64xf32>, vector<64x128xf32>, vector<1x128xf32> -> vector<1x128xf32>
    %276 = arith.addf %269, %275 : vector<1x128xf32>
    %c1_229 = arith.constant 1 : index
    %c0_230 = arith.constant 0 : index
    %c0_231 = arith.constant 0 : index
    %277 = vector.load %arg15[%c1_229, %c0_230, %c0_231] : memref<9x1x4xf32, #tpu.memory_space<vmem>>, vector<1x1x4xf32>
    %278 = vector.shape_cast %277 : vector<1x1x4xf32> to vector<1x4xf32>
    %cst_232 = arith.constant dense<0.000000e+00> : vector<1x64xf32>
    %279 = tpu.matmul %278, %268, %cst_232 {dimension_numbers = #tpu.dot_dimension_numbers<[1], [0], [0], [1], [0, 0, 1, 1], [], []>} : vector<1x4xf32>, vector<4x64xf32>, vector<1x64xf32> -> vector<1x64xf32>
    %c1_233 = arith.constant 1 : index
    %c0_234 = arith.constant 0 : index
    %c0_235 = arith.constant 0 : index
    %280 = vector.load %arg16[%c1_233, %c0_234, %c0_235] : memref<9x64x128xf32, #tpu.memory_space<vmem>>, vector<1x64x128xf32>
    %281 = vector.shape_cast %280 : vector<1x64x128xf32> to vector<64x128xf32>
    %cst_236 = arith.constant dense<0.000000e+00> : vector<1x128xf32>
    %282 = tpu.matmul %279, %281, %cst_236 {dimension_numbers = #tpu.dot_dimension_numbers<[1], [0], [0], [1], [0, 0, 1, 1], [], []>} : vector<1x64xf32>, vector<64x128xf32>, vector<1x128xf32> -> vector<1x128xf32>
    %283 = arith.addf %276, %282 : vector<1x128xf32>
    %c2_237 = arith.constant 2 : index
    %c0_238 = arith.constant 0 : index
    %c0_239 = arith.constant 0 : index
    %284 = vector.load %arg15[%c2_237, %c0_238, %c0_239] : memref<9x1x4xf32, #tpu.memory_space<vmem>>, vector<1x1x4xf32>
    %285 = vector.shape_cast %284 : vector<1x1x4xf32> to vector<1x4xf32>
    %cst_240 = arith.constant dense<0.000000e+00> : vector<1x64xf32>
    %286 = tpu.matmul %285, %268, %cst_240 {dimension_numbers = #tpu.dot_dimension_numbers<[1], [0], [0], [1], [0, 0, 1, 1], [], []>} : vector<1x4xf32>, vector<4x64xf32>, vector<1x64xf32> -> vector<1x64xf32>
    %c2_241 = arith.constant 2 : index
    %c0_242 = arith.constant 0 : index
    %c0_243 = arith.constant 0 : index
    %287 = vector.load %arg16[%c2_241, %c0_242, %c0_243] : memref<9x64x128xf32, #tpu.memory_space<vmem>>, vector<1x64x128xf32>
    %288 = vector.shape_cast %287 : vector<1x64x128xf32> to vector<64x128xf32>
    %cst_244 = arith.constant dense<0.000000e+00> : vector<1x128xf32>
    %289 = tpu.matmul %286, %288, %cst_244 {dimension_numbers = #tpu.dot_dimension_numbers<[1], [0], [0], [1], [0, 0, 1, 1], [], []>} : vector<1x64xf32>, vector<64x128xf32>, vector<1x128xf32> -> vector<1x128xf32>
    %290 = arith.addf %283, %289 : vector<1x128xf32>
    %c3_245 = arith.constant 3 : index
    %c0_246 = arith.constant 0 : index
    %c0_247 = arith.constant 0 : index
    %291 = vector.load %arg15[%c3_245, %c0_246, %c0_247] : memref<9x1x4xf32, #tpu.memory_space<vmem>>, vector<1x1x4xf32>
    %292 = vector.shape_cast %291 : vector<1x1x4xf32> to vector<1x4xf32>
    %cst_248 = arith.constant dense<0.000000e+00> : vector<1x64xf32>
    %293 = tpu.matmul %292, %268, %cst_248 {dimension_numbers = #tpu.dot_dimension_numbers<[1], [0], [0], [1], [0, 0, 1, 1], [], []>} : vector<1x4xf32>, vector<4x64xf32>, vector<1x64xf32> -> vector<1x64xf32>
    %c3_249 = arith.constant 3 : index
    %c0_250 = arith.constant 0 : index
    %c0_251 = arith.constant 0 : index
    %294 = vector.load %arg16[%c3_249, %c0_250, %c0_251] : memref<9x64x128xf32, #tpu.memory_space<vmem>>, vector<1x64x128xf32>
    %295 = vector.shape_cast %294 : vector<1x64x128xf32> to vector<64x128xf32>
    %cst_252 = arith.constant dense<0.000000e+00> : vector<1x128xf32>
    %296 = tpu.matmul %293, %295, %cst_252 {dimension_numbers = #tpu.dot_dimension_numbers<[1], [0], [0], [1], [0, 0, 1, 1], [], []>} : vector<1x64xf32>, vector<64x128xf32>, vector<1x128xf32> -> vector<1x128xf32>
    %297 = arith.addf %290, %296 : vector<1x128xf32>
    %c4_253 = arith.constant 4 : index
    %c0_254 = arith.constant 0 : index
    %c0_255 = arith.constant 0 : index
    %298 = vector.load %arg15[%c4_253, %c0_254, %c0_255] : memref<9x1x4xf32, #tpu.memory_space<vmem>>, vector<1x1x4xf32>
    %299 = vector.shape_cast %298 : vector<1x1x4xf32> to vector<1x4xf32>
    %cst_256 = arith.constant dense<0.000000e+00> : vector<1x64xf32>
    %300 = tpu.matmul %299, %268, %cst_256 {dimension_numbers = #tpu.dot_dimension_numbers<[1], [0], [0], [1], [0, 0, 1, 1], [], []>} : vector<1x4xf32>, vector<4x64xf32>, vector<1x64xf32> -> vector<1x64xf32>
    %c4_257 = arith.constant 4 : index
    %c0_258 = arith.constant 0 : index
    %c0_259 = arith.constant 0 : index
    %301 = vector.load %arg16[%c4_257, %c0_258, %c0_259] : memref<9x64x128xf32, #tpu.memory_space<vmem>>, vector<1x64x128xf32>
    %302 = vector.shape_cast %301 : vector<1x64x128xf32> to vector<64x128xf32>
    %cst_260 = arith.constant dense<0.000000e+00> : vector<1x128xf32>
    %303 = tpu.matmul %300, %302, %cst_260 {dimension_numbers = #tpu.dot_dimension_numbers<[1], [0], [0], [1], [0, 0, 1, 1], [], []>} : vector<1x64xf32>, vector<64x128xf32>, vector<1x128xf32> -> vector<1x128xf32>
    %304 = arith.addf %297, %303 : vector<1x128xf32>
    %c5_261 = arith.constant 5 : index
    %c0_262 = arith.constant 0 : index
    %c0_263 = arith.constant 0 : index
    %305 = vector.load %arg15[%c5_261, %c0_262, %c0_263] : memref<9x1x4xf32, #tpu.memory_space<vmem>>, vector<1x1x4xf32>
    %306 = vector.shape_cast %305 : vector<1x1x4xf32> to vector<1x4xf32>
    %cst_264 = arith.constant dense<0.000000e+00> : vector<1x64xf32>
    %307 = tpu.matmul %306, %268, %cst_264 {dimension_numbers = #tpu.dot_dimension_numbers<[1], [0], [0], [1], [0, 0, 1, 1], [], []>} : vector<1x4xf32>, vector<4x64xf32>, vector<1x64xf32> -> vector<1x64xf32>
    %c5_265 = arith.constant 5 : index
    %c0_266 = arith.constant 0 : index
    %c0_267 = arith.constant 0 : index
    %308 = vector.load %arg16[%c5_265, %c0_266, %c0_267] : memref<9x64x128xf32, #tpu.memory_space<vmem>>, vector<1x64x128xf32>
    %309 = vector.shape_cast %308 : vector<1x64x128xf32> to vector<64x128xf32>
    %cst_268 = arith.constant dense<0.000000e+00> : vector<1x128xf32>
    %310 = tpu.matmul %307, %309, %cst_268 {dimension_numbers = #tpu.dot_dimension_numbers<[1], [0], [0], [1], [0, 0, 1, 1], [], []>} : vector<1x64xf32>, vector<64x128xf32>, vector<1x128xf32> -> vector<1x128xf32>
    %311 = arith.addf %304, %310 : vector<1x128xf32>
    %c6_269 = arith.constant 6 : index
    %c0_270 = arith.constant 0 : index
    %c0_271 = arith.constant 0 : index
    %312 = vector.load %arg15[%c6_269, %c0_270, %c0_271] : memref<9x1x4xf32, #tpu.memory_space<vmem>>, vector<1x1x4xf32>
    %313 = vector.shape_cast %312 : vector<1x1x4xf32> to vector<1x4xf32>
    %cst_272 = arith.constant dense<0.000000e+00> : vector<1x64xf32>
    %314 = tpu.matmul %313, %268, %cst_272 {dimension_numbers = #tpu.dot_dimension_numbers<[1], [0], [0], [1], [0, 0, 1, 1], [], []>} : vector<1x4xf32>, vector<4x64xf32>, vector<1x64xf32> -> vector<1x64xf32>
    %c6_273 = arith.constant 6 : index
    %c0_274 = arith.constant 0 : index
    %c0_275 = arith.constant 0 : index
    %315 = vector.load %arg16[%c6_273, %c0_274, %c0_275] : memref<9x64x128xf32, #tpu.memory_space<vmem>>, vector<1x64x128xf32>
    %316 = vector.shape_cast %315 : vector<1x64x128xf32> to vector<64x128xf32>
    %cst_276 = arith.constant dense<0.000000e+00> : vector<1x128xf32>
    %317 = tpu.matmul %314, %316, %cst_276 {dimension_numbers = #tpu.dot_dimension_numbers<[1], [0], [0], [1], [0, 0, 1, 1], [], []>} : vector<1x64xf32>, vector<64x128xf32>, vector<1x128xf32> -> vector<1x128xf32>
    %318 = arith.addf %311, %317 : vector<1x128xf32>
    %c7_277 = arith.constant 7 : index
    %c0_278 = arith.constant 0 : index
    %c0_279 = arith.constant 0 : index
    %319 = vector.load %arg15[%c7_277, %c0_278, %c0_279] : memref<9x1x4xf32, #tpu.memory_space<vmem>>, vector<1x1x4xf32>
    %320 = vector.shape_cast %319 : vector<1x1x4xf32> to vector<1x4xf32>
    %cst_280 = arith.constant dense<0.000000e+00> : vector<1x64xf32>
    %321 = tpu.matmul %320, %268, %cst_280 {dimension_numbers = #tpu.dot_dimension_numbers<[1], [0], [0], [1], [0, 0, 1, 1], [], []>} : vector<1x4xf32>, vector<4x64xf32>, vector<1x64xf32> -> vector<1x64xf32>
    %c7_281 = arith.constant 7 : index
    %c0_282 = arith.constant 0 : index
    %c0_283 = arith.constant 0 : index
    %322 = vector.load %arg16[%c7_281, %c0_282, %c0_283] : memref<9x64x128xf32, #tpu.memory_space<vmem>>, vector<1x64x128xf32>
    %323 = vector.shape_cast %322 : vector<1x64x128xf32> to vector<64x128xf32>
    %cst_284 = arith.constant dense<0.000000e+00> : vector<1x128xf32>
    %324 = tpu.matmul %321, %323, %cst_284 {dimension_numbers = #tpu.dot_dimension_numbers<[1], [0], [0], [1], [0, 0, 1, 1], [], []>} : vector<1x64xf32>, vector<64x128xf32>, vector<1x128xf32> -> vector<1x128xf32>
    %325 = arith.addf %318, %324 : vector<1x128xf32>
    %c8_285 = arith.constant 8 : index
    %c0_286 = arith.constant 0 : index
    %c0_287 = arith.constant 0 : index
    %326 = vector.load %arg15[%c8_285, %c0_286, %c0_287] : memref<9x1x4xf32, #tpu.memory_space<vmem>>, vector<1x1x4xf32>
    %327 = vector.shape_cast %326 : vector<1x1x4xf32> to vector<1x4xf32>
    %cst_288 = arith.constant dense<0.000000e+00> : vector<1x64xf32>
    %328 = tpu.matmul %327, %268, %cst_288 {dimension_numbers = #tpu.dot_dimension_numbers<[1], [0], [0], [1], [0, 0, 1, 1], [], []>} : vector<1x4xf32>, vector<4x64xf32>, vector<1x64xf32> -> vector<1x64xf32>
    %c8_289 = arith.constant 8 : index
    %c0_290 = arith.constant 0 : index
    %c0_291 = arith.constant 0 : index
    %329 = vector.load %arg16[%c8_289, %c0_290, %c0_291] : memref<9x64x128xf32, #tpu.memory_space<vmem>>, vector<1x64x128xf32>
    %330 = vector.shape_cast %329 : vector<1x64x128xf32> to vector<64x128xf32>
    %cst_292 = arith.constant dense<0.000000e+00> : vector<1x128xf32>
    %331 = tpu.matmul %328, %330, %cst_292 {dimension_numbers = #tpu.dot_dimension_numbers<[1], [0], [0], [1], [0, 0, 1, 1], [], []>} : vector<1x64xf32>, vector<64x128xf32>, vector<1x128xf32> -> vector<1x128xf32>
    %332 = arith.addf %325, %331 : vector<1x128xf32>
    %c0_293 = arith.constant 0 : index
    %c0_294 = arith.constant 0 : index
    %333 = vector.load %arg17[%c0_293, %c0_294] : memref<1x128xf32, #tpu.memory_space<vmem>>, vector<1x128xf32>
    %334 = arith.addf %332, %333 : vector<1x128xf32>
    %cst_295 = arith.constant 2.000000e-01 : f32
    %335 = vector.broadcast %cst_295 : f32 to vector<1x128xf32>
    %336 = arith.mulf %335, %334 : vector<1x128xf32>
    %337 = arith.maximumf %334, %336 : vector<1x128xf32>
    %c0_296 = arith.constant 0 : index
    %c0_297 = arith.constant 0 : index
    %338 = vector.load %arg18[%c0_296, %c0_297] : memref<1x128xf32, #tpu.memory_space<vmem>>, vector<1x128xf32>
    %339 = arith.mulf %337, %338 : vector<1x128xf32>
    %c0_298 = arith.constant 0 : index
    %c0_299 = arith.constant 0 : index
    %340 = vector.load %arg19[%c0_298, %c0_299] : memref<1x128xf32, #tpu.memory_space<vmem>>, vector<1x128xf32>
    %341 = arith.addf %339, %340 : vector<1x128xf32>
    %c0_300 = arith.constant 0 : index
    %c0_301 = arith.constant 0 : index
    %342 = vector.load %arg20[%c0_300, %c0_301] : memref<1x128xf32, #tpu.memory_space<vmem>>, vector<1x128xf32>
    %343 = arith.mulf %341, %342 : vector<1x128xf32>
    %cst_302 = arith.constant dense<0.000000e+00> : vector<1xf32>
    %344 = vector.multi_reduction <add>, %343, %cst_302 [1] : vector<1x128xf32> to vector<1xf32>
    %345 = vector.shape_cast %344 : vector<1xf32> to vector<1x1xf32>
    %cst_303 = arith.constant dense<0.000000e+00> : vector<1xf32>
    %346 = vector.multi_reduction <add>, %345, %cst_303 [0] : vector<1x1xf32> to vector<1xf32>
    %347 = vector.shape_cast %346 : vector<1xf32> to vector<1x1xf32>
    %c0_304 = arith.constant 0 : index
    %c0_305 = arith.constant 0 : index
    %348 = vector.load %arg21[%c0_304, %c0_305] : memref<1x1xf32, #tpu.memory_space<vmem>>, vector<1x1xf32>
    %349 = arith.addf %347, %348 : vector<1x1xf32>
    %cst_306 = arith.constant 0.000000e+00 : f32
    %350 = vector.broadcast %cst_306 : f32 to vector<1x1xf32>
    %351 = arith.subf %350, %349 : vector<1x1xf32>
    %352 = math.exp %351 : vector<1x1xf32>
    %cst_307 = arith.constant 1.000000e+00 : f32
    %353 = vector.broadcast %cst_307 : f32 to vector<1x1xf32>
    %354 = arith.addf %353, %352 : vector<1x1xf32>
    %355 = tpu.reciprocal %354 {approx = true} : vector<1x1xf32> -> vector<1x1xf32>
    %c0_308 = arith.constant 0 : index
    %c0_309 = arith.constant 0 : index
    %c0_310 = arith.constant 0 : index
    %356 = vector.load %arg22[%c0_308, %c0_309, %c0_310] : memref<1x1x1xf32, #tpu.memory_space<vmem>>, vector<1x1x1xf32>
    %357 = vector.shape_cast %356 : vector<1x1x1xf32> to vector<1x1xf32>
    %358 = vector.shape_cast %355 : vector<1x1xf32> to vector<1x1x1xf32>
    tpu.vector_store %arg22[%c0_308, %c0_309, %c0_310], %358 {strides = array<i32>} : memref<1x1x1xf32, #tpu.memory_space<vmem>>, vector<1x1x1xf32>,
    return
  }
  func.func @transform_0(%arg0: i32) -> (i32, i32, i32) {
    %c0_i32 = arith.constant 0 : i32
    %c0_i32_0 = arith.constant 0 : i32
    %c0_i32_1 = arith.constant 0 : i32
    return %arg0, %c0_i32, %c0_i32_0 : i32, i32, i32
  }
  func.func @transform_1(%arg0: i32) -> (i32, i32, i32) {
    %c0_i32 = arith.constant 0 : i32
    %c0_i32_0 = arith.constant 0 : i32
    %c0_i32_1 = arith.constant 0 : i32
    %c0_i32_2 = arith.constant 0 : i32
    return %c0_i32, %c0_i32_0, %c0_i32_1 : i32, i32, i32
  }
  func.func @transform_2(%arg0: i32) -> (i32, i32, i32) {
    %c0_i32 = arith.constant 0 : i32
    %c0_i32_0 = arith.constant 0 : i32
    %c0_i32_1 = arith.constant 0 : i32
    %c0_i32_2 = arith.constant 0 : i32
    return %c0_i32, %c0_i32_0, %c0_i32_1 : i32, i32, i32
  }
  func.func @transform_3(%arg0: i32) -> (i32, i32) {
    %c0_i32 = arith.constant 0 : i32
    %c0_i32_0 = arith.constant 0 : i32
    %c0_i32_1 = arith.constant 0 : i32
    return %c0_i32, %c0_i32_0 : i32, i32
  }
  func.func @transform_4(%arg0: i32) -> (i32, i32, i32) {
    %c0_i32 = arith.constant 0 : i32
    %c0_i32_0 = arith.constant 0 : i32
    %c0_i32_1 = arith.constant 0 : i32
    %c0_i32_2 = arith.constant 0 : i32
    return %c0_i32, %c0_i32_0, %c0_i32_1 : i32, i32, i32
  }
  func.func @transform_5(%arg0: i32) -> (i32, i32, i32) {
    %c0_i32 = arith.constant 0 : i32
    %c0_i32_0 = arith.constant 0 : i32
    %c0_i32_1 = arith.constant 0 : i32
    %c0_i32_2 = arith.constant 0 : i32
    return %c0_i32, %c0_i32_0, %c0_i32_1 : i32, i32, i32
  }
  func.func @transform_6(%arg0: i32) -> (i32, i32) {
    %c0_i32 = arith.constant 0 : i32
    %c0_i32_0 = arith.constant 0 : i32
    %c0_i32_1 = arith.constant 0 : i32
    return %c0_i32, %c0_i32_0 : i32, i32
  }
  func.func @transform_7(%arg0: i32) -> (i32, i32) {
    %c0_i32 = arith.constant 0 : i32
    %c0_i32_0 = arith.constant 0 : i32
    %c0_i32_1 = arith.constant 0 : i32
    return %c0_i32, %c0_i32_0 : i32, i32
  }
  func.func @transform_8(%arg0: i32) -> (i32, i32) {
    %c0_i32 = arith.constant 0 : i32
    %c0_i32_0 = arith.constant 0 : i32
    %c0_i32_1 = arith.constant 0 : i32
    return %c0_i32, %c0_i32_0 : i32, i32
  }
  func.func @transform_9(%arg0: i32) -> (i32, i32, i32) {
    %c0_i32 = arith.constant 0 : i32
    %c0_i32_0 = arith.constant 0 : i32
    %c0_i32_1 = arith.constant 0 : i32
    %c0_i32_2 = arith.constant 0 : i32
    return %c0_i32, %c0_i32_0, %c0_i32_1 : i32, i32, i32
  }
  func.func @transform_10(%arg0: i32) -> (i32, i32, i32) {
    %c0_i32 = arith.constant 0 : i32
    %c0_i32_0 = arith.constant 0 : i32
    %c0_i32_1 = arith.constant 0 : i32
    %c0_i32_2 = arith.constant 0 : i32
    return %c0_i32, %c0_i32_0, %c0_i32_1 : i32, i32, i32
  }
  func.func @transform_11(%arg0: i32) -> (i32, i32) {
    %c0_i32 = arith.constant 0 : i32
    %c0_i32_0 = arith.constant 0 : i32
    %c0_i32_1 = arith.constant 0 : i32
    return %c0_i32, %c0_i32_0 : i32, i32
  }
  func.func @transform_12(%arg0: i32) -> (i32, i32) {
    %c0_i32 = arith.constant 0 : i32
    %c0_i32_0 = arith.constant 0 : i32
    %c0_i32_1 = arith.constant 0 : i32
    return %c0_i32, %c0_i32_0 : i32, i32
  }
  func.func @transform_13(%arg0: i32) -> (i32, i32) {
    %c0_i32 = arith.constant 0 : i32
    %c0_i32_0 = arith.constant 0 : i32
    %c0_i32_1 = arith.constant 0 : i32
    return %c0_i32, %c0_i32_0 : i32, i32
  }
  func.func @transform_14(%arg0: i32) -> (i32, i32, i32) {
    %c0_i32 = arith.constant 0 : i32
    %c0_i32_0 = arith.constant 0 : i32
    %c0_i32_1 = arith.constant 0 : i32
    %c0_i32_2 = arith.constant 0 : i32
    return %c0_i32, %c0_i32_0, %c0_i32_1 : i32, i32, i32
  }
  func.func @transform_15(%arg0: i32) -> (i32, i32, i32) {
    %c0_i32 = arith.constant 0 : i32
    %c0_i32_0 = arith.constant 0 : i32
    %c0_i32_1 = arith.constant 0 : i32
    %c0_i32_2 = arith.constant 0 : i32
    return %c0_i32, %c0_i32_0, %c0_i32_1 : i32, i32, i32
  }
  func.func @transform_16(%arg0: i32) -> (i32, i32) {
    %c0_i32 = arith.constant 0 : i32
    %c0_i32_0 = arith.constant 0 : i32
    %c0_i32_1 = arith.constant 0 : i32
    return %c0_i32, %c0_i32_0 : i32, i32
  }
  func.func @transform_17(%arg0: i32) -> (i32, i32) {
    %c0_i32 = arith.constant 0 : i32
    %c0_i32_0 = arith.constant 0 : i32
    %c0_i32_1 = arith.constant 0 : i32
    return %c0_i32, %c0_i32_0 : i32, i32
  }
  func.func @transform_18(%arg0: i32) -> (i32, i32) {
    %c0_i32 = arith.constant 0 : i32
    %c0_i32_0 = arith.constant 0 : i32
    %c0_i32_1 = arith.constant 0 : i32
    return %c0_i32, %c0_i32_0 : i32, i32
  }
  func.func @transform_19(%arg0: i32) -> (i32, i32) {
    %c0_i32 = arith.constant 0 : i32
    %c0_i32_0 = arith.constant 0 : i32
    %c0_i32_1 = arith.constant 0 : i32
    return %c0_i32, %c0_i32_0 : i32, i32
  }
  func.func @transform_20(%arg0: i32) -> (i32, i32) {
    %c0_i32 = arith.constant 0 : i32
    %c0_i32_0 = arith.constant 0 : i32
    %c0_i32_1 = arith.constant 0 : i32
    return %c0_i32, %c0_i32_0 : i32, i32
  }
  func.func @transform_21(%arg0: i32) -> (i32, i32, i32) {
    %c0_i32 = arith.constant 0 : i32
    %c0_i32_0 = arith.constant 0 : i32
    %c0_i32_1 = arith.constant 0 : i32
    return %arg0, %c0_i32, %c0_i32_0 : i32, i32, i32
  }
}

</mosaic_0001>

<bundles_post_ra>
// kernel: discriminator_forward.1
= control target key start
LH: loop header
LB: loop body
LE: loop exit
PB: predicated region body
PF: predicated region fallthrough
CT: control target
= control target key end

     0   :  { %s4409_s0 = inlined_call_operand.vmem [shape: f32[2,1,256], index: 0, kind: input, shape index: {}]   ;;  %s4410_s1 = inlined_call_operand.hbm [shape: f32[9,64,256], index: 1, kind: input, shape index: {}]   ;;  %s4411_s2 = inlined_call_operand.vmem [shape: f32[9,1,16], index: 2, kind: input, shape index: {}]   ;;  %s4412_s3 = inlined_call_operand.vmem [shape: f32[1,16], index: 3, kind: input, shape index: {}]   ;;  %s4413_s4 = inlined_call_operand.hbm [shape: f32[9,16,64], index: 4, kind: input, shape index: {}]   ;;  %s4414_s5 = inlined_call_operand.hbm [shape: f32[9,16,32], index: 5, kind: input, shape index: {}]   ;;  %s4415_s6 = inlined_call_operand.vmem [shape: f32[1,32], index: 6, kind: input, shape index: {}]   ;;  %s4416_s7 = inlined_call_operand.vmem [shape: f32[1,32], index: 7, kind: input, shape index: {}]   ;;  %s4417_s8 = inlined_call_operand.vmem [shape: f32[1,32], index: 8, kind: input, shape index: {}]   ;;  %s4418_s9 = inlined_call_operand.vmem [shape: f32[9,4,16], index: 9, kind: input, shape index: {}]   ;;  %s4419_s10 = inlined_call_operand.hbm [shape: f32[9,32,64], index: 10, kind: input, shape index: {}]   ;;  %s4420_s11 = inlined_call_operand.vmem [shape: f32[1,64], index: 11, kind: input, shape index: {}]   ;;  %s4421_s12 = inlined_call_operand.vmem [shape: f32[1,64], index: 12, kind: input, shape index: {}]   ;;  %s4422_s13 = inlined_call_operand.vmem [shape: f32[1,64], index: 13, kind: input, shape index: {}]   ;;  %s4423_s14 = inlined_call_operand.vmem [shape: f32[9,1,4], index: 14, kind: input, shape index: {}]   ;;  %s4424_s15 = inlined_call_operand.hbm [shape: f32[9,64,128], index: 15, kind: input, shape index: {}]   ;;  %s4425_s16 = inlined_call_operand.vmem [shape: f32[1,128], index: 16, kind: input, shape index: {}]   ;;  %s4426_s17 = inlined_call_operand.vmem [shape: f32[1,128], index: 17, kind: input, shape index: {}]   ;;  %s4427_s18 = inlined_call_operand.vmem [shape: f32[1,128], index: 18, kind: input, shape index: {}]   ;;  %s4428_s19 = inlined_call_operand.vmem [shape: f32[1,128], index: 19, kind: input, shape index: {}]   ;;  %s4429_s20 = inlined_call_operand.<no memory space> [shape: f32[1,1], index: 20, kind: input, shape index: {}]   ;;  %s4430_s21 = inlined_call_operand.vmem [shape: f32[2,1,1], index: 21, kind: output, shape index: {}]  }
   0x1   :  { %4433 = sst [smem:[#allocation15_spill]] %s4409_s0  ;;  %v26_v0 = vstv %s4429_s20 }
   0x2   :  { %4434 = sst [smem:[#allocation16_spill]] %s4410_s1  ;;  %27 = vst [vmem:[#allocation2] sm:$0x1] %v26_v0 }
   0x3   :  { %4435 = sst [smem:[#allocation17_spill]] %s4411_s2 }
   0x4   :  { %4436 = sst [smem:[#allocation18_spill]] %s4412_s3 }
   0x5   :  { %4437 = sst [smem:[#allocation19_spill]] %s4413_s4 }
   0x6   :  { %4438 = sst [smem:[#allocation20_spill]] %s4414_s5 }
   0x7   :  { %4439 = sst [smem:[#allocation21_spill]] %s4419_s10 }
   0x8   :  { %4440 = sst [smem:[#allocation22_spill]] %s4427_s18 }
   0x9   :  { %4441 = sst [smem:[#allocation23_spill]] %s4428_s19 }
   0xa   :  { %4442 = sst [smem:[#allocation24_spill]] %s4430_s21 }
   0xb   :  { %28 = vsyncpa [#allocation4], 0 }
   0xc   :  { %29 = vsyncpa [#allocation6], 0 }
   0xd   :  { %30 = vsyncpa [#allocation9], 0  ;;  %s3731_s26 = smov 0  }
   0xe LB: > { %4443 = sst [smem:[#allocation14_spill]] %s3607_s26  ;;  %s3740_s20 = sadd.s32 4294967295, %s3607_s26   ;;  %s3607_s26 = sphi %s3731_s26, %s36_s26  }
   0xf   : > { %s4444_s28 = sld [smem:[#allocation19_spill]]  ;;  %p3227_p0 = scmp.ge.s32.totalorder %s3607_s26, 1 }
  0x10   : > { %p513_p1 = scmp.lt.s32.totalorder %s3607_s26, 3  ;;  %p3392_p2 = scmp.eq.s32.totalorder %s3740_s20, 0 }
  0x11   : > { %s3609_s4 = smov [#allocation5]   ;;  %s4446_s10 = sld [smem:[#allocation21_spill]] }
  0x12   : > { %p3745_p3 = pnand %p3227_p0, %p513_p1  ;;  %s546_s30 = sshll.u32 %s3609_s4, 4  ;;  %s547_s30 = int_to_ptr.vmem [resolvable:$true] %s546_s30 }
  0x13   : > { %s3610_s24 = smov [#allocation8]   ;;  %s4448_s3 = sld [smem:[#allocation16_spill]] }
  0x14   : > { %p3376_p4 = pneg %p3745_p3  ;;  %s586_s2 = sshll.u32 %s3610_s24, 4  ;;  %s587_s2 = int_to_ptr.vmem [resolvable:$true] %s586_s2 }
  0x15   : > { %s544_s29 = sshll.u32 %s4444_s28, 4  ;;  %s3611_s4 = smov 128   ;;  %s545_s29 = int_to_ptr.hbm [resolvable:$true] %s544_s29 }
  0x16   : > { %p3756_p5 = pnand %p3392_p2, %p3376_p4  ;;  %s3612_s26 = smov 8  }
  0x17   : > { %s584_s23 = sshll.u32 %s4446_s10, 4  ;;  %s3613_s5 = smov [#allocation3]   ;;  %s585_s23 = int_to_ptr.hbm [resolvable:$true] %s584_s23 }
  0x18   : > { %3382 = dma.hbm_to_vmem [thread:$0]  (!%p3756_p5), %s545_s29, 2304, %s547_s30, [#allocation6], %s3611_s4, %s3611_s4, %s3612_s26  }
  0x19   : > { %s524_s28 = sshll.u32 %s4448_s3, 4  ;;  %s526_s22 = sshll.u32 %s3613_s5, 4  ;;  %s525_s28 = int_to_ptr.hbm [resolvable:$true] %s524_s28  ;;  %s527_s22 = int_to_ptr.vmem [resolvable:$true] %s526_s22 }
  0x1a   : > { %3388 = dma.hbm_to_vmem [thread:$0]  (!%p3756_p5), %s585_s23, 4608, %s587_s2, [#allocation9], %s3611_s4, %s3611_s4, %s3612_s26  }
  0x1b   : > { %s3614_s10 = smov 256   ;;  %s3615_s21 = smov 16  }
  0x1c   : > { %3379 = dma.hbm_to_vmem [thread:$0]  (!%p3756_p5), %s525_s28, 18432, %s527_s22, [#allocation4], %s3614_s10, %s3614_s10, %s3615_s21  }
  0x1d   : > { %s4449_s27 = sld [smem:[#allocation20_spill]]  ;;  %s3616_s19 = smov [#allocation7]  }
  0x1e   : > { %s560_s18 = sshll.u32 %s3616_s19, 4  ;;  %s610_s23 = sshll.u32 %s4424_s15, 4  ;;  %s561_s18 = int_to_ptr.vmem [resolvable:$true] %s560_s18  ;;  %s611_s23 = int_to_ptr.hbm [resolvable:$true] %s610_s23 }
  0x1f   : > { %s3617_s2 = smov [#allocation10]  }
  0x20   : > { %s612_s5 = sshll.u32 %s3617_s2, 4  ;;  %650 = sbr.rel (%p3745_p3) target bundleno = 1978 (0x7ba), region = 104  ;;  %s613_s5 = int_to_ptr.vmem [resolvable:$true] %s612_s5 }
  0x21   : > { %3391 = dma.hbm_to_vmem [thread:$0]  (!%p3756_p5), %s611_s23, 9216, %s613_s5, [#allocation9], %s3611_s4, %s3611_s4, %s3612_s26  }
  0x23   : > { %s558_s3 = sshll.u32 %s4449_s27, 4  ;;  %s559_s3 = int_to_ptr.hbm [resolvable:$true] %s558_s3 }
  0x24   : > { %3385 = dma.hbm_to_vmem [thread:$0]  (!%p3756_p5), %s559_s3, 2304, %s561_s18, [#allocation6], %s3611_s4, %s3611_s4, %s3612_s26  }
  0x25   : > { %3594 = dma.done.wait (%p3392_p2), [#allocation4], 18432  }
  0x26   : > { %3596 = vsyncadd (%p3392_p2), [#allocation4], 4294948864 }
  0x27   : > { %3598 = dma.done.wait (%p3392_p2), [#allocation6], 4608  }
  0x28   : > { %3600 = vsyncadd (%p3392_p2), [#allocation6], 4294962688 }
  0x29   : > { %3602 = dma.done.wait (%p3392_p2), [#allocation9], 13824  }
  0x2a   : > { %3604 = vsyncadd (%p3392_p2), [#allocation9], 4294953472  ;;  %p728_p6 = scmp.lt.s32.totalorder %s3740_s20, 1  ;;  %s4450_s21 = sld [smem:[#allocation15_spill]]  ;;  %v910_v2 = vld [vmem:[#allocation3 + $0x170] sm:$0xff]  ;;  %v911_v3 = vld [vmem:[#allocation3 + $0x178] sm:$0xff] }
  0x2b   : > { %v750_v6 = vld [vmem:[#allocation3 + $0x70] sm:$0xff]  ;;  %v751_v7 = vld [vmem:[#allocation3 + $0x78] sm:$0xff]  ;;  %v748_v8 = vld [vmem:[#allocation3 + $0x60] sm:$0xff]  ;;  %s4451_s28 = sld [smem:[#allocation17_spill]]  ;;  %vm1471_vm0 = vcmask 523264   ;;  %vm1538_vm1 = vcmask 130048  }
  0x2c   : > { %s4458_s20 = smov (!%p728_p6, %s3740_s20), 1  ;;  %v749_v9 = vld [vmem:[#allocation3 + $0x68] sm:$0xff]  ;;  %v832_v14 = vld [vmem:[#allocation3 + $0xf0] sm:$0xff]  ;;  %v833_v17 = vld [vmem:[#allocation3 + $0xf8] sm:$0xff]  ;;  %s4452_s4 = sld [smem:[#allocation18_spill]]  ;;  %vm2139_vm2 = vcmask 261120  }
  0x2d   : > { %s3240_s10 = sshll.u32 %s4458_s20, 1  ;;  %v746_v18 = vld [vmem:[#allocation3 + $0x50] sm:$0xff]  ;;  %v747_v19 = vld [vmem:[#allocation3 + $0x58] sm:$0xff]  ;;  %v830_v22 = vld [vmem:[#allocation3 + $0xe0] sm:$0xff]  ;;  %vm2586_vm3 = vcmask 1043456   ;;  %vm2582_vm4 = vcmask 31744  }
  0x2e   : > { %v831_v23 = vld [vmem:[#allocation3 + $0xe8] sm:$0xff]  ;;  %v828_v31 = vld [vmem:[#allocation3 + $0xd0] sm:$0xff]  ;;  %v829_v32 = vld [vmem:[#allocation3 + $0xd8] sm:$0xff]  ;;  %s4453_s22 = sld [smem:[#allocation22_spill]]  ;;  %vm3114_vm5 = vcmask 1040384   ;;  %vm3126_vm6 = vcmask 0  }
  0x2f   : > { %v908_v35 = vld [vmem:[#allocation3 + $0x160] sm:$0xff]  ;;  %v909_v36 = vld [vmem:[#allocation3 + $0x168] sm:$0xff]  ;;  %v988_v37 = vld [vmem:[#allocation3 + $0x1f0] sm:$0xff]  ;;  %s4454_s27 = sld [smem:[#allocation23_spill]] }
  0x30   : > { %s731_s26 = scalar_lea.vmem %s4450_s21, %s3240_s10  ;;  %v989_v39 = vld [vmem:[#allocation3 + $0x1f8] sm:$0xff]  ;;  %v906_v48 = vld [vmem:[#allocation3 + $0x150] sm:$0xff]  ;;  %v744_v51 = vld [vmem:[#allocation3 + $0x40] sm:$0xff]  ;;  %s4455_s30 = sld [smem:[#allocation24_spill]] }
  0x31   : > { %v735_v1 = vld [vmem:[%s731_s26] sm:$0x3]  ;;  %v745_v52 = vld [vmem:[#allocation3 + $0x48] sm:$0xff] }
  0x32   : > { %v3801_v4 = vperm.slane %v735_v1, 0  ;;  %v3803_v5 = vperm.slane %v735_v1, 1  ;;  %v907_v50 = vld [vmem:[#allocation3 + $0x158] sm:$0xff]  ;;  %v826_v53 = vld [vmem:[#allocation3 + $0xc0] sm:$0xff]  ;;  %v827_v54 = vld [vmem:[#allocation3 + $0xc8] sm:$0xff] }
  0x33   : > { %v986_v63 = vld [vmem:[#allocation3 + $0x1e0] sm:$0xff]  ;;  %v987_v1 = vld [vmem:[#allocation3 + $0x1e8] sm:$0xff] }
  0x34   : > { %v926_v10 = vmul.f32 %v910_v2, %v3801_v4  ;;  %v927_v11 = vmul.f32 %v911_v3, %v3803_v5  ;;  %v771_v12 = vmul.f32 %v3801_v4, %v750_v6  ;;  %v772_v13 = vmul.f32 %v3803_v5, %v751_v7  ;;  %v742_v2 = vld [vmem:[#allocation3 + $0x30] sm:$0xff]  ;;  %v743_v3 = vld [vmem:[#allocation3 + $0x38] sm:$0xff] }
  0x35   : > { %v769_v15 = vmul.f32 %v3801_v4, %v748_v8  ;;  %v770_v16 = vmul.f32 %v3803_v5, %v749_v9  ;;  %v848_v25 = vmul.f32 %v832_v14, %v3801_v4  ;;  %v849_v26 = vmul.f32 %v833_v17, %v3803_v5  ;;  %v1066_v6 = vld [vmem:[#allocation3 + $0x270] sm:$0xff]  ;;  %v1067_v7 = vld [vmem:[#allocation3 + $0x278] sm:$0xff] }
  0x36   : > { %v949_v20 = vadd.f32 %v927_v11, %v926_v10  ;;  %v794_v21 = vadd.f32 %v772_v13, %v771_v12  ;;  %v767_v27 = vmul.f32 %v3801_v4, %v746_v18  ;;  %v768_v28 = vmul.f32 %v3803_v5, %v747_v19  ;;  %v825_v18 = vld [vmem:[#allocation3 + $0xb8] sm:$0xff]  ;;  %v984_v19 = vld [vmem:[#allocation3 + $0x1d0] sm:$0xff]  ;;  %s734_s23 = scalar_lea.vmem %s4455_s30, %s4458_s20 }
  0x37   : > { %v791_v24 = vadd.f32 %v770_v16, %v769_v15  ;;  %v846_v29 = vmul.f32 %v830_v22, %v3801_v4  ;;  %v847_v30 = vmul.f32 %v831_v23, %v3803_v5  ;;  %v871_v33 = vadd.f32 %v849_v26, %v848_v25  ;;  %v824_v16 = vld [vmem:[#allocation3 + $0xb0] sm:$0xff]  ;;  %v905_v22 = vld [vmem:[#allocation3 + $0x148] sm:$0xff] }
  0x38   : > { %950 = vadd.xlane.f32.xlu2 %v949_v20  ;;  %795 = vadd.xlane.f32.xlu0 %v794_v21  ;;  %v788_v34 = vadd.f32 %v768_v28, %v767_v27  ;;  %v844_v40 = vmul.f32 %v828_v31, %v3801_v4  ;;  %v845_v41 = vmul.f32 %v829_v32, %v3803_v5  ;;  %v985_v20 = vld [vmem:[#allocation3 + $0x1d8] sm:$0xff]  ;;  %v904_v21 = vld [vmem:[#allocation3 + $0x140] sm:$0xff] }
  0x39   : > { %792 = vadd.xlane.f32.xlu1 %v791_v24  ;;  %v868_v38 = vadd.f32 %v847_v30, %v846_v29  ;;  %v1004_v42 = vmul.f32 %v988_v37, %v3801_v4  ;;  %v1005_v43 = vmul.f32 %v989_v39, %v3803_v5  ;;  %v924_v44 = vmul.f32 %v908_v35, %v3801_v4  ;;  %v1064_v31 = vld [vmem:[#allocation3 + $0x260] sm:$0xff]  ;;  %v741_v35 = vld [vmem:[#allocation3 + $0x28] sm:$0xff]  ;;  %v1145_v37 = vld [vmem:[#allocation3 + $0x2f8] sm:$0xff] }
  0x3a   : > { %v925_v45 = vmul.f32 %v909_v36, %v3803_v5  ;;  %v865_v46 = vadd.f32 %v845_v41, %v844_v40  ;;  %v922_v55 = vmul.f32 %v906_v48, %v3801_v4  ;;  %v923_v56 = vmul.f32 %v907_v50, %v3803_v5  ;;  %v1144_v36 = vld [vmem:[#allocation3 + $0x2f0] sm:$0xff]  ;;  %v823_v48 = vld [vmem:[#allocation3 + $0xa8] sm:$0xff] }
  0x3b   : > { %v1027_v47 = vadd.f32 %v1005_v43, %v1004_v42  ;;  %v765_v57 = vmul.f32 %v3801_v4, %v744_v51  ;;  %v766_v58 = vmul.f32 %v3803_v5, %v745_v52  ;;  %v842_v59 = vmul.f32 %v826_v53, %v3801_v4  ;;  %v983_v50 = vld [vmem:[#allocation3 + $0x1c8] sm:$0xff]  ;;  %v902_v51 = vld [vmem:[#allocation3 + $0x130] sm:$0xff]  ;;  %v903_v52 = vld [vmem:[#allocation3 + $0x138] sm:$0xff] }
  0x3c   : > { %v946_v49 = vadd.f32 %v925_v45, %v924_v44  ;;  %v843_v60 = vmul.f32 %v827_v54, %v3803_v5  ;;  %v943_v61 = vadd.f32 %v923_v56, %v922_v55  ;;  %v1002_v8 = vmul.f32 %v986_v63, %v3801_v4  ;;  %v1063_v63 = vld [vmem:[#allocation3 + $0x258] sm:$0xff] }
  0x3d   : > { %v785_v62 = vadd.f32 %v766_v58, %v765_v57  ;;  %v1003_v9 = vmul.f32 %v987_v1, %v3803_v5  ;;  %v763_v10 = vmul.f32 %v3801_v4, %v742_v2  ;;  %v764_v11 = vmul.f32 %v3803_v5, %v743_v3  ;;  %v1223_v1 = vld [vmem:[#allocation3 + $0x378] sm:$0xff]  ;;  %v1142_v2 = vld [vmem:[#allocation3 + $0x2e0] sm:$0xff]  ;;  %v1143_v3 = vld [vmem:[#allocation3 + $0x2e8] sm:$0xff] }
  0x3e   : > { %v862_v0 = vadd.f32 %v843_v60, %v842_v59  ;;  %v1082_v12 = vmul.f32 %v1066_v6, %v3801_v4  ;;  %v1083_v13 = vmul.f32 %v1067_v7, %v3803_v5  ;;  %v840_v23 = vmul.f32 %v824_v16, %v3801_v4  ;;  %v901_v16 = vld [vmem:[#allocation3 + $0x128] sm:$0xff] }
  0x3f   : > { %v1024_v14 = vadd.f32 %v1003_v9, %v1002_v8  ;;  %v782_v15 = vadd.f32 %v764_v11, %v763_v10  ;;  %v841_v24 = vmul.f32 %v825_v18, %v3803_v5  ;;  %v1000_v25 = vmul.f32 %v984_v19, %v3801_v4  ;;  %v739_v18 = vld [vmem:[#allocation3 + $0x18] sm:$0xff]  ;;  %v820_v19 = vld [vmem:[#allocation3 + $0x90] sm:$0xff] }
  0x40   : > { %872 = vadd.xlane.f32.xlu0 %v871_v33  ;;  %789 = vadd.xlane.f32.xlu2 %v788_v34  ;;  %v1105_v17 = vadd.f32 %v1083_v13, %v1082_v12  ;;  %v1001_v26 = vmul.f32 %v985_v20, %v3803_v5  ;;  %v920_v27 = vmul.f32 %v904_v21, %v3801_v4  ;;  %v1065_v33 = vld [vmem:[#allocation3 + $0x268] sm:$0xff]  ;;  %v740_v34 = vld [vmem:[#allocation3 + $0x20] sm:$0xff]  ;;  %v821_v20 = vld [vmem:[#allocation3 + $0x98] sm:$0xff] }
  0x41   : > { %869 = vadd.xlane.f32.xlu1 %v868_v38  ;;  %v921_v28 = vmul.f32 %v905_v22, %v3803_v5  ;;  %v859_v29 = vadd.f32 %v841_v24, %v840_v23  ;;  %v1080_v38 = vmul.f32 %v1064_v31, %v3801_v4  ;;  %v1081_v39 = vmul.f32 %v1065_v33, %v3803_v5  ;;  %v1141_v31 = vld [vmem:[#allocation3 + $0x2d8] sm:$0xff] }
  0x42   : > { %v1021_v30 = vadd.f32 %v1001_v26, %v1000_v25  ;;  %v761_v40 = vmul.f32 %v3801_v4, %v740_v34  ;;  %v762_v41 = vmul.f32 %v3803_v5, %v741_v35  ;;  %v1160_v42 = vmul.f32 %v1144_v36, %v3801_v4  ;;  %v981_v33 = vld [vmem:[#allocation3 + $0x1b8] sm:$0xff]  ;;  %v1060_v34 = vld [vmem:[#allocation3 + $0x240] sm:$0xff]  ;;  %v1061_v35 = vld [vmem:[#allocation3 + $0x248] sm:$0xff] }
  0x43   : > { %v940_v32 = vadd.f32 %v921_v28, %v920_v27  ;;  %v1161_v43 = vmul.f32 %v1145_v37, %v3803_v5  ;;  %v1102_v44 = vadd.f32 %v1081_v39, %v1080_v38  ;;  %v839_v54 = vmul.f32 %v823_v48, %v3803_v5  ;;  %v737_v48 = vld [vmem:[#allocation3 + $0x8] sm:$0xff] }
  0x44   : > { %v779_v45 = vadd.f32 %v762_v41, %v761_v40  ;;  %v999_v56 = vmul.f32 %v983_v50, %v3803_v5  ;;  %v918_v57 = vmul.f32 %v902_v51, %v3801_v4  ;;  %v919_v58 = vmul.f32 %v903_v52, %v3803_v5  ;;  %v1301_v50 = vld [vmem:[#allocation3 + $0x3f8] sm:$0xff] }
  0x45   : > { %v1079_v7 = vmul.f32 %v1063_v63, %v3803_v5  ;;  %v1239_v9 = vmul.f32 %v1223_v1, %v3803_v5  ;;  %v1158_v10 = vmul.f32 %v1142_v2, %v3801_v4  ;;  %v1159_v11 = vmul.f32 %v1143_v3, %v3803_v5  ;;  %v979_v63 = vld [vmem:[#allocation3 + $0x1a8] sm:$0xff]  ;;  %v899_v1 = vld [vmem:[#allocation3 + $0x118] sm:$0xff] }
  0x46   : > { %v917_v22 = vmul.f32 %v901_v16, %v3803_v5  ;;  %v760_v24 = vmul.f32 %v3803_v5, %v739_v18  ;;  %v836_v25 = vmul.f32 %v820_v19, %v3801_v4  ;;  %v837_v26 = vmul.f32 %v821_v20, %v3803_v5  ;;  %v1219_v16 = vld [vmem:[#allocation3 + $0x358] sm:$0xff]  ;;  %v1139_v18 = vld [vmem:[#allocation3 + $0x2c8] sm:$0xff] }
  0x47   : > { %v1157_v37 = vmul.f32 %v1141_v31, %v3803_v5  ;;  %v997_v39 = vmul.f32 %v981_v33, %v3803_v5  ;;  %v1076_v40 = vmul.f32 %v1060_v34, %v3801_v4  ;;  %v1077_v41 = vmul.f32 %v1061_v35, %v3803_v5  ;;  %v897_v31 = vld [vmem:[#allocation3 + $0x108] sm:$0xff]  ;;  %v1379_v33 = vld [vmem:[#allocation3 + $0x478] sm:$0xff] }
  0x48   : > { %866 = vadd.xlane.f32.xlu0 %v865_v46  ;;  %1028 = vadd.xlane.f32.xlu2 %v1027_v47  ;;  %v822_v46 = vld [vmem:[#allocation3 + $0xa0] sm:$0xff]  ;;  %v1183_v47 = vadd.f32 %v1161_v43, %v1160_v42 }
  0x49   : > { %947 = vadd.xlane.f32.xlu1 %v946_v49  ;;  %v982_v49 = vld [vmem:[#allocation3 + $0x1c0] sm:$0xff]  ;;  %v838_v53 = vmul.f32 %v822_v46, %v3801_v4  ;;  %v1221_v46 = vld [vmem:[#allocation3 + $0x368] sm:$0xff] }
  0x4a   : > { %v998_v55 = vmul.f32 %v982_v49, %v3801_v4  ;;  %v1300_v49 = vld [vmem:[#allocation3 + $0x3f0] sm:$0xff]  ;;  %v1237_v52 = vmul.f32 %v1221_v46, %v3803_v5  ;;  %v1137_v46 = vld [vmem:[#allocation3 + $0x2b8] sm:$0xff] }
  0x4b   : > { %v856_v59 = vadd.f32 %v839_v54, %v838_v53  ;;  %v758_v54 = vmul.f32 %v3803_v5, %v737_v48  ;;  %v1057_v48 = vld [vmem:[#allocation3 + $0x228] sm:$0xff] }
  0x4c   : > { %v1018_v60 = vadd.f32 %v999_v56, %v998_v55  ;;  %v1316_v55 = vmul.f32 %v1300_v49, %v3801_v4  ;;  %v1317_v56 = vmul.f32 %v1301_v50, %v3803_v5 }
  0x50   : > { %944 = vadd.xlane.f32.xlu2 %v943_v61  ;;  %786 = vadd.xlane.f32.xlu0 %v785_v62  ;;  %v1062_v61 = vld [vmem:[#allocation3 + $0x250] sm:$0xff]  ;;  %v937_v62 = vadd.f32 %v919_v58, %v918_v57 }
  0x51   : > { %863 = vadd.xlane.f32.xlu1 %v862_v0  ;;  %v1222_v0 = vld [vmem:[#allocation3 + $0x370] sm:$0xff]  ;;  %v1078_v6 = vmul.f32 %v1062_v61, %v3801_v4  ;;  %v819_v61 = vld [vmem:[#allocation3 + $0x88] sm:$0xff] }
  0x52   : > { %v1238_v8 = vmul.f32 %v1222_v0, %v3801_v4  ;;  %v898_v0 = vld [vmem:[#allocation3 + $0x110] sm:$0xff]  ;;  %v835_v3 = vmul.f32 %v819_v61, %v3803_v5 }
  0x53   : > { %v1099_v12 = vadd.f32 %v1079_v7, %v1078_v6  ;;  %v995_v7 = vmul.f32 %v979_v63, %v3803_v5  ;;  %v1376_v63 = vld [vmem:[#allocation3 + $0x460] sm:$0xff] }
  0x54   : > { %v1261_v13 = vadd.f32 %v1239_v9, %v1238_v8  ;;  %v914_v8 = vmul.f32 %v898_v0, %v3801_v4  ;;  %v915_v9 = vmul.f32 %v899_v1, %v3803_v5  ;;  %v1377_v0 = vld [vmem:[#allocation3 + $0x468] sm:$0xff]  ;;  %v1296_v1 = vld [vmem:[#allocation3 + $0x3d0] sm:$0xff] }
  0x58   : > { %1025 = vadd.xlane.f32.xlu0 %v1024_v14  ;;  %783 = vadd.xlane.f32.xlu2 %v782_v15  ;;  %v900_v14 = vld [vmem:[#allocation3 + $0x120] sm:$0xff]  ;;  %v1180_v15 = vadd.f32 %v1159_v11, %v1158_v10 }
  0x59   : > { %1106 = vadd.xlane.f32.xlu1 %v1105_v17  ;;  %v738_v17 = vld [vmem:[#allocation3 + $0x10] sm:$0xff]  ;;  %v916_v21 = vmul.f32 %v900_v14, %v3801_v4  ;;  %v1059_v14 = vld [vmem:[#allocation3 + $0x238] sm:$0xff] }
  0x5a   : > { %v759_v23 = vmul.f32 %v3801_v4, %v738_v17  ;;  %v1138_v17 = vld [vmem:[#allocation3 + $0x2c0] sm:$0xff]  ;;  %v1075_v20 = vmul.f32 %v1059_v14, %v3803_v5 }
  0x5b   : > { %v934_v27 = vadd.f32 %v917_v22, %v916_v21  ;;  %v1235_v22 = vmul.f32 %v1219_v16, %v3803_v5 }
  0x5c   : > { %v776_v28 = vadd.f32 %v760_v24, %v759_v23  ;;  %v1154_v23 = vmul.f32 %v1138_v17, %v3801_v4  ;;  %v1155_v24 = vmul.f32 %v1139_v18, %v3803_v5 }
  0x60   : > { %860 = vadd.xlane.f32.xlu0 %v859_v29  ;;  %1022 = vadd.xlane.f32.xlu2 %v1021_v30  ;;  %v1140_v29 = vld [vmem:[#allocation3 + $0x2d0] sm:$0xff]  ;;  %v853_v30 = vadd.f32 %v837_v26, %v836_v25 }
  0x61   : > { %941 = vadd.xlane.f32.xlu1 %v940_v32  ;;  %v980_v32 = vld [vmem:[#allocation3 + $0x1b0] sm:$0xff]  ;;  %v1156_v36 = vmul.f32 %v1140_v29, %v3801_v4  ;;  %v1299_v29 = vld [vmem:[#allocation3 + $0x3e8] sm:$0xff] }
  0x62   : > { %v996_v38 = vmul.f32 %v980_v32, %v3801_v4  ;;  %v1378_v32 = vld [vmem:[#allocation3 + $0x470] sm:$0xff]  ;;  %v1315_v35 = vmul.f32 %v1299_v29, %v3803_v5 }
  0x63   : > { %v1177_v42 = vadd.f32 %v1157_v37, %v1156_v36  ;;  %v913_v37 = vmul.f32 %v897_v31, %v3803_v5  ;;  %v1055_v31 = vld [vmem:[#allocation3 + $0x218] sm:$0xff] }
  0x64   : > { %v1015_v43 = vadd.f32 %v997_v39, %v996_v38  ;;  %v1394_v38 = vmul.f32 %v1378_v32, %v3801_v4  ;;  %v1395_v39 = vmul.f32 %v1379_v33, %v3803_v5 }
  0x68   : > { %1103 = vadd.xlane.f32.xlu0 %v1102_v44  ;;  %780 = vadd.xlane.f32.xlu2 %v779_v45  ;;  %v1220_v44 = vld [vmem:[#allocation3 + $0x360] sm:$0xff]  ;;  %v1096_v45 = vadd.f32 %v1077_v41, %v1076_v40 }
  0x69   : > { %1184 = vadd.xlane.f32.xlu1 %v1183_v47  ;;  %v736_v47 = vld [vmem:[#allocation3] sm:$0xff]  ;;  %v1236_v51 = vmul.f32 %v1220_v44, %v3801_v4  ;;  %v977_v44 = vld [vmem:[#allocation3 + $0x198] sm:$0xff] }
  0x6a   : > { %v757_v53 = vmul.f32 %v3801_v4, %v736_v47  ;;  %v1056_v47 = vld [vmem:[#allocation3 + $0x220] sm:$0xff]  ;;  %v993_v50 = vmul.f32 %v977_v44, %v3803_v5 }
  0x6b   : > { %v1258_v57 = vadd.f32 %v1237_v52, %v1236_v51  ;;  %v1153_v52 = vmul.f32 %v1137_v46, %v3803_v5 }
  0x6c   : > { %v773_v58 = vadd.f32 %v758_v54, %v757_v53  ;;  %v1072_v53 = vmul.f32 %v1056_v47, %v3801_v4  ;;  %v1073_v54 = vmul.f32 %v1057_v48, %v3803_v5 }
  0x6e   : > { %v1090_v61 = vadd.f32 %v1073_v54, %v1072_v53  ;;  %v1374_v53 = vld [vmem:[#allocation3 + $0x450] sm:$0xff]  ;;  %v1375_v54 = vld [vmem:[#allocation3 + $0x458] sm:$0xff] }
  0x70   : > { %857 = vadd.xlane.f32.xlu0 %v856_v59  ;;  %1019 = vadd.xlane.f32.xlu2 %v1018_v60  ;;  %v818_v59 = vld [vmem:[#allocation3 + $0x80] sm:$0xff]  ;;  %v1339_v60 = vadd.f32 %v1317_v56, %v1316_v55 }
  0x71   : > { %938 = vadd.xlane.f32.xlu1 %v937_v62  ;;  %v978_v62 = vld [vmem:[#allocation3 + $0x1a0] sm:$0xff]  ;;  %v834_v2 = vmul.f32 %v818_v59, %v3801_v4 }
  0x72   : > { %v994_v6 = vmul.f32 %v978_v62, %v3801_v4  ;;  %v1217_v62 = vld [vmem:[#allocation3 + $0x348] sm:$0xff] }
  0x73   : > { %v850_v10 = vadd.f32 %v835_v3, %v834_v2  ;;  %v1297_v2 = vld [vmem:[#allocation3 + $0x3d8] sm:$0xff] }
  0x74   : > { %v1012_v11 = vadd.f32 %v995_v7, %v994_v6  ;;  %v3905_v6 = vld [vmem:[%s4451_s28] ss:$0 sm:$0xff]  ;;  %v3910_v7 = vld [vmem:[%s4451_s28 + $0x1] ss:$0 sm:$0xff] }
  0x78   : > { %1100 = vadd.xlane.f32.xlu0 %v1099_v12  ;;  %1262 = vadd.xlane.f32.xlu2 %v1261_v13  ;;  %v1058_v12 = vld [vmem:[#allocation3 + $0x230] sm:$0xff]  ;;  %v931_v13 = vadd.f32 %v915_v9, %v914_v8  ;;  %v1233_v8 = vmul.f32 %v1217_v62, %v3803_v5  ;;  %v1392_v9 = vmul.f32 %v1376_v63, %v3801_v4 }
  0x79   : > { %1181 = vadd.xlane.f32.xlu1 %v1180_v15  ;;  %v1218_v15 = vld [vmem:[#allocation3 + $0x350] sm:$0xff]  ;;  %v1074_v19 = vmul.f32 %v1058_v12, %v3801_v4  ;;  %v1313_v12 = vmul.f32 %v1297_v2, %v3803_v5  ;;  %v1390_v62 = vmul.f32 %v1374_v53, %v3801_v4  ;;  %v1391_v63 = vmul.f32 %v1375_v54, %v3803_v5 }
  0x7a   : > { %v1234_v21 = vmul.f32 %v1218_v15, %v3801_v4 }
  0x7b   : > { %v1093_v25 = vadd.f32 %v1075_v20, %v1074_v19 }
  0x7c   : > { %v1255_v26 = vadd.f32 %v1235_v22, %v1234_v21  ;;  %v974_v21 = vld [vmem:[#allocation3 + $0x180] sm:$0xff]  ;;  %v975_v22 = vld [vmem:[#allocation3 + $0x188] sm:$0xff] }
  0x7d   : > { %v990_v33 = vmul.f32 %v974_v21, %v3801_v4  ;;  %v1132_v21 = vld [vmem:[#allocation3 + $0x290] sm:$0xff] }
  0x80   : > { %935 = vadd.xlane.f32.xlu2 %v934_v27  ;;  %777 = vadd.xlane.f32.xlu0 %v776_v28  ;;  %v1298_v27 = vld [vmem:[#allocation3 + $0x3e0] sm:$0xff]  ;;  %v1174_v28 = vadd.f32 %v1155_v24, %v1154_v23 }
  0x81   : > { %854 = vadd.xlane.f32.xlu1 %v853_v30  ;;  %v896_v30 = vld [vmem:[#allocation3 + $0x100] sm:$0xff]  ;;  %v1314_v34 = vmul.f32 %v1298_v27, %v3801_v4  ;;  %v1135_v27 = vld [vmem:[#allocation3 + $0x2a8] sm:$0xff] }
  0x82   : > { %v912_v36 = vmul.f32 %v896_v30, %v3801_v4  ;;  %v1054_v30 = vld [vmem:[#allocation3 + $0x210] sm:$0xff] }
  0x83   : > { %v1336_v40 = vadd.f32 %v1315_v35, %v1314_v34  ;;  %v991_v34 = vmul.f32 %v975_v22, %v3803_v5  ;;  %v1133_v22 = vld [vmem:[#allocation3 + $0x298] sm:$0xff] }
  0x84   : > { %v928_v41 = vadd.f32 %v913_v37, %v912_v36  ;;  %v3932_v36 = vld [vmem:[%s4451_s28 + $0x3] ss:$0 sm:$0xff] }
  0x88   : > { %1178 = vadd.xlane.f32.xlu2 %v1177_v42  ;;  %1016 = vadd.xlane.f32.xlu0 %v1015_v43  ;;  %v976_v42 = vld [vmem:[#allocation3 + $0x190] sm:$0xff]  ;;  %v1417_v43 = vadd.f32 %v1395_v39, %v1394_v38  ;;  %v1151_v38 = vmul.f32 %v1135_v27, %v3803_v5  ;;  %v1070_v39 = vmul.f32 %v1054_v30, %v3801_v4 }
  0x89   : > { %1097 = vadd.xlane.f32.xlu1 %v1096_v45  ;;  %v1136_v45 = vld [vmem:[#allocation3 + $0x2b0] sm:$0xff]  ;;  %v992_v49 = vmul.f32 %v976_v42, %v3801_v4  ;;  %v1149_v30 = vmul.f32 %v1133_v22, %v3803_v5 }
  0x8a   : > { %v1152_v51 = vmul.f32 %v1136_v45, %v3801_v4 }
  0x8c   : > { %v1171_v59 = vadd.f32 %v1153_v52, %v1152_v51  ;;  %v1215_v52 = vld [vmem:[#allocation3 + $0x338] sm:$0xff] }
  0x90   : > { %1259 = vadd.xlane.f32.xlu0 %v1258_v57  ;;  %774 = vadd.xlane.f32.xlu2 %v773_v58  ;;  %v1009_v58 = vadd.f32 %v993_v50, %v992_v49  ;;  %v1214_v49 = vld [vmem:[#allocation3 + $0x330] sm:$0xff] }
  0x91   : > { %1340 = vadd.xlane.f32.xlu1 %v1339_v60  ;;  %v1216_v60 = vld [vmem:[#allocation3 + $0x340] sm:$0xff] }
  0x92   : > { %v1232_v3 = vmul.f32 %v1216_v60, %v3801_v4  ;;  %v1230_v60 = vmul.f32 %v1214_v49, %v3801_v4 }
  0x94   : > { %v1252_v19 = vadd.f32 %v1233_v8, %v1232_v3 }
  0x98   : > { %851 = vadd.xlane.f32.xlu0 %v850_v10  ;;  %1013 = vadd.xlane.f32.xlu2 %v1012_v11  ;;  %v1393_v10 = vmul.f32 %v1377_v0, %v3803_v5  ;;  %v1312_v11 = vmul.f32 %v1296_v1, %v3801_v4 }
  0x99   : > { %932 = vadd.xlane.f32.xlu1 %v931_v13  ;;  %v3920_v13 = vld [vmem:[%s4451_s28 + $0x2] ss:$0 sm:$0xff] }
  0x9a   : > { %v1414_v20 = vadd.f32 %v1393_v10, %v1392_v9 }
  0xa0   : > { %1094 = vadd.xlane.f32.xlu0 %v1093_v25  ;;  %1256 = vadd.xlane.f32.xlu2 %v1255_v26  ;;  %v1333_v25 = vadd.f32 %v1313_v12, %v1312_v11  ;;  %v1134_v26 = vld [vmem:[#allocation3 + $0x2a0] sm:$0xff]  ;;  %v1411_v12 = vadd.f32 %v1391_v63, %v1390_v62  ;;  %v1210_v62 = vld [vmem:[#allocation3 + $0x310] sm:$0xff] }
  0xa1   : > { %1175 = vadd.xlane.f32.xlu1 %v1174_v28  ;;  %v1150_v37 = vmul.f32 %v1134_v26, %v3801_v4 }
  0xa3   : > { %v1168_v48 = vadd.f32 %v1151_v38, %v1150_v37  ;;  %v1292_v38 = vld [vmem:[#allocation3 + $0x3b0] sm:$0xff] }
  0xa8   : > { %1337 = vadd.xlane.f32.xlu0 %v1336_v40  ;;  %929 = vadd.xlane.f32.xlu2 %v928_v41  ;;  %v1071_v40 = vmul.f32 %v1055_v31, %v3803_v5 }
  0xa9   : > { %1418 = vadd.xlane.f32.xlu1 %v1417_v43  ;;  %v1006_v43 = vadd.f32 %v991_v34, %v990_v33 }
  0xaa   : > { %v1087_v51 = vadd.f32 %v1071_v40, %v1070_v39  ;;  %v1293_v39 = vld [vmem:[#allocation3 + $0x3b8] sm:$0xff] }
  0xab   : > { %v951_v55 = vpop.xlane.xlu2 %950  ;;  %v796_v56 = vpop.xlane.xlu0 %795  ;;  %v1309_v49 = vmul.f32 %v1293_v39, %v3803_v5 }
  0xac   : > { %v793_v57 = vpop.xlane.xlu1 %792  ;;  %v808_v16 = vmul.f32 %v3905_v6, %v796_v56  ;;  %v964_v28 = vmul.f32 %v3920_v13, %v951_v55 }
  0xad   : > { %v807_v23 = vmul.f32 %v3905_v6, %v793_v57  ;;  %v1294_v57 = vld [vmem:[#allocation3 + $0x3c0] sm:$0xff] }
  0xae   : > { %v1310_v0 = vmul.f32 %v1294_v57, %v3801_v4 }
  0xb0   : > { %1010 = vadd.xlane.f32.xlu0 %v1009_v58  ;;  %1172 = vadd.xlane.f32.xlu2 %v1171_v59  ;;  %v1295_v58 = vld [vmem:[#allocation3 + $0x3c8] sm:$0xff] }
  0xb1   : > { %1091 = vadd.xlane.f32.xlu1 %v1090_v61  ;;  %v1231_v61 = vmul.f32 %v1215_v52, %v3803_v5  ;;  %v1311_v1 = vmul.f32 %v1295_v58, %v3803_v5 }
  0xb3   : > { %v873_v14 = vpop.xlane.xlu0 %872  ;;  %v790_v15 = vpop.xlane.xlu2 %789  ;;  %v1249_v11 = vadd.f32 %v1231_v61, %v1230_v60 }
  0xb4   : > { %v886_v17 = vmul.f32 %v3910_v7, %v873_v14  ;;  %v870_v18 = vpop.xlane.xlu1 %869  ;;  %v806_v44 = vmul.f32 %v3905_v6, %v790_v15  ;;  %v1052_v14 = vld [vmem:[#allocation3 + $0x200] sm:$0xff] }
  0xb5   : > { %v885_v24 = vmul.f32 %v3910_v7, %v870_v18  ;;  %v1212_v18 = vld [vmem:[#allocation3 + $0x320] sm:$0xff] }
  0xb6   : > { %v894_v29 = vadd.f32 %v886_v17, %v808_v16  ;;  %v1330_v16 = vadd.f32 %v1311_v1, %v1310_v0  ;;  %v1053_v17 = vld [vmem:[#allocation3 + $0x208] sm:$0xff]  ;;  %v1228_v26 = vmul.f32 %v1212_v18, %v3801_v4  ;;  %v1211_v1 = vld [vmem:[#allocation3 + $0x318] sm:$0xff] }
  0xb7   : > { %v893_v32 = vadd.f32 %v885_v24, %v807_v23  ;;  %v1068_v24 = vmul.f32 %v1052_v14, %v3801_v4  ;;  %v1226_v14 = vmul.f32 %v1210_v62, %v3801_v4 }
  0xb8   : > { %1253 = vadd.xlane.f32.xlu0 %v1252_v19  ;;  %1415 = vadd.xlane.f32.xlu2 %v1414_v20  ;;  %v972_v35 = vadd.f32 %v964_v28, %v894_v29  ;;  %v1213_v19 = vld [vmem:[#allocation3 + $0x328] sm:$0xff]  ;;  %v3958_v28 = vld [vmem:[%s4451_s28 + $0x4] ss:$0 sm:$0xff]  ;;  %v1148_v29 = vmul.f32 %v1132_v21, %v3801_v4 }
  0xb9   : > { %1334 = vadd.xlane.f32.xlu1 %v1333_v25  ;;  %v1069_v25 = vmul.f32 %v1053_v17, %v3803_v5  ;;  %v1229_v27 = vmul.f32 %v1213_v19, %v3803_v5 }
  0xbb   : > { %v867_v41 = vpop.xlane.xlu0 %866  ;;  %v1029_v42 = vpop.xlane.xlu2 %1028  ;;  %v1246_v37 = vadd.f32 %v1229_v27, %v1228_v26  ;;  %v1208_v26 = vld [vmem:[#allocation3 + $0x300] sm:$0xff]  ;;  %v1209_v27 = vld [vmem:[#allocation3 + $0x308] sm:$0xff] }
  0xbc   : > { %v884_v45 = vmul.f32 %v3910_v7, %v867_v41  ;;  %v948_v46 = vpop.xlane.xlu1 %947  ;;  %v1042_v47 = vmul.f32 %v3932_v36, %v1029_v42  ;;  %v1165_v41 = vadd.f32 %v1149_v30, %v1148_v29  ;;  %v1130_v42 = vld [vmem:[#allocation3 + $0x280] sm:$0xff] }
  0xbd   : > { %v963_v50 = vmul.f32 %v3920_v13, %v948_v46  ;;  %v1373_v46 = vld [vmem:[#allocation3 + $0x448] sm:$0xff]  ;;  %v1368_v30 = vld [vmem:[#allocation3 + $0x420] sm:$0xff] }
  0xbe   : > { %v892_v55 = vadd.f32 %v884_v45, %v806_v44  ;;  %v1050_v56 = vadd.f32 %v1042_v47, %v972_v35  ;;  %v1084_v35 = vadd.f32 %v1069_v25, %v1068_v24  ;;  %v1372_v45 = vld [vmem:[#allocation3 + $0x440] sm:$0xff]  ;;  %v1389_v53 = vmul.f32 %v1373_v46, %v3803_v5 }
  0xbf   : > { %v971_v59 = vadd.f32 %v963_v50, %v893_v32  ;;  %v1146_v50 = vmul.f32 %v1130_v42, %v3801_v4  ;;  %v1388_v52 = vmul.f32 %v1372_v45, %v3801_v4 }
  0xc0   : > { %1007 = vadd.xlane.f32.xlu0 %v1006_v43  ;;  %1169 = vadd.xlane.f32.xlu2 %v1168_v48  ;;  %v1131_v43 = vld [vmem:[#allocation3 + $0x288] sm:$0xff]  ;;  %v1308_v48 = vmul.f32 %v1292_v38, %v3801_v4  ;;  %v1384_v38 = vmul.f32 %v1368_v30, %v3801_v4 }
  0xc1   : > { %1088 = vadd.xlane.f32.xlu1 %v1087_v51  ;;  %v1147_v51 = vmul.f32 %v1131_v43, %v3803_v5  ;;  %v1408_v0 = vadd.f32 %v1389_v53, %v1388_v52 }
  0xc2   : > { %v1327_v57 = vadd.f32 %v1309_v49, %v1308_v48 }
  0xc3   : > { %v945_v2 = vpop.xlane.xlu2 %944  ;;  %v787_v3 = vpop.xlane.xlu0 %786  ;;  %v1162_v61 = vadd.f32 %v1147_v51, %v1146_v50  ;;  %v1286_v51 = vld [vmem:[#allocation3 + $0x380] sm:$0xff] }
  0xc4   : > { %v864_v8 = vpop.xlane.xlu1 %863  ;;  %v962_v9 = vmul.f32 %v3920_v13, %v945_v2  ;;  %v805_v10 = vmul.f32 %v3905_v6, %v787_v3  ;;  %v1370_v2 = vld [vmem:[#allocation3 + $0x430] sm:$0xff]  ;;  %v1371_v3 = vld [vmem:[#allocation3 + $0x438] sm:$0xff]  ;;  %v1302_v62 = vmul.f32 %v1286_v51, %v3801_v4 }
  0xc5   : > { %v883_v15 = vmul.f32 %v3910_v7, %v864_v8  ;;  %v1387_v17 = vmul.f32 %v1371_v3, %v3803_v5 }
  0xc6   : > { %v970_v20 = vadd.f32 %v962_v9, %v892_v55 }
  0xc7   : > { %v891_v23 = vadd.f32 %v883_v15, %v805_v10  ;;  %v1290_v10 = vld [vmem:[#allocation3 + $0x3a0] sm:$0xff]  ;;  %v1227_v15 = vmul.f32 %v1211_v1, %v3803_v5 }
  0xc8   : > { %1250 = vadd.xlane.f32.xlu0 %v1249_v11  ;;  %1412 = vadd.xlane.f32.xlu2 %v1411_v12  ;;  %v1291_v11 = vld [vmem:[#allocation3 + $0x3a8] sm:$0xff]  ;;  %v1306_v18 = vmul.f32 %v1290_v10, %v3801_v4 }
  0xc9   : > { %1331 = vadd.xlane.f32.xlu1 %v1330_v16  ;;  %v1386_v16 = vmul.f32 %v1370_v2, %v3801_v4  ;;  %v1307_v19 = vmul.f32 %v1291_v11, %v3803_v5  ;;  %v1243_v24 = vadd.f32 %v1227_v15, %v1226_v14 }
  0xcb   : > { %v1026_v31 = vpop.xlane.xlu0 %1025  ;;  %v784_v32 = vpop.xlane.xlu2 %783  ;;  %v1405_v25 = vadd.f32 %v1387_v17, %v1386_v16  ;;  %v1324_v29 = vadd.f32 %v1307_v19, %v1306_v18 }
  0xcc   : > { %v1107_v33 = vpop.xlane.xlu1 %1106  ;;  %v1041_v34 = vmul.f32 %v3932_v36, %v1026_v31  ;;  %v1369_v31 = vld [vmem:[#allocation3 + $0x428] sm:$0xff] }
  0xcd   : > { %v1120_v40 = vmul.f32 %v3958_v28, %v1107_v33  ;;  %v1288_v33 = vld [vmem:[#allocation3 + $0x390] sm:$0xff]  ;;  %v1385_v39 = vmul.f32 %v1369_v31, %v3803_v5 }
  0xce   : > { %v1049_v44 = vadd.f32 %v1041_v34, %v971_v59  ;;  %v1289_v34 = vld [vmem:[#allocation3 + $0x398] sm:$0xff] }
  0xcf   : > { %v3964_v47 = vadd.f32 %v1120_v40, %v1050_v56  ;;  %v804_v56 = vmul.f32 %v3905_v6, %v784_v32  ;;  %v1304_v40 = vmul.f32 %v1288_v33, %v3801_v4  ;;  %v1402_v50 = vadd.f32 %v1385_v39, %v1384_v38  ;;  %v1536_v38 = vld [vmem:[#allocation7 + $0x10] sm:$0xff] }
  0xd0   : > { %1085 = vadd.xlane.f32.xlu0 %v1084_v35  ;;  %1247 = vadd.xlane.f32.xlu2 %v1246_v37  ;;  %v1224_v35 = vmul.f32 %v1208_v26, %v3801_v4  ;;  %v1225_v37 = vmul.f32 %v1209_v27, %v3803_v5 }
  0xd1   : > { %1166 = vadd.xlane.f32.xlu1 %v1165_v41  ;;  %v1305_v41 = vmul.f32 %v1289_v34, %v3803_v5 }
  0xd3   : > { %v861_v54 = vpop.xlane.xlu0 %860  ;;  %v1023_v55 = vpop.xlane.xlu2 %1022  ;;  %v1321_v53 = vadd.f32 %v1305_v41, %v1304_v40 }
  0xd4   : > { %v942_v58 = vpop.xlane.xlu1 %941  ;;  %v882_v59 = vmul.f32 %v3910_v7, %v861_v54  ;;  %v1040_v60 = vmul.f32 %v3932_v36, %v1023_v55  ;;  %v1287_v54 = vld [vmem:[#allocation3 + $0x388] sm:$0xff]  ;;  %v1364_v55 = vld [vmem:[#allocation3 + $0x400] sm:$0xff] }
  0xd5   : > { %v961_v63 = vmul.f32 %v3920_v13, %v942_v58 }
  0xd6   : > { %v890_v8 = vadd.f32 %v882_v59, %v804_v56  ;;  %v3976_v9 = vadd.f32 %v1040_v60, %v970_v20  ;;  %v1366_v59 = vld [vmem:[#allocation3 + $0x410] sm:$0xff]  ;;  %v1367_v60 = vld [vmem:[#allocation3 + $0x418] sm:$0xff] }
  0xd7   : > { %v969_v12 = vadd.f32 %v961_v63, %v891_v23  ;;  %v1303_v63 = vmul.f32 %v1287_v54, %v3803_v5  ;;  %v1382_v2 = vmul.f32 %v1366_v59, %v3801_v4  ;;  %v1383_v3 = vmul.f32 %v1367_v60, %v3803_v5  ;;  %v4049_v54 = vld [vmem:[%s4451_s28 + $0x7] ss:$0 sm:$0xff] }
  0xd8   : > { %1328 = vadd.xlane.f32.xlu0 %v1327_v57  ;;  %1163 = vadd.xlane.f32.xlu2 %v1162_v61  ;;  %v1365_v57 = vld [vmem:[#allocation3 + $0x408] sm:$0xff] }
  0xd9   : > { %1409 = vadd.xlane.f32.xlu1 %v1408_v0  ;;  %v1380_v0 = vmul.f32 %v1364_v55, %v3801_v4  ;;  %v1381_v1 = vmul.f32 %v1365_v57, %v3803_v5  ;;  %v1318_v14 = vadd.f32 %v1303_v63, %v1302_v62  ;;  %v1399_v16 = vadd.f32 %v1383_v3, %v1382_v2  ;;  %v4064_v63 = vld [vmem:[%s4452_s4] ss:$0 sm:$0xff] }
  0xdb   : > { %v1104_v20 = vpop.xlane.xlu0 %1103  ;;  %v781_v21 = vpop.xlane.xlu2 %780  ;;  %v1396_v15 = vadd.f32 %v1381_v1, %v1380_v0 }
  0xdc   : > { %v3984_v22 = vpop.xlane.xlu1 %1184  ;;  %v1119_v23 = vmul.f32 %v3958_v28, %v1104_v20  ;;  %v803_v45 = vmul.f32 %v3905_v6, %v781_v21 }
  0xde   : > { %v3987_v32 = vadd.f32 %v1119_v23, %v1049_v44  ;;  %v1240_v44 = vadd.f32 %v1225_v37, %v1224_v35  ;;  %v1537_v35 = vld [vmem:[#allocation7 + $0x18] sm:$0xff] }
  0xdf   : > { %1559 = vmatpush.msra.mxu2 %v1537_v35 }
  0xe0   : > { %1244 = vadd.xlane.f32.xlu0 %v1243_v24  ;;  %1406 = vadd.xlane.f32.xlu2 %v1405_v25 }
  0xe1   : > { %1325 = vadd.xlane.f32.xlu1 %v1324_v29  ;;  %1560 = vmatpush.msra.mxu2 %v1536_v38 }
  0xe3   : > { %v858_v42 = vpop.xlane.xlu0 %857  ;;  %v1020_v43 = vpop.xlane.xlu2 %1019 }
  0xe4   : > { %v939_v46 = vpop.xlane.xlu1 %938  ;;  %v881_v48 = vmul.f32 %v3910_v7, %v858_v42  ;;  %v1039_v49 = vmul.f32 %v3932_v36, %v1020_v43 }
  0xe5   : > { %v960_v52 = vmul.f32 %v3920_v13, %v939_v46 }
  0xe6   : > { %v889_v56 = vadd.f32 %v881_v48, %v803_v45  ;;  %v1047_v58 = vadd.f32 %v1039_v49, %v969_v12 }
  0xe7   : > { %v968_v61 = vadd.f32 %v960_v52, %v890_v8 }
  0xe8   : > { %1241 = vadd.xlane.f32.xlu0 %v1240_v44  ;;  %1403 = vadd.xlane.f32.xlu2 %v1402_v50  ;;  %v4035_v50 = vld [vmem:[%s4451_s28 + $0x5] ss:$0 sm:$0xff] }
  0xe9   : > { %1322 = vadd.xlane.f32.xlu1 %v1321_v53  ;;  %v1198_v53 = vmul.f32 %v4035_v50, %v3984_v22 }
  0xeb   : > { %v1101_v10 = vpop.xlane.xlu0 %1100  ;;  %v1263_v11 = vpop.xlane.xlu2 %1262  ;;  %v1206_v57 = vadd.f32 %v1198_v53, %v3964_v47 }
  0xec   : > { %v4005_v12 = vpop.xlane.xlu1 %1181  ;;  %v1118_v8 = vmul.f32 %v3958_v28, %v1101_v10 }
  0xee   : > { %v4009_v17 = vadd.f32 %v1118_v8, %v3976_v9 }
  0xf0   : > { %1319 = vadd.xlane.f32.xlu0 %v1318_v14  ;;  %1397 = vadd.xlane.f32.xlu2 %v1396_v15 }
  0xf1   : > { %1400 = vadd.xlane.f32.xlu1 %v1399_v16 }
  0xf3   : > { %v936_v18 = vpop.xlane.xlu2 %935  ;;  %v778_v19 = vpop.xlane.xlu0 %777 }
  0xf4   : > { %v855_v4 = vpop.xlane.xlu1 %854  ;;  %v959_v5 = vmul.f32 %v3920_v13, %v936_v18  ;;  %v802_v20 = vmul.f32 %v3905_v6, %v778_v19 }
  0xf5   : > { %v880_v21 = vmul.f32 %v3910_v7, %v855_v4 }
  0xf6   : > { %v967_v23 = vadd.f32 %v959_v5, %v889_v56 }
  0xf7   : > { %v888_v24 = vadd.f32 %v880_v21, %v802_v20 }
  0xfb   : > { %v4014_v25 = vpop.xlane.xlu2 %1178  ;;  %v1017_v26 = vpop.xlane.xlu0 %1016 }
  0xfc   : > { %v1098_v27 = vpop.xlane.xlu1 %1097  ;;  %v1038_v9 = vmul.f32 %v3932_v36, %v1017_v26 }
  0xfd   : > { %v1117_v29 = vmul.f32 %v3958_v28, %v1098_v27 }
  0xfe   : > { %v4018_v30 = vadd.f32 %v1038_v9, %v968_v61 }
  0xff   : > { %v4020_v31 = vadd.f32 %v1117_v29, %v1047_v58  ;;  %v4057_v58 = vld [vmem:[%s4451_s28 + $0x8] ss:$0 sm:$0xff] }
 0x103   : > { %v1260_v33 = vpop.xlane.xlu0 %1259  ;;  %v775_v34 = vpop.xlane.xlu2 %774 }
 0x104   : > { %v1341_v37 = vpop.xlane.xlu1 %1340  ;;  %v801_v41 = vmul.f32 %v3905_v6, %v775_v34  ;;  %v4040_v6 = vld [vmem:[%s4451_s28 + $0x6] ss:$0 sm:$0xff] }
 0x105   : > { %v1276_v55 = vmul.f32 %v4040_v6, %v1263_v11  ;;  %v1354_v56 = vmul.f32 %v4049_v54, %v1341_v37  ;;  %v1197_v11 = vmul.f32 %v4035_v50, %v4005_v12  ;;  %v1275_v15 = vmul.f32 %v4040_v6, %v1260_v33 }
 0x107   : > { %v1284_v59 = vadd.f32 %v1276_v55, %v1206_v57  ;;  %v1205_v16 = vadd.f32 %v1197_v11, %v3987_v32  ;;  %v1196_v32 = vmul.f32 %v4035_v50, %v4014_v25 }
 0x109   : > { %v1362_v62 = vadd.f32 %v1354_v56, %v1284_v59  ;;  %v1283_v19 = vadd.f32 %v1275_v15, %v1205_v16  ;;  %v1204_v35 = vadd.f32 %v1196_v32, %v4009_v17 }
 0x10b   : > { %v852_v39 = vpop.xlane.xlu0 %851  ;;  %v1014_v40 = vpop.xlane.xlu2 %1013 }
 0x10c   : > { %v933_v42 = vpop.xlane.xlu1 %932  ;;  %v879_v43 = vmul.f32 %v3910_v7, %v852_v39  ;;  %v1037_v44 = vmul.f32 %v3932_v36, %v1014_v40 }
 0x10d   : > { %v958_v45 = vmul.f32 %v3920_v13, %v933_v42 }
 0x10e   : > { %v4026_v46 = vadd.f32 %v879_v43, %v801_v41  ;;  %v4028_v48 = vadd.f32 %v1037_v44, %v967_v23 }
 0x10f   : > { %v4030_v49 = vadd.f32 %v958_v45, %v888_v24 }
 0x113   : > { %v4042_v7 = vpop.xlane.xlu0 %1094  ;;  %v1257_v51 = vpop.xlane.xlu2 %1256 }
 0x114   : > { %v1176_v52 = vpop.xlane.xlu1 %1175  ;;  %v1274_v34 = vmul.f32 %v4040_v6, %v1257_v51 }
 0x115   : > { %v1195_v17 = vmul.f32 %v4035_v50, %v1176_v52 }
 0x116   : > { %v1282_v38 = vadd.f32 %v1274_v34, %v1204_v35 }
 0x117   : > { %v1203_v59 = vadd.f32 %v1195_v17, %v4020_v31 }
 0x11b   : > { %v1338_v60 = vpop.xlane.xlu0 %1337  ;;  %v4059_v61 = vpop.xlane.xlu2 %929 }
 0x11c   : > { %v1419_v22 = vpop.xlane.xlu1 %1418  ;;  %v1353_v18 = vmul.f32 %v4049_v54, %v1338_v60 }
 0x11d   : > { %v1432_v47 = vmul.f32 %v4057_v58, %v1419_v22  ;;  %v1116_v22 = vmul.f32 %v3958_v28, %v4042_v7 }
 0x11e   : > { %v1361_v20 = vadd.f32 %v1353_v18, %v1283_v19 }
 0x11f   : > { %v1440_v0 = vadd.f32 %v1432_v47, %v1362_v62  ;;  %v1124_v15 = vadd.f32 %v1116_v22, %v4018_v30 }
 0x121   : > { %v1452_v1 = vadd.f32 %v4064_v63, %v1440_v0 }
 0x123   : > { %v1460_v2 = vmul.f32 0.2, %v1452_v1  ;;  %v4068_v3 = vpop.xlane.xlu0 %1010  ;;  %v1173_v10 = vpop.xlane.xlu2 %1172 }
 0x124   : > { %v1092_v8 = vpop.xlane.xlu1 %1091  ;;  %v1194_v52 = vmul.f32 %v4035_v50, %v1173_v10 }
 0x125   : > { %v4072_v14 = vmax.f32 %v1452_v1, %v1460_v2  ;;  %v1115_v7 = vmul.f32 %v3958_v28, %v1092_v8  ;;  %v957_v8 = vmul.f32 %v3920_v13, %v4059_v61 }
 0x126   : > { %v1202_v31 = vadd.f32 %v1194_v52, %v1124_v15 }
 0x127   : > { %1486 = vmatpush.msra.mxu0 %v4072_v14  ;;  %1520 = vmatpush.msra.mxu1 %v4072_v14  ;;  %v1123_v32 = vadd.f32 %v1115_v7, %v4028_v48  ;;  %v1036_v48 = vmul.f32 %v3932_v36, %v4068_v3  ;;  %v965_v13 = vadd.f32 %v957_v8, %v4026_v46 }
 0x128   : > { %1614 = vmatpush.msrb.mxu2 %v4072_v14 }
 0x129   : > { %v1044_v17 = vadd.f32 %v1036_v48, %v4030_v49  ;;  %v1797_v48 = vld [vmem:[#allocation5 + $0x58] sm:$0xff] }
 0x12b   : > { %v1254_v4 = vpop.xlane.xlu0 %1253  ;;  %v1416_v5 = vpop.xlane.xlu2 %1415 }
 0x12c   : > { %v1335_v12 = vpop.xlane.xlu1 %1334  ;;  %v1431_v21 = vmul.f32 %v4057_v58, %v1416_v5  ;;  %v1273_v56 = vmul.f32 %v4040_v6, %v1254_v4 }
 0x12d   : > { %v1352_v37 = vmul.f32 %v4049_v54, %v1335_v12 }
 0x12e   : > { %v1439_v23 = vadd.f32 %v1431_v21, %v1361_v20  ;;  %v1281_v62 = vadd.f32 %v1273_v56, %v1203_v59 }
 0x12f   : > { %v1360_v25 = vadd.f32 %v1352_v37, %v1282_v38 }
 0x130   : > { %v1451_v24 = vadd.f32 %v4064_v63, %v1439_v23 }
 0x132   : > { %v1459_v26 = vmul.f32 0.2, %v1451_v24 }
 0x133   : > { %v4082_v27 = vpop.xlane.xlu0 %1007  ;;  %v1170_v9 = vpop.xlane.xlu2 %1169 }
 0x134   : > { %v4086_v29 = vmax.f32 %v1451_v24, %v1459_v26  ;;  %v4088_v33 = vpop.xlane.xlu1 %1088  ;;  %v1193_v21 = vmul.f32 %v4035_v50, %v1170_v9 }
 0x135   : > { %v1114_v61 = vmul.f32 %v3958_v28, %v4088_v33 }
 0x136   : > { %1487 = vmatpush.msra.mxu0 %v4086_v29  ;;  %1521 = vmatpush.msra.mxu1 %v4086_v29  ;;  %v1201_v37 = vadd.f32 %v1193_v21, %v1123_v32  ;;  %v1505_v21 = vld [vmem:[#allocation5 + $0x18] sm:$0xff]  ;;  %v1796_v32 = vld [vmem:[#allocation5 + $0x50] sm:$0xff] }
 0x137   : > { %1615 = vmatpush.msrb.mxu2 %v4086_v29  ;;  %v1122_v33 = vadd.f32 %v1114_v61, %v1044_v17  ;;  %v1994_v61 = vld [vmem:[#allocation5 + $0x80] sm:$0xff]  ;;  %v1829_v17 = vld [vmem:[#allocation7 + $0x58] sm:$0xff] }
 0x13b   : > { %v1251_v39 = vpop.xlane.xlu0 %1250  ;;  %v1413_v40 = vpop.xlane.xlu2 %1412 }
 0x13c   : > { %v1332_v41 = vpop.xlane.xlu1 %1331  ;;  %v1430_v42 = vmul.f32 %v4057_v58, %v1413_v40  ;;  %v1272_v16 = vmul.f32 %v4040_v6, %v1251_v39  ;;  %v1035_v39 = vmul.f32 %v3932_v36, %v4082_v27 }
 0x13d   : > { %v1351_v60 = vmul.f32 %v4049_v54, %v1332_v41 }
 0x13e   : > { %v1438_v43 = vadd.f32 %v1430_v42, %v1360_v25  ;;  %v1280_v5 = vadd.f32 %v1272_v16, %v1202_v31  ;;  %v1043_v27 = vadd.f32 %v1035_v39, %v965_v13  ;;  %v1928_v39 = vld [vmem:[#allocation5 + $0x70] sm:$0xff]  ;;  %v1730_v13 = vld [vmem:[#allocation5 + $0x40] sm:$0xff] }
 0x13f   : > { %v1359_v2 = vadd.f32 %v1351_v60, %v1281_v62 }
 0x140   : > { %v1450_v44 = vadd.f32 %v4064_v63, %v1438_v43 }
 0x142   : > { %v1458_v45 = vmul.f32 0.2, %v1450_v44 }
 0x143   : > { %v1086_v51 = vpop.xlane.xlu0 %1085  ;;  %v1248_v53 = vpop.xlane.xlu2 %1247 }
 0x144   : > { %v4098_v55 = vmax.f32 %v1450_v44, %v1458_v45  ;;  %v1167_v57 = vpop.xlane.xlu1 %1166  ;;  %v1271_v34 = vmul.f32 %v4040_v6, %v1248_v53  ;;  %v1113_v43 = vmul.f32 %v3958_v28, %v1086_v51 }
 0x145   : > { %v1192_v36 = vmul.f32 %v4035_v50, %v1167_v57 }
 0x146   : > { %1488 = vmatpush.msra.mxu0 %v4098_v55  ;;  %1522 = vmatpush.msra.mxu1 %v4098_v55  ;;  %v1279_v40 = vadd.f32 %v1271_v34, %v1201_v37  ;;  %v1121_v51 = vadd.f32 %v1113_v43, %v1043_v27  ;;  %v1501_v34 = vld [vmem:[#allocation7] sm:$0xff] }
 0x147   : > { %1616 = vmatpush.msrb.mxu2 %v4098_v55  ;;  %v1200_v60 = vadd.f32 %v1192_v36, %v1122_v33  ;;  %v1630_v43 = vld [vmem:[#allocation7 + $0x20] sm:$0xff] }
 0x148   : > { %v1762_v27 = vld [vmem:[#allocation7 + $0x40] sm:$0xff] }
 0x14b   : > { %v1329_v47 = vpop.xlane.xlu0 %1328  ;;  %v1164_v0 = vpop.xlane.xlu2 %1163 }
 0x14c   : > { %v1410_v1 = vpop.xlane.xlu1 %1409  ;;  %v1350_v19 = vmul.f32 %v4049_v54, %v1329_v47  ;;  %v1191_v46 = vmul.f32 %v4035_v50, %v1164_v0 }
 0x14d   : > { %v1429_v11 = vmul.f32 %v4057_v58, %v1410_v1 }
 0x14e   : > { %v1358_v23 = vadd.f32 %v1350_v19, %v1280_v5  ;;  %v1199_v22 = vadd.f32 %v1191_v46, %v1121_v51  ;;  %v1961_v51 = vld [vmem:[#allocation7 + $0x78] sm:$0xff] }
 0x14f   : > { %v1437_v18 = vadd.f32 %v1429_v11, %v1359_v2 }
 0x151   : > { %v1449_v4 = vadd.f32 %v4064_v63, %v1437_v18 }
 0x153   : > { %v1457_v20 = vmul.f32 0.2, %v1449_v4  ;;  %v1245_v12 = vpop.xlane.xlu0 %1244  ;;  %v1407_v10 = vpop.xlane.xlu2 %1406 }
 0x154   : > { %v1326_v24 = vpop.xlane.xlu1 %1325  ;;  %v1428_v30 = vmul.f32 %v4057_v58, %v1407_v10  ;;  %v1270_v28 = vmul.f32 %v4040_v6, %v1245_v12  ;;  %v1504_v10 = vld [vmem:[#allocation5 + $0x10] sm:$0xff] }
 0x155   : > { %v4118_v26 = vmax.f32 %v1449_v4, %v1457_v20  ;;  %v1349_v9 = vmul.f32 %v4049_v54, %v1326_v24  ;;  %v1665_v24 = vld [vmem:[#allocation5 + $0x38] sm:$0xff] }
 0x156   : > { %v1436_v35 = vadd.f32 %v1428_v30, %v1358_v23  ;;  %v1278_v62 = vadd.f32 %v1270_v28, %v1200_v60  ;;  %v1664_v23 = vld [vmem:[#allocation5 + $0x30] sm:$0xff]  ;;  %v1502_v30 = vld [vmem:[#allocation7 + $0x8] sm:$0xff] }
 0x157   : > { %1489 = vmatpush.msra.mxu0 %v4118_v26  ;;  %1523 = vmatpush.msra.mxu1 %v4118_v26  ;;  %v1357_v44 = vadd.f32 %v1349_v9, %v1279_v40  ;;  %v1599_v40 = vld [vmem:[#allocation5 + $0x28] sm:$0xff] }
 0x158   : > { %v1448_v38 = vadd.f32 %v4064_v63, %v1436_v35  ;;  %1617 = vmatpush.msrb.mxu2 %v4118_v26  ;;  %1588 = vmatpush.msra.mxu3 %v1502_v30 }
 0x15a   : > { %v1456_v25 = vmul.f32 0.2, %v1448_v38  ;;  %1589 = vmatpush.msra.mxu3 %v1501_v34 }
 0x15b   : > { %v1242_v41 = vpop.xlane.xlu0 %1241  ;;  %v1404_v42 = vpop.xlane.xlu2 %1403 }
 0x15c   : > { %v4137_v45 = vmax.f32 %v1448_v38, %v1456_v25  ;;  %v1323_v53 = vpop.xlane.xlu1 %1322  ;;  %v1427_v3 = vmul.f32 %v4057_v58, %v1404_v42  ;;  %v1269_v59 = vmul.f32 %v4040_v6, %v1242_v41  ;;  %v1598_v38 = vld [vmem:[#allocation5 + $0x20] sm:$0xff]  ;;  %v1929_v25 = vld [vmem:[#allocation5 + $0x78] sm:$0xff]  ;;  %v1731_v41 = vld [vmem:[#allocation5 + $0x48] sm:$0xff] }
 0x15d   : > { %v1348_v57 = vmul.f32 %v4049_v54, %v1323_v53  ;;  %v1862_v42 = vld [vmem:[#allocation5 + $0x60] sm:$0xff] }
 0x15e   : > { %v1435_v56 = vadd.f32 %v1427_v3, %v1357_v44  ;;  %1490 = vmatpush.msra.mxu0 %v4137_v45  ;;  %1524 = vmatpush.msra.mxu1 %v4137_v45  ;;  %v1277_v52 = vadd.f32 %v1269_v59, %v1199_v22  ;;  %v1763_v3 = vld [vmem:[#allocation7 + $0x48] sm:$0xff]  ;;  %v1894_v22 = vld [vmem:[#allocation7 + $0x60] sm:$0xff] }
 0x15f   : > { %1618 = vmatpush.msrb.mxu2 %v4137_v45  ;;  %v1356_v16 = vadd.f32 %v1348_v57, %v1278_v62  ;;  %v1895_v59 = vld [vmem:[#allocation7 + $0x68] sm:$0xff]  ;;  %v1960_v57 = vld [vmem:[#allocation7 + $0x70] sm:$0xff] }
 0x160   : > { %v1447_v49 = vadd.f32 %v4064_v63, %v1435_v56  ;;  %v1828_v56 = vld [vmem:[#allocation7 + $0x50] sm:$0xff] }
 0x162   : > { %v1455_v50 = vmul.f32 0.2, %v1447_v49 }
 0x163   : > { %v1320_v47 = vpop.xlane.xlu0 %1319  ;;  %v1398_v0 = vpop.xlane.xlu2 %1397 }
 0x164   : > { %v4150_v1 = vmax.f32 %v1447_v49, %v1455_v50  ;;  %v1401_v2 = vpop.xlane.xlu1 %1400  ;;  %v1347_v11 = vmul.f32 %v4049_v54, %v1320_v47  ;;  %v1425_v15 = vmul.f32 %v4057_v58, %v1398_v0  ;;  %v2027_v47 = vld [vmem:[#allocation7 + $0x88] sm:$0xff] }
 0x165   : > { %v1426_v6 = vmul.f32 %v4057_v58, %v1401_v2  ;;  %v1469_v58 = vld [vmem:[#allocation5] sm:$0xff] }
 0x166   : > { %v1355_v18 = vadd.f32 %v1347_v11, %v1277_v52  ;;  %1491 = vmatpush.msra.mxu0 %v4150_v1  ;;  %1525 = vmatpush.msra.mxu1 %v4150_v1  ;;  %v2026_v52 = vld [vmem:[#allocation7 + $0x80] sm:$0xff] }
 0x167   : > { %v1434_v31 = vadd.f32 %v1426_v6, %v1356_v16  ;;  %1619 = vmatpush.msrb.mxu2 %v4150_v1 }
 0x168   : > { %v1433_v19 = vadd.f32 %v1425_v15, %v1355_v18 }
 0x169   : > { %v1446_v4 = vadd.f32 %v4064_v63, %v1434_v31 }
 0x16a   : > { %v1445_v7 = vadd.f32 %v4064_v63, %v1433_v19  ;;  %v1470_v63 = vld [vmem:[#allocation5 + $0x8] sm:$0xff] }
 0x16b   : > { %v1454_v5 = vmul.f32 0.2, %v1446_v4 }
 0x16c   : > { %v1453_v54 = vmul.f32 0.2, %v1445_v7 }
 0x16d   : > { %v4160_v20 = vmax.f32 %v1446_v4, %v1454_v5 }
 0x16e   : > { %v4162_v12 = vmax.f32 %v1445_v7, %v1453_v54 }
 0x16f   : > { %1492 = vmatpush.msra.mxu0 %v4160_v20  ;;  %1526 = vmatpush.msra.mxu1 %v4160_v20 }
 0x170   : > { %1620 = vmatpush.msrb.mxu2 %v4160_v20 }
 0x171   : > { %1493 = vmatpush.msra.mxu0 %v4162_v12  ;;  %1527 = vmatpush.msra.mxu1 %v4162_v12 }
 0x172   : > { %1621 = vmatpush.msrb.mxu2 %v4162_v12  ;;  %3249 = vmatmul.msk.f32.vlgmr.msra.gmra.mxu0 %vm1471_vm0, %v1469_v58  ;;  %v2138_v58 = vld [vmem:[#allocation8 + $0x38] sm:$0xff] }
 0x173   : > { %3251 = vmatmul.msk.f32.vlgmr.msra.gmra.mxu1 %vm1471_vm0, %v1504_v10  ;;  %1680 = vmatpush.msrb.mxu0 %v4072_v14 }
 0x175   : > { %1681 = vmatpush.msrb.mxu0 %v4086_v29 }
 0x177   : > { %1682 = vmatpush.msrb.mxu0 %v4098_v55 }
 0x179   : > { %1683 = vmatpush.msrb.mxu0 %v4118_v26 }
 0x17a   : > { %3250 = vmatmul.msk.f32.gmra.mxu0 %vm1471_vm0, %v1470_v63 }
 0x17b   : > { %3252 = vmatmul.msk.f32.gmra.mxu1 %vm1471_vm0, %v1505_v21  ;;  %1684 = vmatpush.msrb.mxu0 %v4137_v45  ;;  %v2137_v21 = vld [vmem:[#allocation8 + $0x30] sm:$0xff] }
 0x17d   : > { %1685 = vmatpush.msrb.mxu0 %v4150_v1 }
 0x17f   : > { %1686 = vmatpush.msrb.mxu0 %v4160_v20 }
 0x181   : > { %1687 = vmatpush.msrb.mxu0 %v4162_v12 }
 0x182   : > { %3261 = vmatmul.msk.f32.vlgmr.msrb.gmra.mxu0 %vm1471_vm0, %v1664_v23 }
 0x183   : > { %1812 = vmatpush.msra.mxu0 %v4072_v14 }
 0x185   : > { %1813 = vmatpush.msra.mxu0 %v4086_v29 }
 0x187   : > { %1814 = vmatpush.msra.mxu0 %v4098_v55 }
 0x189   : > { %1815 = vmatpush.msra.mxu0 %v4118_v26 }
 0x18a   : > { %3262 = vmatmul.msk.f32.gmra.mxu0 %vm1471_vm0, %v1665_v24  ;;  %v2136_v24 = vld [vmem:[#allocation8 + $0x28] sm:$0xff] }
 0x18b   : > { %1816 = vmatpush.msra.mxu0 %v4137_v45 }
 0x18d   : > { %1817 = vmatpush.msra.mxu0 %v4150_v1 }
 0x18f   : > { %1818 = vmatpush.msra.mxu0 %v4160_v20 }
 0x191   : > { %1819 = vmatpush.msra.mxu0 %v4162_v12 }
 0x192   : > { %3269 = vmatmul.msk.f32.vlgmr.msra.gmra.mxu0 %vm1471_vm0, %v1796_v32  ;;  %v2135_v32 = vld [vmem:[#allocation8 + $0x20] sm:$0xff] }
 0x193   : > { %1944 = vmatpush.msrb.mxu0 %v4072_v14 }
 0x195   : > { %1945 = vmatpush.msrb.mxu0 %v4086_v29 }
 0x197   : > { %1946 = vmatpush.msrb.mxu0 %v4098_v55 }
 0x199   : > { %1947 = vmatpush.msrb.mxu0 %v4118_v26 }
 0x19a   : > { %3270 = vmatmul.msk.f32.gmra.mxu0 %vm1471_vm0, %v1797_v48 }
 0x19b   : > { %1948 = vmatpush.msrb.mxu0 %v4137_v45 }
 0x19d   : > { %1949 = vmatpush.msrb.mxu0 %v4150_v1 }
 0x19f   : > { %1950 = vmatpush.msrb.mxu0 %v4160_v20 }
 0x1a1   : > { %1951 = vmatpush.msrb.mxu0 %v4162_v12 }
 0x1a2   : > { %3277 = vmatmul.msk.f32.vlgmr.msrb.gmra.mxu0 %vm1471_vm0, %v1928_v39 }
 0x1a3   : > { %2010 = vmatpush.msra.mxu0 %v4072_v14 }
 0x1a5   : > { %2011 = vmatpush.msra.mxu0 %v4086_v29 }
 0x1a7   : > { %2012 = vmatpush.msra.mxu0 %v4098_v55 }
 0x1a9   : > { %2013 = vmatpush.msra.mxu0 %v4118_v26 }
 0x1aa   : > { %3278 = vmatmul.msk.f32.gmra.mxu0 %vm1471_vm0, %v1929_v25 }
 0x1ab   : > { %2014 = vmatpush.msra.mxu0 %v4137_v45 }
 0x1ad   : > { %2015 = vmatpush.msra.mxu0 %v4150_v1 }
 0x1af   : > { %2016 = vmatpush.msra.mxu0 %v4160_v20 }
 0x1b1   : > { %2017 = vmatpush.msra.mxu0 %v4162_v12 }
 0x1b2   : > { %3281 = vmatmul.msk.f32.vlgmr.msra.gmra.mxu0 %vm1471_vm0, %v1994_v61 }
 0x1ef   : > { %v1495_v35 = vpop.f32.mrf.mxu0 }
 0x1f0   : > { %v1529_v8 = vpop.f32.mrf.mxu1  ;;  %3255 = vmatmul.msk.f32.vlgmr.msra.gmra.mxu3 %vm1538_vm1, %v1495_v35 }
 0x1f1   : > { %3253 = vmatmul.msk.f32.vlgmr.msra.gmra.mxu2 %vm1538_vm1, %v1529_v8 }
 0x1f2   : > { %1746 = vmatpush.msra.mxu2 %v4072_v14 }
 0x1f4   : > { %1747 = vmatpush.msra.mxu2 %v4086_v29 }
 0x1f6   : > { %1748 = vmatpush.msra.mxu2 %v4098_v55 }
 0x1f7   : > { %v1498_v37 = vpop.f32.mrf.mxu0 }
 0x1f8   : > { %1749 = vmatpush.msra.mxu2 %v4118_v26  ;;  %v1532_v9 = vpop.f32.mrf.mxu1  ;;  %3256 = vmatmul.msk.f32.gmra.mxu3 %vm1538_vm1, %v1498_v37 }
 0x1f9   : > { %3254 = vmatmul.msk.f32.gmra.mxu2 %vm1538_vm1, %v1532_v9 }
 0x1fa   : > { %1750 = vmatpush.msra.mxu2 %v4137_v45 }
 0x1fc   : > { %1751 = vmatpush.msra.mxu2 %v4150_v1 }
 0x1fe   : > { %1752 = vmatpush.msra.mxu2 %v4160_v20 }
 0x1ff   : > { %v1689_v44 = vpop.f32.mrf.mxu0 }
 0x200   : > { %1753 = vmatpush.msra.mxu2 %v4162_v12 }
 0x201   : > { %3257 = vmatmul.msk.f32.vlgmr.msrb.gmra.mxu2 %vm1471_vm0, %v1598_v38 }
 0x202   : > { %1878 = vmatpush.msrb.mxu2 %v4072_v14 }
 0x204   : > { %1879 = vmatpush.msrb.mxu2 %v4086_v29 }
 0x206   : > { %1880 = vmatpush.msrb.mxu2 %v4098_v55 }
 0x207   : > { %v1692_v53 = vpop.f32.mrf.mxu0 }
 0x208   : > { %1881 = vmatpush.msrb.mxu2 %v4118_v26 }
 0x209   : > { %3258 = vmatmul.msk.f32.gmra.mxu2 %vm1471_vm0, %v1599_v40 }
 0x20a   : > { %1882 = vmatpush.msrb.mxu2 %v4137_v45 }
 0x20c   : > { %1883 = vmatpush.msrb.mxu2 %v4150_v1 }
 0x20e   : > { %1884 = vmatpush.msrb.mxu2 %v4160_v20 }
 0x20f   : > { %v1821_v46 = vpop.f32.mrf.mxu0 }
 0x210   : > { %1885 = vmatpush.msrb.mxu2 %v4162_v12 }
 0x211   : > { %3265 = vmatmul.msk.f32.vlgmr.msra.gmra.mxu2 %vm1471_vm0, %v1730_v13 }
 0x212   : > { %3348 = vmatpush.msra.mxu2 %v4072_v14  ;;  %v1863_v14 = vld [vmem:[#allocation5 + $0x68] sm:$0xff] }
 0x214   : > { %3349 = vmatpush.msra.mxu2 %v4086_v29  ;;  %v1995_v29 = vld [vmem:[#allocation5 + $0x88] sm:$0xff] }
 0x216   : > { %3350 = vmatpush.msra.mxu2 %v4098_v55  ;;  %v1631_v55 = vld [vmem:[#allocation7 + $0x28] sm:$0xff] }
 0x217   : > { %1652 = vmatpush.msrb.mxu3 %v1631_v55  ;;  %v1824_v28 = vpop.f32.mrf.mxu0 }
 0x218   : > { %3351 = vmatpush.msra.mxu2 %v4118_v26  ;;  %v1697_v26 = vld [vmem:[#allocation7 + $0x38] sm:$0xff] }
 0x219   : > { %3266 = vmatmul.msk.f32.gmra.mxu2 %vm1471_vm0, %v1731_v41  ;;  %1718 = vmatpush.msrb.mxu1 %v1697_v26 }
 0x21a   : > { %3352 = vmatpush.msra.mxu2 %v4137_v45  ;;  %v1696_v45 = vld [vmem:[#allocation7 + $0x30] sm:$0xff]  ;;  %1653 = vmatpush.msrb.mxu3 %v1630_v43 }
 0x21b   : > { %1719 = vmatpush.msrb.mxu1 %v1696_v45 }
 0x21c   : > { %3353 = vmatpush.msra.mxu2 %v4150_v1  ;;  %3263 = vmatmul.msk.f32.vlgmr.msrb.gmra.mxu1 %vm1538_vm1, %v1689_v44 }
 0x21d   : > { %1784 = vmatpush.msra.mxu3 %v1763_v3  ;;  %1850 = vmatpush.msra.mxu1 %v1829_v17  ;;  %v3430_v17 = vld [vmem:[%s4416_s7] ss:$0 sm:$0xff] }
 0x21e   : > { %3354 = vmatpush.msra.mxu2 %v4160_v20 }
 0x21f   : > { %1785 = vmatpush.msra.mxu3 %v1762_v27  ;;  %1851 = vmatpush.msra.mxu1 %v1828_v56  ;;  %v1953_v60 = vpop.f32.mrf.mxu0  ;;  %v3431_v56 = vld [vmem:[%s4417_s8] ss:$0 sm:$0xff] }
 0x220   : > { %3355 = vmatpush.msra.mxu2 %v4162_v12 }
 0x221   : > { %3273 = vmatmul.msk.f32.vlgmr.msrb.gmra.mxu2 %vm1471_vm0, %v1862_v42  ;;  %1982 = vmatpush.msrb.mxu1 %v1961_v51  ;;  %v3429_v42 = vld [vmem:[%s4415_s6] ss:$0 sm:$0xff] }
 0x222   : > { %2155 = vmatpush.msrb.mxu2 %v2138_v58  ;;  %v2377_v58 = vld [vmem:[#allocation8 + $0xb8] sm:$0xff] }
 0x223   : > { %1983 = vmatpush.msrb.mxu1 %v1960_v57  ;;  %v3296_v57 = vld [vmem:[%s4418_s9 + $0x10] sm:$0xf] }
 0x224   : > { %3264 = vmatmul.msk.f32.gmra.mxu1 %vm1538_vm1, %v1692_v53  ;;  %2156 = vmatpush.msrb.mxu2 %v2137_v21 }
 0x226   : > { %2157 = vmatpush.msrb.mxu2 %v2136_v24  ;;  %v2375_v24 = vld [vmem:[#allocation8 + $0xa8] sm:$0xff] }
 0x227   : > { %v1956_v62 = vpop.f32.mrf.mxu0 }
 0x228   : > { %2158 = vmatpush.msrb.mxu2 %v2135_v32  ;;  %v2374_v32 = vld [vmem:[#allocation8 + $0xa0] sm:$0xff] }
 0x229   : > { %3274 = vmatmul.msk.f32.gmra.mxu2 %vm1471_vm0, %v1863_v14 }
 0x22c   : > { %3271 = vmatmul.msk.f32.vlgmr.msra.gmra.mxu1 %vm1538_vm1, %v1821_v46 }
 0x22f   : > { %v2019_v15 = vpop.f32.mrf.mxu0 }
 0x231   : > { %3282 = vmatmul.msk.f32.vlgmr.msra.gmra.mxu2 %vm1471_vm0, %v1995_v29 }
 0x234   : > { %3272 = vmatmul.msk.f32.gmra.mxu1 %vm1538_vm1, %v1824_v28 }
 0x23c   : > { %3279 = vmatmul.msk.f32.vlgmr.msrb.gmra.mxu1 %vm1538_vm1, %v1953_v60  ;;  %v3290_v60 = vld [vmem:[%s4418_s9 + $0x8] sm:$0xf] }
 0x244   : > { %3280 = vmatmul.msk.f32.gmra.mxu1 %vm1538_vm1, %v1956_v62  ;;  %v2106_v62 = vld [vmem:[#allocation8 + $0x8] sm:$0xff] }
 0x273   : > { %v1591_v6 = vpop.f32.mrf.mxu3 }
 0x274   : > { %v1562_v36 = vpop.f32.mrf.mxu2 }
 0x275   : > { %v1592_v12 = vadd.f32 %v1591_v6, %v1562_v36 }
 0x27b   : > { %v1594_v18 = vpop.f32.mrf.mxu3 }
 0x27c   : > { %v1565_v33 = vpop.f32.mrf.mxu2 }
 0x27d   : > { %v1595_v34 = vadd.f32 %v1594_v18, %v1565_v33  ;;  %v3293_v18 = vld [vmem:[%s4418_s9 + $0xc] sm:$0xf] }
 0x284   : > { %v1623_v49 = vpop.f32.mrf.mxu2 }
 0x285   : > { %3259 = vmatmul.msk.f32.vlgmr.msrb.gmra.mxu3 %vm1538_vm1, %v1623_v49  ;;  %v3286_v49 = vld [vmem:[%s4418_s9 + $0x4] sm:$0xf] }
 0x286   : > { %1916 = vmatpush.msrb.mxu3 %v1895_v59  ;;  %v2081_v59 = vld [vmem:[%s4418_s9] sm:$0xf] }
 0x288   : > { %1917 = vmatpush.msrb.mxu3 %v1894_v22  ;;  %v2108_v22 = vld [vmem:[#allocation8 + $0x18] sm:$0xff] }
 0x28c   : > { %v1626_v50 = vpop.f32.mrf.mxu2 }
 0x28d   : > { %3260 = vmatmul.msk.f32.gmra.mxu3 %vm1538_vm1, %v1626_v50  ;;  %v2107_v50 = vld [vmem:[#allocation8 + $0x10] sm:$0xff] }
 0x294   : > { %v1755_v0 = vpop.f32.mrf.mxu2 }
 0x295   : > { %3267 = vmatmul.msk.f32.vlgmr.msra.gmra.mxu3 %vm1538_vm1, %v1755_v0  ;;  %v2215_v0 = vld [vmem:[#allocation8 + $0x58] sm:$0xff] }
 0x296   : > { %2048 = vmatpush.msra.mxu3 %v2027_v47  ;;  %v2105_v47 = vld [vmem:[#allocation8] sm:$0xff] }
 0x298   : > { %2049 = vmatpush.msra.mxu3 %v2026_v52  ;;  %v2214_v52 = vld [vmem:[#allocation8 + $0x50] sm:$0xff] }
 0x299   : > { %v1721_v19 = vpop.f32.mrf.mxu1 }
 0x29c   : > { %v1758_v1 = vpop.f32.mrf.mxu2 }
 0x29d   : > { %3268 = vmatmul.msk.f32.gmra.mxu3 %vm1538_vm1, %v1758_v1  ;;  %v2213_v1 = vld [vmem:[#allocation8 + $0x48] sm:$0xff] }
 0x2a1   : > { %v1724_v7 = vpop.f32.mrf.mxu1 }
 0x2a4   : > { %v1887_v2 = vpop.f32.mrf.mxu2 }
 0x2a5   : > { %3275 = vmatmul.msk.f32.vlgmr.msrb.gmra.mxu3 %vm1538_vm1, %v1887_v2  ;;  %v2212_v2 = vld [vmem:[#allocation8 + $0x40] sm:$0xff] }
 0x2a6   : > { %2178 = vmatpush.msrb.mxu3 %v2108_v22 }
 0x2a8   : > { %2179 = vmatpush.msrb.mxu3 %v2107_v50 }
 0x2a9   : > { %v1853_v54 = vpop.f32.mrf.mxu1 }
 0x2aa   : > { %2180 = vmatpush.msrb.mxu3 %v2106_v62 }
 0x2ac   : > { %v1890_v11 = vpop.f32.mrf.mxu2  ;;  %2181 = vmatpush.msrb.mxu3 %v2105_v47 }
 0x2ad   : > { %3276 = vmatmul.msk.f32.gmra.mxu3 %vm1538_vm1, %v1890_v11  ;;  %v3302_v11 = vld [vmem:[%s4418_s9 + $0x18] sm:$0xf] }
 0x2b1   : > { %v1856_v23 = vpop.f32.mrf.mxu1 }
 0x2b4   : > { %v2022_v16 = vpop.f32.mrf.mxu2 }
 0x2b5   : > { %3283 = vmatmul.msk.f32.vlgmr.msra.gmra.mxu3 %vm1538_vm1, %v2019_v15 }
 0x2b9   : > { %v1985_v39 = vpop.f32.mrf.mxu1 }
 0x2bd   : > { %3284 = vmatmul.msk.f32.gmra.mxu3 %vm1538_vm1, %v2022_v16  ;;  %v3308_v16 = vld [vmem:[%s4418_s9 + $0x20] sm:$0xf] }
 0x2c1   : > { %v1988_v55 = vpop.f32.mrf.mxu1 }
 0x308   : > { %v1655_v31 = vpop.f32.mrf.mxu3 }
 0x309   : > { %v1661_v10 = vadd.f32 %v1655_v31, %v1592_v12  ;;  %v2323_v12 = vld [vmem:[#allocation8 + $0x98] sm:$0xff] }
 0x30b   : > { %v1727_v30 = vadd.f32 %v1721_v19, %v1661_v10  ;;  %v3299_v19 = vld [vmem:[%s4418_s9 + $0x14] sm:$0xf] }
 0x30c   : > { %v2322_v10 = vld [vmem:[#allocation8 + $0x90] sm:$0xff] }
 0x310   : > { %v1658_v4 = vpop.f32.mrf.mxu3 }
 0x311   : > { %v1662_v8 = vadd.f32 %v1658_v4, %v1595_v34  ;;  %v3305_v4 = vld [vmem:[%s4418_s9 + $0x1c] sm:$0xf] }
 0x312   : > { %v2431_v34 = vld [vmem:[#allocation8 + $0xd8] sm:$0xff] }
 0x313   : > { %v1728_v38 = vadd.f32 %v1724_v7, %v1662_v8  ;;  %v2269_v7 = vld [vmem:[#allocation8 + $0x78] sm:$0xff]  ;;  %v2429_v8 = vld [vmem:[#allocation8 + $0xc8] sm:$0xff] }
 0x314   : > { %2285 = vmatpush.msra.mxu3 %v2269_v7 }
 0x318   : > { %v1787_v5 = vpop.f32.mrf.mxu3 }
 0x319   : > { %v1793_v35 = vadd.f32 %v1787_v5, %v1727_v30  ;;  %v2268_v5 = vld [vmem:[#allocation8 + $0x70] sm:$0xff]  ;;  %v2320_v30 = vld [vmem:[#allocation8 + $0x80] sm:$0xff] }
 0x31a   : > { %2286 = vmatpush.msra.mxu3 %v2268_v5 }
 0x31b   : > { %v1859_v9 = vadd.f32 %v1853_v54, %v1793_v35  ;;  %v2267_v54 = vld [vmem:[#allocation8 + $0x68] sm:$0xff]  ;;  %v2430_v35 = vld [vmem:[#allocation8 + $0xd0] sm:$0xff] }
 0x31c   : > { %2287 = vmatpush.msra.mxu3 %v2267_v54  ;;  %v2581_v54 = vld [vmem:[%s4423_s14] sm:$0x1] }
 0x320   : > { %v1790_v20 = vpop.f32.mrf.mxu3 }
 0x321   : > { %v1794_v40 = vadd.f32 %v1790_v20, %v1728_v38  ;;  %v2266_v20 = vld [vmem:[#allocation8 + $0x60] sm:$0xff]  ;;  %v2539_v38 = vld [vmem:[#allocation8 + $0x118] sm:$0xff] }
 0x322   : > { %2288 = vmatpush.msra.mxu3 %v2266_v20  ;;  %v2731_v20 = vld [vmem:[#allocation10 + $0xb8] sm:$0xff] }
 0x323   : > { %v1860_v61 = vadd.f32 %v1856_v23, %v1794_v40  ;;  %v2321_v23 = vld [vmem:[#allocation8 + $0x88] sm:$0xff]  ;;  %v2536_v40 = vld [vmem:[#allocation8 + $0x100] sm:$0xff] }
 0x328   : > { %v1919_v63 = vpop.f32.mrf.mxu3 }
 0x329   : > { %v1925_v48 = vadd.f32 %v1919_v63, %v1859_v9  ;;  %v2376_v63 = vld [vmem:[#allocation8 + $0xb0] sm:$0xff]  ;;  %v2428_v9 = vld [vmem:[#allocation8 + $0xc0] sm:$0xff] }
 0x32b   : > { %v1991_v25 = vadd.f32 %v1985_v39, %v1925_v48  ;;  %v2538_v48 = vld [vmem:[#allocation8 + $0x110] sm:$0xff]  ;;  %v2537_v39 = vld [vmem:[#allocation8 + $0x108] sm:$0xff] }
 0x330   : > { %v1922_v37 = vpop.f32.mrf.mxu3 }
 0x331   : > { %v1926_v14 = vadd.f32 %v1922_v37, %v1860_v61  ;;  %v2485_v61 = vld [vmem:[#allocation8 + $0xf8] sm:$0xff] }
 0x333   : > { %v1992_v26 = vadd.f32 %v1988_v55, %v1926_v14  ;;  %v2483_v14 = vld [vmem:[#allocation8 + $0xe8] sm:$0xff] }
 0x338   : > { %v2051_v13 = vpop.f32.mrf.mxu3 }
 0x339   : > { %v2057_v41 = vadd.f32 %v2051_v13, %v1991_v25 }
 0x33b   : > { %v2063_v29 = vadd.f32 %v3429_v42, %v2057_v41 }
 0x33d   : > { %v2065_v44 = vmul.f32 0.2, %v2063_v29 }
 0x33f   : > { %v2067_v3 = vmax.f32 %v2063_v29, %v2065_v44  ;;  %v2482_v29 = vld [vmem:[#allocation8 + $0xe0] sm:$0xff]  ;;  %v2616_v44 = vld [vmem:[#allocation10 + $0x30] sm:$0xff] }
 0x340   : > { %v2054_v43 = vpop.f32.mrf.mxu3 }
 0x341   : > { %v2058_v45 = vadd.f32 %v2054_v43, %v1992_v26  ;;  %v2073_v46 = vmul.f32 %v3430_v17, %v2067_v3  ;;  %v2617_v43 = vld [vmem:[#allocation10 + $0x38] sm:$0xff]  ;;  %v2614_v3 = vld [vmem:[#allocation10 + $0x20] sm:$0xff] }
 0x343   : > { %v2064_v53 = vadd.f32 %v3429_v42, %v2058_v45  ;;  %v2079_v51 = vadd.f32 %v3431_v56, %v2073_v46  ;;  %v2484_v42 = vld [vmem:[#allocation8 + $0xf0] sm:$0xff] }
 0x345   : > { %v2066_v36 = vmul.f32 0.2, %v2064_v53 }
 0x347   : > { %v2068_v27 = vmax.f32 %v2064_v53, %v2066_v36  ;;  %v2615_v53 = vld [vmem:[#allocation10 + $0x28] sm:$0xff]  ;;  %v2613_v36 = vld [vmem:[#allocation10 + $0x18] sm:$0xff] }
 0x349   : > { %v2074_v33 = vmul.f32 %v3430_v17, %v2068_v27  ;;  %v2612_v27 = vld [vmem:[#allocation10 + $0x10] sm:$0xff] }
 0x34b   : > { %v2080_v28 = vadd.f32 %v3431_v56, %v2074_v33  ;;  %v2611_v56 = vld [vmem:[#allocation10 + $0x8] sm:$0xff]  ;;  %v2610_v33 = vld [vmem:[#allocation10] sm:$0xff] }
 0x34d   : > { %2099 = vmatpush.msrb.mxu0 %v2080_v28  ;;  %2128 = vmatpush.msra.mxu1 %v2080_v28 }
 0x34e   : > { %2259 = vmatpush.msra.mxu2 %v2080_v28 }
 0x34f   : > { %2100 = vmatpush.msrb.mxu0 %v2079_v51  ;;  %2129 = vmatpush.msra.mxu1 %v2079_v51 }
 0x350   : > { %2260 = vmatpush.msra.mxu2 %v2079_v51  ;;  %3285 = vmatmul.msk.f32.vlgmr.msrb.gmra.mxu0 %vm1538_vm1, %v2081_v59 }
 0x351   : > { %3287 = vmatmul.msk.f32.vlgmr.msra.gmra.mxu1 %vm1538_vm1, %v3286_v49  ;;  %2205 = vmatpush.msra.mxu0 %v2080_v28 }
 0x352   : > { %2231 = vmatpush.msrb.mxu1 %v2215_v0 }
 0x353   : > { %2206 = vmatpush.msra.mxu0 %v2079_v51 }
 0x354   : > { %2232 = vmatpush.msrb.mxu1 %v2214_v52 }
 0x355   : > { %2313 = vmatpush.msrb.mxu0 %v2080_v28 }
 0x356   : > { %2233 = vmatpush.msrb.mxu1 %v2213_v1  ;;  %v3432_v1 = vld [vmem:[%s4420_s11] ss:$0 sm:$0xff] }
 0x357   : > { %2314 = vmatpush.msrb.mxu0 %v2079_v51 }
 0x358   : > { %3291 = vmatmul.msk.f32.vlgmr.msra.gmra.mxu0 %vm1538_vm1, %v3290_v60  ;;  %2234 = vmatpush.msrb.mxu1 %v2212_v2 }
 0x359   : > { %2421 = vmatpush.msra.mxu0 %v2080_v28 }
 0x35a   : > { %2339 = vmatpush.msra.mxu1 %v2323_v12  ;;  %v3313_v12 = vld [vmem:[%s4423_s14 + $0x1] sm:$0x1] }
 0x35b   : > { %2422 = vmatpush.msra.mxu0 %v2079_v51 }
 0x35c   : > { %2340 = vmatpush.msra.mxu1 %v2322_v10  ;;  %v2648_v10 = vld [vmem:[#allocation10 + $0x60] sm:$0xff] }
 0x35e   : > { %2341 = vmatpush.msra.mxu1 %v2321_v23  ;;  %v2728_v23 = vld [vmem:[#allocation10 + $0xa0] sm:$0xff] }
 0x360   : > { %3297 = vmatmul.msk.f32.vlgmr.msrb.gmra.mxu0 %vm1538_vm1, %v3296_v57  ;;  %2342 = vmatpush.msra.mxu1 %v2320_v30  ;;  %v3318_v30 = vld [vmem:[%s4423_s14 + $0x2] sm:$0x1] }
 0x361   : > { %2529 = vmatpush.msrb.mxu0 %v2080_v28 }
 0x363   : > { %2530 = vmatpush.msrb.mxu0 %v2079_v51 }
 0x368   : > { %3303 = vmatmul.msk.f32.vlgmr.msra.gmra.mxu0 %vm1538_vm1, %v3302_v11 }
 0x370   : > { %3309 = vmatmul.msk.f32.vlgmr.msrb.gmra.mxu0 %vm1538_vm1, %v3308_v16  ;;  %v3433_v16 = vld [vmem:[%s4421_s12] ss:$0 sm:$0xff] }
 0x3cd   : > { %v2102_v15 = vpop.f32.mrf.mxu0 }
 0x3ce   : > { %v2131_v6 = vpop.f32.mrf.mxu1  ;;  %3289 = vmatmul.msk.f32.vlgmr.msrb.gmra.mxu3 %vm2139_vm2, %v2102_v15 }
 0x3cf   : > { %3288 = vmatmul.msk.f32.vlgmr.msrb.gmra.mxu2 %vm2139_vm2, %v2131_v6  ;;  %2393 = vmatpush.msrb.mxu3 %v2377_v58  ;;  %v2651_v6 = vld [vmem:[#allocation10 + $0x78] sm:$0xff]  ;;  %v2730_v58 = vld [vmem:[#allocation10 + $0xb0] sm:$0xff] }
 0x3d0   : > { %2367 = vmatpush.msrb.mxu2 %v2080_v28  ;;  %2663 = vmatpush.msra.mxu0 %v2651_v6  ;;  %v3020_v6 = vld [vmem:[#allocation10 + $0x1f0] sm:$0xff] }
 0x3d1   : > { %2394 = vmatpush.msrb.mxu3 %v2376_v63  ;;  %v2729_v63 = vld [vmem:[#allocation10 + $0xa8] sm:$0xff] }
 0x3d2   : > { %2368 = vmatpush.msrb.mxu2 %v2079_v51 }
 0x3d3   : > { %2395 = vmatpush.msrb.mxu3 %v2375_v24  ;;  %v2646_v24 = vld [vmem:[#allocation10 + $0x50] sm:$0xff] }
 0x3d5   : > { %v2208_v31 = vpop.f32.mrf.mxu0  ;;  %2396 = vmatpush.msrb.mxu3 %v2374_v32  ;;  %v2727_v32 = vld [vmem:[#allocation10 + $0x98] sm:$0xff] }
 0x3d6   : > { %3292 = vmatmul.msk.f32.vlgmr.msrb.gmra.mxu1 %vm2139_vm2, %v2208_v31 }
 0x3d7   : > { %3294 = vmatmul.msk.f32.vlgmr.msra.gmra.mxu2 %vm1538_vm1, %v3293_v18  ;;  %2447 = vmatpush.msrb.mxu1 %v2431_v34  ;;  %v2650_v18 = vld [vmem:[#allocation10 + $0x70] sm:$0xff]  ;;  %v2847_v34 = vld [vmem:[#allocation10 + $0x138] sm:$0xff] }
 0x3d8   : > { %2475 = vmatpush.msra.mxu2 %v2080_v28  ;;  %2664 = vmatpush.msra.mxu0 %v2650_v18 }
 0x3d9   : > { %2448 = vmatpush.msrb.mxu1 %v2430_v35  ;;  %v2726_v35 = vld [vmem:[#allocation10 + $0x90] sm:$0xff] }
 0x3da   : > { %2476 = vmatpush.msra.mxu2 %v2079_v51 }
 0x3db   : > { %2449 = vmatpush.msrb.mxu1 %v2429_v8  ;;  %v2846_v8 = vld [vmem:[#allocation10 + $0x130] sm:$0xff] }
 0x3dd   : > { %v2316_v21 = vpop.f32.mrf.mxu0  ;;  %2450 = vmatpush.msrb.mxu1 %v2428_v9  ;;  %v2845_v9 = vld [vmem:[#allocation10 + $0x128] sm:$0xff] }
 0x3de   : > { %3298 = vmatmul.msk.f32.vlgmr.msra.gmra.mxu1 %vm2139_vm2, %v2316_v21  ;;  %v2647_v21 = vld [vmem:[#allocation10 + $0x58] sm:$0xff] }
 0x3df   : > { %3300 = vmatmul.msk.f32.vlgmr.msrb.gmra.mxu2 %vm1538_vm1, %v3299_v19  ;;  %2555 = vmatpush.msra.mxu1 %v2539_v38  ;;  %v3434_v19 = vld [vmem:[%s4422_s13] ss:$0 sm:$0xff]  ;;  %v2724_v38 = vld [vmem:[#allocation10 + $0x80] sm:$0xff] }
 0x3e1   : > { %2556 = vmatpush.msra.mxu1 %v2538_v48  ;;  %v2844_v48 = vld [vmem:[#allocation10 + $0x120] sm:$0xff] }
 0x3e3   : > { %2557 = vmatpush.msra.mxu1 %v2537_v39  ;;  %v3322_v39 = vld [vmem:[%s4423_s14 + $0x3] sm:$0x1] }
 0x3e5   : > { %v2424_v37 = vpop.f32.mrf.mxu0  ;;  %2558 = vmatpush.msra.mxu1 %v2536_v40  ;;  %v2843_v40 = vld [vmem:[#allocation10 + $0x118] sm:$0xff] }
 0x3e6   : > { %3304 = vmatmul.msk.f32.vlgmr.msrb.gmra.mxu1 %vm2139_vm2, %v2424_v37  ;;  %v2725_v37 = vld [vmem:[#allocation10 + $0x88] sm:$0xff] }
 0x3e7   : > { %3306 = vmatmul.msk.f32.vlgmr.msra.gmra.mxu2 %vm1538_vm1, %v3305_v4  ;;  %2686 = vmatpush.msrb.mxu1 %v2617_v43  ;;  %v2649_v4 = vld [vmem:[#allocation10 + $0x68] sm:$0xff]  ;;  %v2785_v43 = vld [vmem:[#allocation10 + $0xd8] sm:$0xff] }
 0x3e8   : > { %2665 = vmatpush.msra.mxu0 %v2649_v4 }
 0x3e9   : > { %2687 = vmatpush.msrb.mxu1 %v2616_v44  ;;  %v2784_v44 = vld [vmem:[#allocation10 + $0xd0] sm:$0xff] }
 0x3ea   : > { %2666 = vmatpush.msra.mxu0 %v2648_v10 }
 0x3eb   : > { %2688 = vmatpush.msrb.mxu1 %v2615_v53  ;;  %v2782_v53 = vld [vmem:[#allocation10 + $0xc0] sm:$0xff] }
 0x3ec   : > { %2667 = vmatpush.msra.mxu0 %v2647_v21  ;;  %v3017_v21 = vld [vmem:[#allocation10 + $0x1d8] sm:$0xff] }
 0x3ed   : > { %v2532_v25 = vpop.f32.mrf.mxu0  ;;  %2689 = vmatpush.msrb.mxu1 %v2614_v3  ;;  %v2905_v3 = vld [vmem:[#allocation10 + $0x178] sm:$0xff] }
 0x3ee   : > { %3310 = vmatmul.msk.f32.vlgmr.msra.gmra.mxu1 %vm2139_vm2, %v2532_v25  ;;  %2668 = vmatpush.msra.mxu0 %v2646_v24  ;;  %v2842_v25 = vld [vmem:[#allocation10 + $0x110] sm:$0xff] }
 0x3ef   : > { %2690 = vmatpush.msrb.mxu1 %v2613_v36  ;;  %v2904_v36 = vld [vmem:[#allocation10 + $0x170] sm:$0xff] }
 0x3f0   : > { %v3078_v24 = vld [vmem:[#allocation10 + $0x230] sm:$0xff] }
 0x3f1   : > { %2691 = vmatpush.msrb.mxu1 %v2612_v27 }
 0x3f3   : > { %2692 = vmatpush.msrb.mxu1 %v2611_v56  ;;  %v2902_v56 = vld [vmem:[#allocation10 + $0x160] sm:$0xff] }
 0x3f5   : > { %2693 = vmatpush.msrb.mxu1 %v2610_v33  ;;  %v3326_v33 = vld [vmem:[%s4423_s14 + $0x4] sm:$0x1] }
 0x451   : > { %v2183_v17 = vpop.f32.mrf.mxu3 }
 0x452   : > { %v2160_v13 = vpop.f32.mrf.mxu2 }
 0x453   : > { %v2236_v45 = vpop.f32.mrf.mxu1  ;;  %v2184_v28 = vadd.f32 %v2183_v17, %v2160_v13  ;;  %v2841_v13 = vld [vmem:[#allocation10 + $0x108] sm:$0xff] }
 0x455   : > { %v2239_v59 = vadd.f32 %v2236_v45, %v2184_v28  ;;  %v2783_v45 = vld [vmem:[#allocation10 + $0xc8] sm:$0xff]  ;;  %v2901_v28 = vld [vmem:[#allocation10 + $0x158] sm:$0xff] }
 0x45a   : > { %v2262_v41 = vpop.f32.mrf.mxu2 }
 0x45b   : > { %3295 = vmatmul.msk.f32.vlgmr.msra.gmra.mxu3 %vm2139_vm2, %v2262_v41  ;;  %v2344_v46 = vpop.f32.mrf.mxu1  ;;  %v2645_v41 = vld [vmem:[#allocation10 + $0x48] sm:$0xff] }
 0x45c   : > { %2501 = vmatpush.msra.mxu3 %v2485_v61  ;;  %v2840_v61 = vld [vmem:[#allocation10 + $0x100] sm:$0xff]  ;;  %2669 = vmatpush.msra.mxu0 %v2645_v41 }
 0x45e   : > { %2502 = vmatpush.msra.mxu3 %v2484_v42  ;;  %v2644_v42 = vld [vmem:[#allocation10 + $0x40] sm:$0xff] }
 0x45f   : > { %2670 = vmatpush.msra.mxu0 %v2644_v42 }
 0x460   : > { %2503 = vmatpush.msra.mxu3 %v2483_v14  ;;  %v2789_v14 = vld [vmem:[#allocation10 + $0xf8] sm:$0xff] }
 0x461   : > { %2801 = vmatpush.msrb.mxu0 %v2789_v14 }
 0x462   : > { %v2370_v55 = vpop.f32.mrf.mxu2  ;;  %2504 = vmatpush.msra.mxu3 %v2482_v29  ;;  %v2788_v29 = vld [vmem:[#allocation10 + $0xf0] sm:$0xff] }
 0x463   : > { %3301 = vmatmul.msk.f32.vlgmr.msrb.gmra.mxu3 %vm2139_vm2, %v2370_v55  ;;  %v2452_v60 = vpop.f32.mrf.mxu1  ;;  %2802 = vmatpush.msrb.mxu0 %v2788_v29  ;;  %v2787_v55 = vld [vmem:[#allocation10 + $0xe8] sm:$0xff] }
 0x465   : > { %2803 = vmatpush.msrb.mxu0 %v2787_v55 }
 0x46a   : > { %v2478_v26 = vpop.f32.mrf.mxu2 }
 0x46b   : > { %3307 = vmatmul.msk.f32.vlgmr.msra.gmra.mxu3 %vm2139_vm2, %v2478_v26  ;;  %v2560_v0 = vpop.f32.mrf.mxu1  ;;  %v2786_v26 = vld [vmem:[#allocation10 + $0xe0] sm:$0xff] }
 0x46c   : > { %2804 = vmatpush.msrb.mxu0 %v2786_v26 }
 0x46e   : > { %2805 = vmatpush.msrb.mxu0 %v2785_v43 }
 0x470   : > { %2806 = vmatpush.msrb.mxu0 %v2784_v44 }
 0x472   : > { %2807 = vmatpush.msrb.mxu0 %v2783_v45  ;;  %v3104_v45 = vld [vmem:[%s4425_s16] sm:$0x1] }
 0x474   : > { %2808 = vmatpush.msrb.mxu0 %v2782_v53 }
 0x4de   : > { %v2290_v51 = vpop.f32.mrf.mxu3 }
 0x4df   : > { %v2293_v49 = vadd.f32 %v2290_v51, %v2239_v59  ;;  %v2900_v59 = vld [vmem:[#allocation10 + $0x150] sm:$0xff] }
 0x4e1   : > { %v2347_v22 = vadd.f32 %v2344_v46, %v2293_v49  ;;  %v2903_v46 = vld [vmem:[#allocation10 + $0x168] sm:$0xff] }
 0x4e2   : > { %v2899_v49 = vld [vmem:[#allocation10 + $0x148] sm:$0xff] }
 0x4e6   : > { %v2398_v57 = vpop.f32.mrf.mxu3 }
 0x4e7   : > { %v2401_v50 = vadd.f32 %v2398_v57, %v2347_v22  ;;  %v3330_v57 = vld [vmem:[%s4423_s14 + $0x5] sm:$0x1] }
 0x4e9   : > { %v2455_v62 = vadd.f32 %v2452_v60, %v2401_v50  ;;  %v2898_v60 = vld [vmem:[#allocation10 + $0x140] sm:$0xff] }
 0x4ea   : > { %v3334_v50 = vld [vmem:[%s4423_s14 + $0x6] sm:$0x1] }
 0x4ee   : > { %v2506_v47 = vpop.f32.mrf.mxu3 }
 0x4ef   : > { %v2509_v52 = vadd.f32 %v2506_v47, %v2455_v62  ;;  %v2963_v62 = vld [vmem:[#allocation10 + $0x1b8] sm:$0xff]  ;;  %v2962_v47 = vld [vmem:[#allocation10 + $0x1b0] sm:$0xff] }
 0x4f1   : > { %v2563_v2 = vadd.f32 %v2560_v0, %v2509_v52  ;;  %v2961_v0 = vld [vmem:[#allocation10 + $0x1a8] sm:$0xff]  ;;  %v2960_v52 = vld [vmem:[#allocation10 + $0x1a0] sm:$0xff] }
 0x4f3   : > { %v2568_v11 = vadd.f32 %v3432_v1, %v2563_v2  ;;  %v2959_v1 = vld [vmem:[#allocation10 + $0x198] sm:$0xff]  ;;  %v2958_v2 = vld [vmem:[#allocation10 + $0x190] sm:$0xff] }
 0x4f5   : > { %v2569_v15 = vmul.f32 0.2, %v2568_v11 }
 0x4f7   : > { %v2570_v31 = vmax.f32 %v2568_v11, %v2569_v15  ;;  %v2957_v11 = vld [vmem:[#allocation10 + $0x188] sm:$0xff]  ;;  %v2956_v15 = vld [vmem:[#allocation10 + $0x180] sm:$0xff] }
 0x4f9   : > { %v2575_v7 = vmul.f32 %v3433_v16, %v2570_v31  ;;  %v3021_v16 = vld [vmem:[#allocation10 + $0x1f8] sm:$0xff]  ;;  %v3019_v31 = vld [vmem:[#allocation10 + $0x1e8] sm:$0xff] }
 0x4fb   : > { %v4325_v5 = vadd.f32 %v3434_v19, %v2575_v7 }
 0x4fd   : > { %3311 = vmatpush.msk.msrb.mxu2 %vm2586_vm3, %v4325_v5  ;;  %3314 = vmatpush.msk.msrb.mxu3 %vm2586_vm3, %v4325_v5 }
 0x4fe   : > { %3327 = vmatpush.msk.msra.mxu1 %vm2586_vm3, %v4325_v5  ;;  %3312 = vmatmul.msk.f32.vlgmr.msrb.gmra.mxu2 %vm2582_vm4, %v2581_v54  ;;  %v3338_v54 = vld [vmem:[%s4423_s14 + $0x7] sm:$0x1] }
 0x4ff   : > { %3319 = vmatpush.msk.msra.mxu2 %vm2586_vm3, %v4325_v5  ;;  %2743 = vmatpush.msra.mxu3 %v2731_v20 }
 0x500   : > { %3315 = vmatmul.msk.f32.vlgmr.msrb.gmra.mxu3 %vm2582_vm4, %v3313_v12 }
 0x501   : > { %3323 = vmatpush.msk.msrb.mxu2 %vm2586_vm3, %v4325_v5  ;;  %2744 = vmatpush.msra.mxu3 %v2730_v58  ;;  %v3342_v58 = vld [vmem:[%s4423_s14 + $0x8] sm:$0x1] }
 0x503   : > { %2745 = vmatpush.msra.mxu3 %v2729_v63  ;;  %v3018_v63 = vld [vmem:[#allocation10 + $0x1e0] sm:$0xff] }
 0x505   : > { %2746 = vmatpush.msra.mxu3 %v2728_v23  ;;  %v3079_v23 = vld [vmem:[#allocation10 + $0x238] sm:$0xff] }
 0x506   : > { %3320 = vmatmul.msk.f32.vlgmr.msra.gmra.mxu2 %vm2582_vm4, %v3318_v30  ;;  %v3016_v30 = vld [vmem:[#allocation10 + $0x1d0] sm:$0xff] }
 0x507   : > { %2747 = vmatpush.msra.mxu3 %v2727_v32  ;;  %2859 = vmatpush.msra.mxu2 %v2847_v34  ;;  %v3077_v32 = vld [vmem:[#allocation10 + $0x228] sm:$0xff] }
 0x508   : > { %v3015_v34 = vld [vmem:[#allocation10 + $0x1c8] sm:$0xff] }
 0x509   : > { %2748 = vmatpush.msra.mxu3 %v2726_v35  ;;  %2860 = vmatpush.msra.mxu2 %v2846_v8  ;;  %v3014_v35 = vld [vmem:[#allocation10 + $0x1c0] sm:$0xff] }
 0x50a   : > { %v3076_v8 = vld [vmem:[#allocation10 + $0x220] sm:$0xff] }
 0x50b   : > { %2749 = vmatpush.msra.mxu3 %v2725_v37  ;;  %2861 = vmatpush.msra.mxu2 %v2845_v9  ;;  %v3075_v37 = vld [vmem:[#allocation10 + $0x218] sm:$0xff]  ;;  %v3074_v9 = vld [vmem:[#allocation10 + $0x210] sm:$0xff] }
 0x50d   : > { %2750 = vmatpush.msra.mxu3 %v2724_v38  ;;  %2862 = vmatpush.msra.mxu2 %v2844_v48  ;;  %v3073_v38 = vld [vmem:[#allocation10 + $0x208] sm:$0xff]  ;;  %v3072_v48 = vld [vmem:[#allocation10 + $0x200] sm:$0xff] }
 0x50e   : > { %3324 = vmatmul.msk.f32.vlgmr.msrb.gmra.mxu2 %vm2582_vm4, %v3322_v39 }
 0x50f   : > { %3331 = vmatpush.msk.msrb.mxu3 %vm2586_vm3, %v4325_v5  ;;  %2863 = vmatpush.msra.mxu2 %v2843_v40 }
 0x511   : > { %2864 = vmatpush.msra.mxu2 %v2842_v25 }
 0x513   : > { %2865 = vmatpush.msra.mxu2 %v2841_v13 }
 0x515   : > { %2866 = vmatpush.msra.mxu2 %v2840_v61 }
 0x517   : > { %3339 = vmatpush.msk.msrb.mxu2 %vm2586_vm3, %v4325_v5 }
 0x581   : > { %v2607_v17 = vpop.f32.mrf.mxu2 }
 0x582   : > { %3317 = vmatmul.msk.f32.vlgmr.msrb.gmra.mxu1 %vm1471_vm0, %v2607_v17 }
 0x583   : > { %2917 = vmatpush.msrb.mxu1 %v2905_v3  ;;  %v2640_v27 = vpop.f32.mrf.mxu3 }
 0x584   : > { %3316 = vmatmul.msk.f32.vlgmr.msra.gmra.mxu0 %vm1471_vm0, %v2640_v27 }
 0x585   : > { %2918 = vmatpush.msrb.mxu1 %v2904_v36  ;;  %2975 = vmatpush.msra.mxu0 %v2963_v62  ;;  %v3108_v36 = vld [vmem:[%s4426_s17] sm:$0x1] }
 0x587   : > { %2919 = vmatpush.msrb.mxu1 %v2903_v46  ;;  %2976 = vmatpush.msra.mxu0 %v2962_v47  ;;  %v3110_v46 = vld [vmem:[%s4453_s22] sm:$0x1] }
 0x589   : > { %2920 = vmatpush.msrb.mxu1 %v2902_v56  ;;  %v2720_v51 = vpop.f32.mrf.mxu2  ;;  %2977 = vmatpush.msra.mxu0 %v2961_v0 }
 0x58a   : > { %3321 = vmatmul.msk.f32.vlgmr.msra.gmra.mxu3 %vm1471_vm0, %v2720_v51  ;;  %3328 = vmatmul.msk.f32.vlgmr.msra.gmra.mxu1 %vm2582_vm4, %v3326_v33  ;;  %v3112_v33 = vld [vmem:[%s4454_s27] sm:$0x1] }
 0x58b   : > { %2921 = vmatpush.msrb.mxu1 %v2901_v28  ;;  %3335 = vmatpush.msk.msra.mxu3 %vm2586_vm3, %v4325_v5 }
 0x58c   : > { %2978 = vmatpush.msra.mxu0 %v2960_v52 }
 0x58d   : > { %2922 = vmatpush.msrb.mxu1 %v2900_v59 }
 0x58e   : > { %2979 = vmatpush.msra.mxu0 %v2959_v1 }
 0x58f   : > { %2923 = vmatpush.msrb.mxu1 %v2899_v49  ;;  %v3119_v49 = vld [vmem:[#allocation2] sm:$0x1] }
 0x590   : > { %2980 = vmatpush.msra.mxu0 %v2958_v2 }
 0x591   : > { %2924 = vmatpush.msrb.mxu1 %v2898_v60  ;;  %v2778_v22 = vpop.f32.mrf.mxu2 }
 0x592   : > { %3332 = vmatmul.msk.f32.vlgmr.msrb.gmra.mxu3 %vm2582_vm4, %v3330_v57  ;;  %3325 = vmatmul.msk.f32.vlgmr.msrb.gmra.mxu0 %vm1471_vm0, %v2778_v22 }
 0x593   : > { %3343 = vmatpush.msk.msra.mxu1 %vm2586_vm3, %v4325_v5  ;;  %2981 = vmatpush.msra.mxu0 %v2957_v11 }
 0x594   : > { %3033 = vmatpush.msrb.mxu3 %v3021_v16 }
 0x595   : > { %2982 = vmatpush.msra.mxu0 %v2956_v15 }
 0x596   : > { %3034 = vmatpush.msrb.mxu3 %v3020_v6 }
 0x598   : > { %3035 = vmatpush.msrb.mxu3 %v3019_v31 }
 0x59a   : > { %3336 = vmatmul.msk.f32.vlgmr.msra.gmra.mxu3 %vm2582_vm4, %v3334_v50 }
 0x59b   : > { %3036 = vmatpush.msrb.mxu3 %v3018_v63 }
 0x59d   : > { %3037 = vmatpush.msrb.mxu3 %v3017_v21 }
 0x59f   : > { %3038 = vmatpush.msrb.mxu3 %v3016_v30 }
 0x5a1   : > { %3039 = vmatpush.msrb.mxu3 %v3015_v34 }
 0x5a3   : > { %3040 = vmatpush.msrb.mxu3 %v3014_v35 }
 0x5ff   : > { %v2695_v18 = vpop.f32.mrf.mxu1 }
 0x601   : > { %v2672_v4 = vpop.f32.mrf.mxu0 }
 0x602   : > { %v2696_v7 = vadd.f32 %v2695_v18, %v2672_v4 }
 0x607   : > { %v2836_v19 = vpop.f32.mrf.mxu1 }
 0x608   : > { %3329 = vmatmul.msk.f32.vlgmr.msra.gmra.mxu2 %vm1471_vm0, %v2836_v19 }
 0x609   : > { %3091 = vmatpush.msra.mxu2 %v3079_v23 }
 0x60b   : > { %3092 = vmatpush.msra.mxu2 %v3078_v24 }
 0x60d   : > { %v2752_v5 = vpop.f32.mrf.mxu3  ;;  %3093 = vmatpush.msra.mxu2 %v3077_v32 }
 0x60e   : > { %v2755_v20 = vadd.f32 %v2752_v5, %v2696_v7 }
 0x60f   : > { %3094 = vmatpush.msra.mxu2 %v3076_v8  ;;  %v2810_v39 = vpop.f32.mrf.mxu0 }
 0x610   : > { %3340 = vmatmul.msk.f32.vlgmr.msrb.gmra.mxu2 %vm2582_vm4, %v3338_v54  ;;  %v2813_v40 = vadd.f32 %v2810_v39, %v2755_v20 }
 0x611   : > { %3095 = vmatpush.msra.mxu2 %v3075_v37 }
 0x613   : > { %3096 = vmatpush.msra.mxu2 %v3074_v9 }
 0x615   : > { %v2894_v12 = vpop.f32.mrf.mxu3  ;;  %3097 = vmatpush.msra.mxu2 %v3073_v38 }
 0x616   : > { %3333 = vmatmul.msk.f32.vlgmr.msrb.gmra.mxu1 %vm1471_vm0, %v2894_v12 }
 0x617   : > { %3098 = vmatpush.msra.mxu2 %v3072_v48 }
 0x61d   : > { %v2952_v10 = vpop.f32.mrf.mxu3 }
 0x61e   : > { %3337 = vmatmul.msk.f32.vlgmr.msra.gmra.mxu0 %vm1471_vm0, %v2952_v10  ;;  %3344 = vmatmul.msk.f32.vlgmr.msra.gmra.mxu1 %vm2582_vm4, %v3342_v58 }
 0x68b   : > { %v2868_v25 = vpop.f32.mrf.mxu2 }
 0x68c   : > { %v2871_v13 = vadd.f32 %v2868_v25, %v2813_v40 }
 0x693   : > { %v2926_v61 = vpop.f32.mrf.mxu1  ;;  %v3010_v41 = vpop.f32.mrf.mxu2 }
 0x694   : > { %v2929_v42 = vadd.f32 %v2926_v61, %v2871_v13  ;;  %3341 = vmatmul.msk.f32.vlgmr.msrb.gmra.mxu3 %vm1471_vm0, %v3010_v41 }
 0x69b   : > { %v3068_v14 = vpop.f32.mrf.mxu1  ;;  %v2984_v29 = vpop.f32.mrf.mxu0 }
 0x69c   : > { %3345 = vmatmul.msk.f32.vlgmr.msra.gmra.mxu2 %vm1471_vm0, %v3068_v14  ;;  %v2987_v26 = vadd.f32 %v2984_v29, %v2929_v42 }
 0x717   : > { %v3042_v55 = vpop.f32.mrf.mxu3 }
 0x718   : > { %v3045_v43 = vadd.f32 %v3042_v55, %v2987_v26 }
 0x71f   : > { %v3100_v44 = vpop.f32.mrf.mxu2 }
 0x720   : > { %v3103_v53 = vadd.f32 %v3100_v44, %v3045_v43 }
 0x722   : > { %v3105_v3 = vadd.f32 %v3104_v45, %v3103_v53 }
 0x724   : > { %v3106_v17 = vmul.f32 0.2, %v3105_v3 }
 0x726   : > { %v3107_v27 = vmax.f32 %v3105_v3, %v3106_v17 }
 0x728   : > { %v3109_v56 = vmul.f32 %v3108_v36, %v3107_v27 }
 0x72a   : > { %v3111_v28 = vadd.f32 %v3110_v46, %v3109_v56 }
 0x72c   : > { %v3113_v51 = vmul.f32 %v3112_v33, %v3111_v28 }
 0x72e   : > { %v3115_v59 = vsel %vm3114_vm5, %v3113_v51, 0.0 }
 0x72f   : > { %3116 = vadd.xlane.f32.xlu0 %v3115_v59 }
 0x7a2   : > { %v3117_v60 = vpop.xlane.xlu0 %3116 }
 0x7a3   : > { %v3120_v57 = vadd.f32 %v3119_v49, %v3117_v60 }
 0x7a5   : > { %v3121_v22 = vsub.f32 0.0, %v3120_v57 }
 0x7a7   : > { %v3122_v50 = vmul.f32 1.442695, %v3121_v22 }
 0x7a9   : > { %3435 = vpow2.f32 %v3122_v50 }
 0x7af   : > { %v3436_v62 = vpop.eup %3435 }
 0x7b0   : > { %v3124_v47 = vadd.f32 1.0, %v3436_v62 }
 0x7b2   : > { %3437 = vrcp.f32 %v3124_v47 }
 0x7b8   : > { %v3438_v0 = vpop.eup %3437 }
 0x7b9   : > { %3127 = vst.msk [vmem:[%s734_s23] sm:$0x1] %vm3126_vm6, %v3438_v0 }
 0x7ba PF: > { %s4456_s2 = sld [smem:[#allocation14_spill]] }
 0x7c0   : > { %s36_s26 = sadd.s32 1, %s4456_s2  }
 0x7c1   : > { %p33_p7 = scmp.ge.s32.totalorder %s36_s26, 4  }
 0x7c3   :  { %35 = sbr.rel (!%p33_p7) target bundleno = 14 (0xe), region = 219 }
 0x7c8   :  { %3145 = vsyncpa [#allocation4], 1 }
 0x7c9   :  { %3147 = vsyncpa [#allocation4 + $0x1], 1 }
 0x7ca   :  { %3148 = vsyncpa [#allocation6], 1 }
 0x7cb   :  { %3149 = vsyncpa [#allocation9], 1 }

</bundles_post_ra>
